<compile_context>
chip_gen: v5e
topology: v5e:2x2
jax: 0.10.0
libtpu: 0.0.40
codegen_flags: <defaults>
</compile_context>

<pallas_src>
import functools

import numpy as np

import jax
import jax.numpy as jnp
from jax.experimental import pallas as pl
from jax.experimental.pallas import tpu as pltpu


def _cbam_kernel(Bt, H, W, KS, use_matmul_conv,
                 x_ref, w1t_ref, b1_ref, w2t_ref, b2_ref, conv_ref, bns_ref,
                 o_ref):
    """One batch tile (Bt images) per grid step, all work in (.., HW) lane-dense layout."""
    C = x_ref.shape[1]
    HW = H * W
    pad = (KS - 1) // 2
    n_taps = KS * KS
    inv_hw = 1.0 / float(HW)
    inv_c = 1.0 / float(C)
    prec = jax.lax.Precision.HIGHEST

    x = x_ref[...]                                                  # (Bt, C, HW)

    # ---------------- CAM: channel attention (batched over the tile) -------
    avg_c = jnp.sum(x, axis=2) * inv_hw                             # (Bt, C)
    max_c = jnp.max(x, axis=2)                                      # (Bt, C)
    pooled = jnp.concatenate([avg_c, max_c], axis=0)                # (2*Bt, C)

    # Shared MLP for both pooling branches: one pair of MXU dots per grid step.
    h = jnp.maximum(
        jnp.dot(pooled, w1t_ref[...], precision=prec,
                preferred_element_type=jnp.float32) + b1_ref[...], 0.0)   # (2*Bt, hid)
    att = jnp.maximum(
        jnp.dot(h, w2t_ref[...], precision=prec,
                preferred_element_type=jnp.float32) + b2_ref[...], 0.0)   # (2*Bt, C)
    scale_c = jax.nn.sigmoid(att[:Bt] + att[Bt:])                   # (Bt, C)
    cam = x * scale_c[:, :, None]                                   # (Bt, C, HW)

    # ---------------- SAM: channel pooling (flattened spatial) -------------
    ch_max = jnp.max(cam, axis=1)                                   # (Bt, HW)
    ch_mean = jnp.sum(cam, axis=1) * inv_c                          # (Bt, HW)

    if use_matmul_conv:
        # 7x7 conv as one MXU matmul against the resident masked block-Toeplitz
        # matrix (zero padding + BN scale baked in by the wrapper).
        packed = jnp.concatenate([ch_max, ch_mean], axis=1)         # (Bt, 2*HW)
        conv = jnp.dot(packed, conv_ref[...], precision=prec,
                       preferred_element_type=jnp.float32)          # (Bt, HW)
    else:
        # Lane-roll fallback for large feature maps, batched over 2*Bt sublanes.
        # Tap weight x (max/mean row select) x boundary mask folded into one
        # precomputed weight map per tap (computed once per grid step).
        lane = jax.lax.broadcasted_iota(jnp.int32, (1, HW), 1)
        col = lane % W
        row = lane // W
        is_max_row = jax.lax.broadcasted_iota(jnp.int32, (2 * Bt, 1), 0) < Bt
        packed = jnp.concatenate([ch_max, ch_mean], axis=0)         # (2*Bt, HW)

        # Four independent accumulators break the 49-tap add dependency chain.
        accs = [jnp.zeros((2 * Bt, HW), jnp.float32) for _ in range(4)]
        t = 0
        for dy in range(KS):
            oy = dy - pad
            for dx in range(KS):
                ox = dx - pad
                shift = (-(oy * W + ox)) % HW
                valid = jnp.logical_and(
                    jnp.logical_and(row + oy >= 0, row + oy < H),
                    jnp.logical_and(col + ox >= 0, col + ox < W))    # (1, HW)
                w_row = jnp.where(is_max_row, conv_ref[t], conv_ref[n_taps + t])
                wmap = jnp.where(valid, w_row, 0.0)                   # (2*Bt, HW)
                shifted = pltpu.roll(packed, shift, axis=1) if shift else packed
                accs[t % 4] = accs[t % 4] + shifted * wmap
                t += 1
        acc = (accs[0] + accs[1]) + (accs[2] + accs[3])               # (2*Bt, HW)
        conv = acc[:Bt] + acc[Bt:]                                    # (Bt, HW)

    scale_s = jax.nn.sigmoid(conv + bns_ref[0])                       # (Bt, HW)

    # Reuse the cam tensor for the store (saves a full-block multiply + re-read).
    o_ref[...] = cam * scale_s[:, None, :]


def _build_toeplitz(conv_w_scaled, H, W, KS):
    """Masked block-Toeplitz matrix T (2*HW, HW) so that conv2d(packed) ==
    packed_flat @ T, with packed_flat (.., 2*HW) = [max-plane, mean-plane]
    flattened row-major and zero padding baked in."""
    HW = H * W
    pad = (KS - 1) // 2
    r = np.arange(H)[:, None, None, None]
    c = np.arange(W)[None, :, None, None]
    dy = np.arange(KS)[None, None, :, None]
    dx = np.arange(KS)[None, None, None, :]
    rr = r + dy - pad
    cc = c + dx - pad
    valid = ((rr >= 0) & (rr < H) & (cc >= 0) & (cc < W)).reshape(-1)
    q = (np.clip(rr, 0, H - 1) * W + np.clip(cc, 0, W - 1)).reshape(-1)   # src lane
    p = np.broadcast_to(r * W + c, (H, W, KS, KS)).reshape(-1)            # dst lane
    tap = np.broadcast_to(dy * KS + dx, (H, W, KS, KS)).reshape(-1)       # tap index

    valid_f = jnp.asarray(valid, jnp.float32)
    T = jnp.zeros((2 * HW, HW), jnp.float32)
    for ch in range(2):                       # ch 0 = channel-max, ch 1 = channel-mean
        w_flat = conv_w_scaled[0, ch].reshape(-1)                         # (KS*KS,)
        vals = w_flat[tap] * valid_f
        T = T.at[ch * HW + q, p].add(vals)
    return T


def _pick_batch_tile(B, per_image_bytes, target_bytes=2 << 20):
    """Largest divisor of B with (a) input block <= ~target_bytes, (b) >= 2 grid
    steps when B >= 2 (feed both v7x TensorCores), preferring multiples of 4 so
    2*Bt fills the 8 vreg sublanes in the conv."""
    bt = max(1, min(B, target_bytes // max(per_image_bytes, 1)))
    if B >= 2:
        bt = max(1, min(bt, B // 2))
    divisors = [d for d in range(bt, 0, -1) if B % d == 0]
    for d in divisors:
        if d % 4 == 0:
            return d
    return divisors[0]


def cbam_pallas(x, params, kernel_size=7, force_roll_conv=False):
    """CBAM forward (eval mode). x: (B, C, H, W) float32."""
    B, C, H, W = x.shape
    HW = H * W
    hidden = params["w1"].shape[0]
    eps = 0.001

    # Fold BatchNorm running stats + affine into the conv weights and a shift:
    # sigmoid(BN(conv(z))) = sigmoid(conv_scaled(z) + bn_shift).
    bn_scale = params["gamma"] / jnp.sqrt(params["rv"] + eps)                    # (1,)
    bn_shift = (params["beta"] - params["rm"] * bn_scale).astype(jnp.float32)    # (1,)
    conv_w_scaled = (params["conv_w"] * bn_scale).astype(jnp.float32)            # (1,2,ks,ks)

    # MLP weights pre-transposed so the kernel does (2*Bt, C) @ (C, hid) @ (hid, C).
    w1t = params["w1"].astype(jnp.float32).T                                     # (C, hidden)
    b1 = params["b1"].reshape(1, hidden).astype(jnp.float32)                     # (1, hidden)
    w2t = params["w2"].astype(jnp.float32).T                                     # (hidden, C)
    b2 = params["b2"].reshape(1, C).astype(jnp.float32)                          # (1, C)

    # Lane-dense layout: spatial goes on the 128-wide lane axis.
    x_flat = x.reshape(B, C, HW).astype(jnp.float32)

    per_image_bytes = C * HW * 4
    bt = _pick_batch_tile(B, per_image_bytes)
    grid = (B // bt,)

    # Use the MXU block-Toeplitz conv whenever the resident T matrix is small
    # (T is O(HW^2)); fall back to the lane-roll conv for large feature maps.
    use_matmul_conv = (not force_roll_conv) and (2 * HW * HW * 4 <= (4 << 20))

    if use_matmul_conv:
        conv_operand = _build_toeplitz(conv_w_scaled, H, W, kernel_size)          # (2*HW, HW)
        conv_spec = pl.BlockSpec((2 * HW, HW), lambda i: (0, 0))                  # resident
    else:
        conv_operand = conv_w_scaled.reshape(-1)                                  # (2*ks*ks,)
        conv_spec = pl.BlockSpec(memory_space=pltpu.MemorySpace.SMEM)             # tap scalars

    kernel = functools.partial(_cbam_kernel, bt, H, W, kernel_size, use_matmul_conv)

    grid_spec = pltpu.PrefetchScalarGridSpec(
        num_scalar_prefetch=0,
        grid=grid,
        in_specs=[
            pl.BlockSpec((bt, C, HW), lambda i: (i, 0, 0)),           # x (flattened)
            pl.BlockSpec((C, hidden), lambda i: (0, 0)),              # W1^T
            pl.BlockSpec((1, hidden), lambda i: (0, 0)),              # b1
            pl.BlockSpec((hidden, C), lambda i: (0, 0)),              # W2^T
            pl.BlockSpec((1, C), lambda i: (0, 0)),                   # b2
            conv_spec,                                                # Toeplitz T or taps
            pl.BlockSpec(memory_space=pltpu.MemorySpace.SMEM),        # BN shift
        ],
        out_specs=pl.BlockSpec((bt, C, HW), lambda i: (i, 0, 0)),
    )

    out_flat = pl.pallas_call(
        kernel,
        out_shape=jax.ShapeDtypeStruct((B, C, HW), jnp.float32),
        grid_spec=grid_spec,
        compiler_params=pltpu.CompilerParams(
            dimension_semantics=("parallel",),
            vmem_limit_bytes=32 * 1024 * 1024),
    )(x_flat, w1t, b1, w2t, b2, conv_operand, bn_shift)

    return out_flat.reshape(B, C, H, W)


def cbam_ref(x, p, kernel_size=7):
    """Pure-JAX reference of the PyTorch forward (eval mode)."""
    prec = jax.lax.Precision.HIGHEST
    avg = x.mean(axis=(2, 3))                                # (B, C)
    mx = x.max(axis=(2, 3))                                  # (B, C)

    def mlp(v):
        h = jnp.maximum(jnp.dot(v, p["w1"].T, precision=prec) + p["b1"], 0.0)
        return jnp.maximum(jnp.dot(h, p["w2"].T, precision=prec) + p["b2"], 0.0)

    scale = jax.nn.sigmoid(mlp(avg) + mlp(mx))[:, :, None, None]
    cam = x * scale

    ch = jnp.concatenate([cam.max(axis=1, keepdims=True),
                          cam.mean(axis=1, keepdims=True)], axis=1)      # (B, 2, H, W)
    pad = (kernel_size - 1) // 2
    conv = jax.lax.conv_general_dilated(
        ch, p["conv_w"], window_strides=(1, 1),
        padding=[(pad, pad), (pad, pad)],
        dimension_numbers=("NCHW", "OIHW", "NCHW"),
        precision=prec)                                                  # (B, 1, H, W)
    bn_scale = p["gamma"] / jnp.sqrt(p["rv"] + 0.001)
    bn_shift = p["beta"] - p["rm"] * bn_scale
    s = jax.nn.sigmoid(conv * bn_scale + bn_shift)
    return cam * s


if __name__ == "__main__":
    B, C, H, W = 4, 32, 16, 16
    reduction_ratio = 16
    hidden = C // reduction_ratio
    ks = 7

    key = jax.random.PRNGKey(0)
    k = jax.random.split(key, 6)
    x = jax.random.normal(k[0], (B, C, H, W), jnp.float32)

    params = dict(
        # CAM MLP: Linear(C -> C//r), Linear(C//r -> C)  (torch weight layout: (out, in))
        w1=jax.random.normal(k[1], (hidden, C), jnp.float32) * 0.2,
        b1=jax.random.normal(k[2], (hidden,), jnp.float32) * 0.1,
        w2=jax.random.normal(k[3], (C, hidden), jnp.float32) * 0.2,
        b2=jax.random.normal(k[4], (C,), jnp.float32) * 0.1,
        # SAM: Conv2d(2, 1, 7, padding=3, bias=False) weight (OIHW)
        conv_w=jax.random.normal(k[5], (1, 2, ks, ks), jnp.float32) * 0.1,
        # BatchNorm2d(1) freshly initialized (eval mode)
        gamma=jnp.ones((1,), jnp.float32),
        beta=jnp.zeros((1,), jnp.float32),
        rm=jnp.zeros((1,), jnp.float32),
        rv=jnp.ones((1,), jnp.float32),
    )

    ref = cbam_ref(x, params, kernel_size=ks)

    # Default path: MXU block-Toeplitz conv (small feature map).
    out = jax.block_until_ready(cbam_pallas(x, params, kernel_size=ks))
    err = float(jnp.max(jnp.abs(out - ref)))
    if err > 3e-4:
        raise AssertionError(f"Pallas CBAM (matmul conv) mismatch vs reference: {err}")

    # Fallback path used for large feature maps (lane-roll conv) — validate too.
    out_roll = jax.block_until_ready(
        cbam_pallas(x, params, kernel_size=ks, force_roll_conv=True))
    err_roll = float(jnp.max(jnp.abs(out_roll - ref)))
    if err_roll > 3e-4:
        raise AssertionError(f"Pallas CBAM (roll conv) mismatch vs reference: {err_roll}")

    print("KERNEL_OK")
</pallas_src>

<mosaic_0001>
module attributes {stable_mosaic.version = 11 : i64} {
  func.func @_cbam_kernel(%arg0: i32, %arg1: memref<2x32x256xf32, #tpu.memory_space<vmem>>, %arg2: memref<32x2xf32, #tpu.memory_space<vmem>>, %arg3: memref<1x2xf32, #tpu.memory_space<vmem>>, %arg4: memref<2x32xf32, #tpu.memory_space<vmem>>, %arg5: memref<1x32xf32, #tpu.memory_space<vmem>>, %arg6: memref<512x256xf32, #tpu.memory_space<vmem>>, %arg7: memref<1xf32, #tpu.memory_space<smem>>, %arg8: memref<2x32x256xf32, #tpu.memory_space<vmem>>) attributes {dimension_semantics = [#tpu.dimension_semantics<parallel>], iteration_bounds = array<i64: 2>, scalar_prefetch = 0 : i64, scratch_operands = 0 : i64, tpu.core_type = #tpu.core_type<tc>, window_params = [{transform_indices = @transform_0, window_bounds = array<i64: 2, 32, 256>}, {pipeline_mode = #tpu.pipeline_mode<synchronous>, transform_indices = @transform_1, window_bounds = array<i64: 32, 2>}, {pipeline_mode = #tpu.pipeline_mode<synchronous>, transform_indices = @transform_2, window_bounds = array<i64: 1, 2>}, {pipeline_mode = #tpu.pipeline_mode<synchronous>, transform_indices = @transform_3, window_bounds = array<i64: 2, 32>}, {pipeline_mode = #tpu.pipeline_mode<synchronous>, transform_indices = @transform_4, window_bounds = array<i64: 1, 32>}, {pipeline_mode = #tpu.pipeline_mode<synchronous>, transform_indices = @transform_5, window_bounds = array<i64: 512, 256>}, {transform_indices = @transform_6, window_bounds = array<i64: 1>}, {transform_indices = @transform_7, window_bounds = array<i64: 2, 32, 256>}]} {
    %c0 = arith.constant 0 : index
    %c0_0 = arith.constant 0 : index
    %c0_1 = arith.constant 0 : index
    %0 = vector.load %arg1[%c0, %c0_0, %c0_1] : memref<2x32x256xf32, #tpu.memory_space<vmem>>, vector<2x32x256xf32>
    %cst = arith.constant dense<0.000000e+00> : vector<2x32xf32>
    %1 = vector.multi_reduction <add>, %0, %cst [2] : vector<2x32x256xf32> to vector<2x32xf32>
    %cst_2 = arith.constant 3.906250e-03 : f32
    %2 = vector.broadcast %cst_2 : f32 to vector<2x32xf32>
    %3 = arith.mulf %1, %2 : vector<2x32xf32>
    %cst_3 = arith.constant dense<0xFF800000> : vector<2x32xf32>
    %4 = vector.multi_reduction <maximumf>, %0, %cst_3 [2] : vector<2x32x256xf32> to vector<2x32xf32>
    %5 = tpu.concatenate %3, %4 in 0 : vector<2x32xf32>, vector<2x32xf32> -> vector<4x32xf32>
    %c0_4 = arith.constant 0 : index
    %c0_5 = arith.constant 0 : index
    %6 = vector.load %arg2[%c0_4, %c0_5] : memref<32x2xf32, #tpu.memory_space<vmem>>, vector<32x2xf32>
    %cst_6 = arith.constant dense<0.000000e+00> : vector<4x2xf32>
    %7 = tpu.matmul %5, %6, %cst_6 {dimension_numbers = #tpu.dot_dimension_numbers<[1], [0], [0], [1], [0, 0, 1, 1], [], []>, precision = #tpu.contract_precision<fp32>} : vector<4x32xf32>, vector<32x2xf32>, vector<4x2xf32> -> vector<4x2xf32>
    %c0_7 = arith.constant 0 : index
    %c0_8 = arith.constant 0 : index
    %8 = vector.load %arg3[%c0_7, %c0_8] : memref<1x2xf32, #tpu.memory_space<vmem>>, vector<1x2xf32>
    %9 = vector.broadcast %8 : vector<1x2xf32> to vector<4x2xf32>
    %10 = arith.addf %7, %9 : vector<4x2xf32>
    %cst_9 = arith.constant 0.000000e+00 : f32
    %11 = vector.broadcast %cst_9 : f32 to vector<4x2xf32>
    %12 = arith.maximumf %10, %11 : vector<4x2xf32>
    %c0_10 = arith.constant 0 : index
    %c0_11 = arith.constant 0 : index
    %13 = vector.load %arg4[%c0_10, %c0_11] : memref<2x32xf32, #tpu.memory_space<vmem>>, vector<2x32xf32>
    %cst_12 = arith.constant dense<0.000000e+00> : vector<4x32xf32>
    %14 = tpu.matmul %12, %13, %cst_12 {dimension_numbers = #tpu.dot_dimension_numbers<[1], [0], [0], [1], [0, 0, 1, 1], [], []>, precision = #tpu.contract_precision<fp32>} : vector<4x2xf32>, vector<2x32xf32>, vector<4x32xf32> -> vector<4x32xf32>
    %c0_13 = arith.constant 0 : index
    %c0_14 = arith.constant 0 : index
    %15 = vector.load %arg5[%c0_13, %c0_14] : memref<1x32xf32, #tpu.memory_space<vmem>>, vector<1x32xf32>
    %16 = vector.broadcast %15 : vector<1x32xf32> to vector<4x32xf32>
    %17 = arith.addf %14, %16 : vector<4x32xf32>
    %cst_15 = arith.constant 0.000000e+00 : f32
    %18 = vector.broadcast %cst_15 : f32 to vector<4x32xf32>
    %19 = arith.maximumf %17, %18 : vector<4x32xf32>
    %20 = vector.extract_strided_slice %19 {offsets = [0, 0], sizes = [2, 32], strides = [1, 1]} : vector<4x32xf32> to vector<2x32xf32>
    %21 = vector.extract_strided_slice %19 {offsets = [2, 0], sizes = [2, 32], strides = [1, 1]} : vector<4x32xf32> to vector<2x32xf32>
    %22 = arith.addf %20, %21 : vector<2x32xf32>
    %23 = arith.negf %22 : vector<2x32xf32>
    %24 = math.exp %23 : vector<2x32xf32>
    %cst_16 = arith.constant 1.000000e+00 : f32
    %25 = vector.broadcast %cst_16 : f32 to vector<2x32xf32>
    %26 = arith.addf %25, %24 : vector<2x32xf32>
    %27 = arith.divf %25, %26 : vector<2x32xf32>
    %28 = vector.shape_cast %27 : vector<2x32xf32> to vector<2x32x1xf32>
    %29 = vector.broadcast %28 : vector<2x32x1xf32> to vector<2x32x256xf32>
    %30 = arith.mulf %0, %29 : vector<2x32x256xf32>
    %cst_17 = arith.constant dense<0xFF800000> : vector<2x256xf32>
    %31 = vector.multi_reduction <maximumf>, %30, %cst_17 [1] : vector<2x32x256xf32> to vector<2x256xf32>
    %cst_18 = arith.constant dense<0.000000e+00> : vector<2x256xf32>
    %32 = vector.multi_reduction <add>, %30, %cst_18 [1] : vector<2x32x256xf32> to vector<2x256xf32>
    %cst_19 = arith.constant 3.125000e-02 : f32
    %33 = vector.broadcast %cst_19 : f32 to vector<2x256xf32>
    %34 = arith.mulf %32, %33 : vector<2x256xf32>
    %35 = tpu.concatenate %31, %34 in 1 : vector<2x256xf32>, vector<2x256xf32> -> vector<2x512xf32>
    %c0_20 = arith.constant 0 : index
    %c0_21 = arith.constant 0 : index
    %36 = vector.load %arg6[%c0_20, %c0_21] : memref<512x256xf32, #tpu.memory_space<vmem>>, vector<512x256xf32>
    %cst_22 = arith.constant dense<0.000000e+00> : vector<2x256xf32>
    %37 = tpu.matmul %35, %36, %cst_22 {dimension_numbers = #tpu.dot_dimension_numbers<[1], [0], [0], [1], [0, 0, 1, 1], [], []>, precision = #tpu.contract_precision<fp32>} : vector<2x512xf32>, vector<512x256xf32>, vector<2x256xf32> -> vector<2x256xf32>
    %c0_23 = arith.constant 0 : index
    %38 = memref.load %arg7[%c0_23] : memref<1xf32, #tpu.memory_space<smem>>
    %39 = vector.broadcast %38 : f32 to vector<2x256xf32>
    %40 = arith.addf %37, %39 : vector<2x256xf32>
    %41 = arith.negf %40 : vector<2x256xf32>
    %42 = math.exp %41 : vector<2x256xf32>
    %cst_24 = arith.constant 1.000000e+00 : f32
    %43 = vector.broadcast %cst_24 : f32 to vector<2x256xf32>
    %44 = arith.addf %43, %42 : vector<2x256xf32>
    %45 = arith.divf %43, %44 : vector<2x256xf32>
    %46 = vector.shape_cast %45 : vector<2x256xf32> to vector<2x1x256xf32>
    %47 = vector.broadcast %46 : vector<2x1x256xf32> to vector<2x32x256xf32>
    %48 = arith.mulf %30, %47 : vector<2x32x256xf32>
    %c0_25 = arith.constant 0 : index
    %c0_26 = arith.constant 0 : index
    %c0_27 = arith.constant 0 : index
    %49 = vector.load %arg8[%c0_25, %c0_26, %c0_27] : memref<2x32x256xf32, #tpu.memory_space<vmem>>, vector<2x32x256xf32>
    tpu.vector_store %arg8[%c0_25, %c0_26, %c0_27], %48 {strides = array<i32>} : memref<2x32x256xf32, #tpu.memory_space<vmem>>, vector<2x32x256xf32>,
    return
  }
  func.func @transform_0(%arg0: i32) -> (i32, i32, i32) {
    %c0_i32 = arith.constant 0 : i32
    %c0_i32_0 = arith.constant 0 : i32
    %c0_i32_1 = arith.constant 0 : i32
    return %arg0, %c0_i32, %c0_i32_0 : i32, i32, i32
  }
  func.func @transform_1(%arg0: i32) -> (i32, i32) {
    %c0_i32 = arith.constant 0 : i32
    %c0_i32_0 = arith.constant 0 : i32
    %c0_i32_1 = arith.constant 0 : i32
    return %c0_i32, %c0_i32_0 : i32, i32
  }
  func.func @transform_2(%arg0: i32) -> (i32, i32) {
    %c0_i32 = arith.constant 0 : i32
    %c0_i32_0 = arith.constant 0 : i32
    %c0_i32_1 = arith.constant 0 : i32
    return %c0_i32, %c0_i32_0 : i32, i32
  }
  func.func @transform_3(%arg0: i32) -> (i32, i32) {
    %c0_i32 = arith.constant 0 : i32
    %c0_i32_0 = arith.constant 0 : i32
    %c0_i32_1 = arith.constant 0 : i32
    return %c0_i32, %c0_i32_0 : i32, i32
  }
  func.func @transform_4(%arg0: i32) -> (i32, i32) {
    %c0_i32 = arith.constant 0 : i32
    %c0_i32_0 = arith.constant 0 : i32
    %c0_i32_1 = arith.constant 0 : i32
    return %c0_i32, %c0_i32_0 : i32, i32
  }
  func.func @transform_5(%arg0: i32) -> (i32, i32) {
    %c0_i32 = arith.constant 0 : i32
    %c0_i32_0 = arith.constant 0 : i32
    %c0_i32_1 = arith.constant 0 : i32
    return %c0_i32, %c0_i32_0 : i32, i32
  }
  func.func @transform_6(%arg0: i32) -> i32 {
    %c0_i32 = arith.constant 0 : i32
    %c0_i32_0 = arith.constant 0 : i32
    return %c0_i32 : i32
  }
  func.func @transform_7(%arg0: i32) -> (i32, i32, i32) {
    %c0_i32 = arith.constant 0 : i32
    %c0_i32_0 = arith.constant 0 : i32
    %c0_i32_1 = arith.constant 0 : i32
    return %arg0, %c0_i32, %c0_i32_0 : i32, i32, i32
  }
}

</mosaic_0001>

<bundles_post_ra>
// kernel: tpu_custom_call.1
= control target key start
LH: loop header
LB: loop body
LE: loop exit
PB: predicated region body
PF: predicated region fallthrough
CT: control target
= control target key end

     0   :  { %s6695_s0 = inlined_call_operand.hbm [shape: f32[4,32,256], index: 0, kind: input, shape index: {}]   ;;  %s6696_s1 = inlined_call_operand.vmem [shape: f32[32,2], index: 1, kind: input, shape index: {}]   ;;  %s6697_s2 = inlined_call_operand.vmem [shape: f32[1,2], index: 2, kind: input, shape index: {}]   ;;  %s6698_s3 = inlined_call_operand.vmem [shape: f32[2,32], index: 3, kind: input, shape index: {}]   ;;  %s6699_s4 = inlined_call_operand.vmem [shape: f32[1,32], index: 4, kind: input, shape index: {}]   ;;  %s6700_s5 = inlined_call_operand.hbm [shape: f32[512,256], index: 5, kind: input, shape index: {}]   ;;  %s6701_s6 = inlined_call_operand.<no memory space> [shape: f32[1], index: 6, kind: input, shape index: {}]   ;;  %s6702_s7 = inlined_call_operand.hbm [shape: f32[4,32,256], index: 7, kind: output, shape index: {}]  }
   0x1   :  { %12 = sst [smem:[#allocation2]] %s6701_s6 }
   0x2   :  { %13 = vsyncpa [#allocation4], 0 }
   0x3   :  { %15 = vsyncpa [#allocation4 + $0x1], 0 }
   0x4   :  { %16 = vsyncpa [#allocation7], 0 }
   0x5   :  { %17 = vsyncpa [#allocation5], 0 }
   0x6   :  { %19 = vsyncpa [#allocation5 + $0x1], 0  ;;  %s4337_s26 = smov 0   ;;  %s4339_s27 = smov 0  }
   0x7   :  { %s4341_s28 = smov 0   ;;  %s4343_s29 = smov 0  }
   0x8 LB: > { %s4358_s6 = sadd.s32 4294967295, %s4287_s29   ;;  %s4033_s30 = sadd.s32 4294967294, %s4287_s29   ;;  %s4287_s29 = sphi %s4343_s29, %s7058_s29   ;;  %s4283_s28 = sphi %s4341_s28, %s7057_s28   ;;  %s4279_s27 = sphi %s4339_s27, %s7056_s27   ;;  %s4275_s26 = sphi %s4337_s26, %s7055_s26  }
   0x9   : > { %p45_p0 = scmp.ne.s32.totalorder %s4279_s27, %s4275_s26  ;;  %p46_p1 = scmp.eq.s32.totalorder %s4358_s6, 0 }
   0xa   : > { %p195_p2 = scmp.eq.s32.totalorder %s4358_s6, 1  ;;  %p201_p3 = scmp.eq.s32.totalorder %s4033_s30, 1 }
   0xb   : > { %p4367_p4 = por %p46_p1, %p45_p0  ;;  %p4034_p5 = scmp.ge.s32.totalorder %s4287_s29, 1 }
   0xc   : > { %p4372_p6 = por %p201_p3, %p45_p0  ;;  %p208_p7 = scmp.lt.s32.totalorder %s4287_s29, 3 }
   0xd   : > { %s231_s12 = sshll.u32 %s6700_s5, 4  ;;  %s4289_s14 = smov [#allocation6]   ;;  %s232_s12 = int_to_ptr.hbm [resolvable:$true] %s231_s12 }
   0xe   : > { %p4380_p8 = pnand %p4034_p5, %p208_p7  ;;  %s233_s15 = sshll.u32 %s4289_s14, 4  ;;  %s234_s15 = int_to_ptr.vmem [resolvable:$true] %s233_s15 }
   0xf   : > { %s4390_s16 = sadd.s32 1, %s4287_s29   ;;  %s6703_s17 = smov 256  }
  0x10   : > { %p4066_p9 = pneg %p4380_p8  ;;  %s6704_s18 = smov 16  }
  0x11   : > { %s29_s19 = ssub.s32 %s4287_s29, %s4390_s16  ;;  %s32_s20 = sadd.s32 1, %s4283_s28 }
  0x12   : > { %p4067_p10 = pnand %p4066_p9, %p46_p1  ;;  %p30_p12 = scmp.eq.s32.totalorder %s29_s19, 0 }
  0x13   : > { %p39_p13 = scmp.ne.s32.totalorder %s4283_s28, %s4279_s27  ;;  %p40_p0 = scmp.eq.s32.totalorder %s4287_s29, 0 }
  0x14   : > { %4069 = dma.hbm_to_vmem [thread:$0]  (!%p4067_p10), %s232_s12, 16384, %s234_s15, [#allocation7], %s6703_s17, %s6703_s17, %s6704_s18  }
  0x15   : > { %s4402_s21 = scalar_select %p30_p12, %s4283_s28, %s32_s20  }
  0x16   : > { %p4406_p3 = por %p195_p2, %p39_p13  ;;  %p4079_p5 = scmp.lt.s32.totalorder %s4287_s29, 2 }
  0x17   : > { %s250_s23 = sand.u32 1, %s4283_s28   ;;  %s4055_s24 = sshll.u32 %s4287_s29, 7 }
  0x18   : > { %p41_p7 = por %p40_p0, %p39_p13  ;;  %s4037_s25 = sshll.u32 %s250_s23, 7 }
  0x19   : > { %s260_s11 = scalar_lea.hbm %s6695_s0, %s4055_s24  ;;  %s254_s14 = scalar_lea.vmem [#allocation3], %s4037_s25 }
  0x1a   : > { %s261_s12 = sshll.u32 %s260_s11, 4  ;;  %s263_s15 = sshll.u32 %s254_s14, 4  ;;  %s262_s12 = int_to_ptr.hbm [resolvable:$true] %s261_s12  ;;  %s264_s15 = int_to_ptr.vmem [resolvable:$true] %s263_s15 }
  0x1b   : > { %p4416_p9 = pnand %p4079_p5, %p41_p7  ;;  %s251_s20 = scalar_lea.sflag [#allocation4], %s250_s23 }
  0x1c   : > { %s4187_s17 = sshra.s32 %s262_s12, 4  ;;  %s4194_s25 = scalar_lea.hbm %s6695_s0, 256  ;;  %s4188_s17 = int_to_ptr.hbm [resolvable:$true] %s4187_s17 }
  0x1d   : > { %s4189_s18 = scalar_lea.hbm %s4188_s17, 128  ;;  %p4191_p10 = pneg %p4416_p9 }
  0x1e   : > { %p4190_p2 = scmp.ne.s32.totalorder %s4188_s17, %s4189_s18  ;;  %p4195_p0 = scmp.lt.s32.totalorder %s4188_s17, %s6695_s0 }
  0x1f   : > { %p4196_p5 = scmp.lt.s32.totalorder %s4194_s25, %s4189_s18 }
  0x20   : > { %p4192_p12 = pnand %p4191_p10, %p4190_p2 }
  0x21   : > { %p4197_p7 = por %p4196_p5, %p4195_p0 }
  0x22   : > { %p4193_p13 = pneg %p4192_p12 }
  0x24   : > { %p4198_p11 = pnand %p4197_p7, %p4193_p13 }
  0x26   : > { %4201 = shalt.err (!%p4198_p11)
}
  0x27   : > { %s6840_s23 = smov 16   ;;  %s6841_s14 = smov 256  }
  0x28   : > { %4073 = dma.hbm_to_vmem [thread:$0]  (!%p4416_p9), %s262_s12, 2048, %s264_s15, %s251_s20, %s6841_s14, %s6841_s14, %s6840_s23  }
  0x29   : > { %275 = sbr.rel (%p4380_p8) target bundleno = 1263 (0x4ef), region = 48 }
  0x2e   : > { %s4436_s24 = sand.u32 1, %s4279_s27  }
  0x2f   : > { %s4042_s17 = sshll.u32 %s4436_s24, 7  ;;  %s278_s18 = scalar_lea.sflag [#allocation4], %s4436_s24 }
  0x30   : > { %s4442_s30 = scalar_lea.vmem [#allocation3], %s4042_s17 }
  0x31   : > { %4262 = dma.done.wait (%p4367_p4), %s278_s18, 2048  }
  0x32   : > { %4264 = vsyncadd (%p4367_p4), %s278_s18, 4294965248 }
  0x33   : > { %4266 = dma.done.wait (%p46_p1), [#allocation7], 16384  }
  0x34   : > { %4268 = vsyncadd (%p46_p1), [#allocation7], 4294950912  ;;  %v328_v0 = vld [vmem:[%s4442_s30 + $0x40] sm:$0xff]  ;;  %v329_v1 = vld [vmem:[%s4442_s30 + $0x48] sm:$0xff]  ;;  %vm405_vm0 = vcmask 130112   ;;  %vm409_vm1 = vcmask 195712  }
  0x35   : > { %v320_v2 = vld [vmem:[%s4442_s30] sm:$0xff]  ;;  %v348_v3 = vadd.f32 %v329_v1, %v328_v0  ;;  %v321_v4 = vld [vmem:[%s4442_s30 + $0x8] sm:$0xff]  ;;  %v330_v9 = vld [vmem:[%s4442_s30 + $0x50] sm:$0xff]  ;;  %v380_v25 = vmax.f32 %v328_v0, %v329_v1  ;;  %v400_v1 = vlaneseq  ;;  %vm413_vm2 = vcmask 261312   ;;  %s6632_s12 = scalar_lea.vmem [#allocation8], %s4042_s17  ;;  %s4057_s17 = sshll.u32 %s4358_s6, 7 }
  0x36   : > { %v324_v5 = vld [vmem:[%s4442_s30 + $0x20] sm:$0xff]  ;;  %v325_v6 = vld [vmem:[%s4442_s30 + $0x28] sm:$0xff]  ;;  %v336_v7 = vadd.f32 %v321_v4, %v320_v2  ;;  %v331_v10 = vld [vmem:[%s4442_s30 + $0x58] sm:$0xff]  ;;  %v368_v24 = vmax.f32 %v320_v2, %v321_v4  ;;  %vm422_vm3 = vcmask 1041409   ;;  %vm447_vm4 = vcmask 1043459   ;;  %s3946_s20 = scalar_lea.hbm %s6702_s7, %s4057_s17  ;;  %s3947_s6 = sshll.u32 %s6632_s12, 4  ;;  %s3948_s6 = int_to_ptr.vmem [resolvable:$true] %s3947_s6 }
  0x37   : > { %v342_v8 = vadd.f32 %v325_v6, %v324_v5  ;;  %349 = vadd.xlane.f32.xlu1 %v348_v3  ;;  %v322_v11 = vld [vmem:[%s4442_s30 + $0x10] sm:$0xff]  ;;  %v323_v12 = vld [vmem:[%s4442_s30 + $0x18] sm:$0xff]  ;;  %v332_v13 = vld [vmem:[%s4442_s30 + $0x60] sm:$0xff]  ;;  %v351_v15 = vadd.f32 %v331_v10, %v330_v9  ;;  %v383_v27 = vmax.f32 %v330_v9, %v331_v10  ;;  %v374_v29 = vmax.f32 %v324_v5, %v325_v6  ;;  %s3949_s25 = sshll.u32 %s3946_s20, 4  ;;  %s3934_s10 = scalar_lea.sflag [#allocation5], %s4436_s24  ;;  %s3950_s25 = int_to_ptr.hbm [resolvable:$true] %s3949_s25 }
  0x38   : > { %337 = vadd.xlane.f32.xlu0 %v336_v7  ;;  %v333_v14 = vld [vmem:[%s4442_s30 + $0x68] sm:$0xff]  ;;  %v339_v16 = vadd.f32 %v323_v12, %v322_v11  ;;  %v334_v18 = vld [vmem:[%s4442_s30 + $0x70] sm:$0xff]  ;;  %v335_v19 = vld [vmem:[%s4442_s30 + $0x78] sm:$0xff]  ;;  %v371_v26 = vmax.f32 %v322_v11, %v323_v12  ;;  %v401_v5 = vand.u32 127, %v400_v1  ;;  %vm450_vm5 = vcmask 1041408   ;;  %s4231_s11 = sshra.s32 %s3950_s25, 4  ;;  %s4232_s11 = int_to_ptr.hbm [resolvable:$true] %s4231_s11 }
  0x39   : > { %343 = vadd.xlane.f32.xlu2 %v342_v8  ;;  %v354_v17 = vadd.f32 %v333_v14, %v332_v13  ;;  %v326_v20 = vld [vmem:[%s4442_s30 + $0x30] sm:$0xff]  ;;  %v327_v21 = vld [vmem:[%s4442_s30 + $0x38] sm:$0xff]  ;;  %v357_v22 = vadd.f32 %v335_v19, %v334_v18  ;;  %v386_v28 = vmax.f32 %v332_v13, %v333_v14  ;;  %v389_v31 = vmax.f32 %v334_v18, %v335_v19  ;;  %v453_v40 = vld [vmem:[%s6696_s1 + $0x8] sm:$0xff]  ;;  %s4233_s23 = scalar_lea.hbm %s4232_s11, 128  ;;  %s4237_s8 = scalar_lea.hbm %s6702_s7, 256 }
  0x3a   : > { %v345_v23 = vadd.f32 %v327_v21, %v326_v20  ;;  %v377_v30 = vmax.f32 %v326_v20, %v327_v21  ;;  %v455_v33 = vld [vmem:[%s6696_s1 + $0x18] sm:$0xff]  ;;  %v454_v37 = vld [vmem:[%s6696_s1 + $0x10] sm:$0xff]  ;;  %v480_v43 = vand.u32 4294901760, %v453_v40  ;;  %v452_v44 = vld [vmem:[%s6696_s1] sm:$0xff]  ;;  %v403_v7 = vadd.s32 4294967288, %v401_v5  ;;  %p4234_p1 = scmp.ne.s32.totalorder %s4232_s11, %s4233_s23  ;;  %p4238_p11 = scmp.lt.s32.totalorder %s4232_s11, %s6702_s7 }
  0x3b   : > { %v476_v36 = vand.u32 4294901760, %v455_v33  ;;  %v478_v39 = vand.u32 4294901760, %v454_v37  ;;  %v482_v48 = vand.u32 4294901760, %v452_v44  ;;  %v407_v11 = vadd.s32 4294967280, %v401_v5  ;;  %p4239_p9 = scmp.lt.s32.totalorder %s4237_s8, %s4233_s23 }
  0x3c   : > { %v518_v47 = vsub.f32 %v453_v40, %v480_v43  ;;  %vm460_vm6 = vcmask 261120   ;;  %vm655_vm7 = vcmask 15360   ;;  %p4235_p4 = pnand %p4234_p1, %p4406_p3 }
  0x3d   : > { %v506_v38 = vsub.f32 %v455_v33, %v476_v36  ;;  %577 = vmatpush.msra.mxu3 %v476_v36  ;;  %477 = vmatpush.msra.mxu0 %v476_v36  ;;  %v512_v42 = vsub.f32 %v454_v37, %v478_v39  ;;  %v524_v55 = vsub.f32 %v452_v44, %v482_v48  ;;  %p4240_p2 = por %p4239_p9, %p4238_p11 }
  0x3e   : > { %v519_v54 = vand.u32 4294901760, %v518_v47  ;;  %p4236_p8 = pneg %p4235_p4 }
  0x3f   : > { %352 = vadd.xlane.f32.xlu1 %v351_v15  ;;  %v507_v41 = vand.u32 4294901760, %v506_v38  ;;  %548 = vmatpush.msra.mxu2 %v506_v38  ;;  %v513_v46 = vand.u32 4294901760, %v512_v42  ;;  %v525_v58 = vand.u32 4294901760, %v524_v55  ;;  %v411_v15 = vadd.s32 4294967272, %v401_v5 }
  0x40   : > { %340 = vadd.xlane.f32.xlu0 %v339_v16  ;;  %579 = vmatpush.msra.mxu3 %v478_v39  ;;  %v520_v57 = vsub.f32 %v518_v47, %v519_v54  ;;  %p4241_p10 = pnand %p4240_p2, %p4236_p8 }
  0x41   : > { %355 = vadd.xlane.f32.xlu2 %v354_v17  ;;  %479 = vmatpush.msra.mxu0 %v478_v39  ;;  %v508_v45 = vsub.f32 %v506_v38, %v507_v41  ;;  %v514_v53 = vsub.f32 %v512_v42, %v513_v46  ;;  %v526_v60 = vsub.f32 %v524_v55, %v525_v58 }
  0x42   : > { %551 = vmatpush.msra.mxu2 %v512_v42  ;;  %581 = vmatpush.msra.mxu3 %v480_v43  ;;  %v521_v59 = vand.u32 4294901760, %v520_v57 }
  0x43   : > { %481 = vmatpush.msra.mxu0 %v480_v43  ;;  %v509_v52 = vand.u32 4294901760, %v508_v45  ;;  %v515_v56 = vand.u32 4294901760, %v514_v53  ;;  %v527_v62 = vand.u32 4294901760, %v526_v60 }
  0x44   : > { %554 = vmatpush.msra.mxu2 %v518_v47  ;;  %583 = vmatpush.msra.mxu3 %v482_v48 }
  0x45   : > { %483 = vmatpush.msra.mxu0 %v482_v48  ;;  %510 = vmatpush.msra.mxu1 %v509_v52 }
  0x46   : > { %557 = vmatpush.msra.mxu2 %v524_v55 }
  0x47   : > { %358 = vadd.xlane.f32.xlu1 %v357_v22  ;;  %606 = vmatpush.msrb.mxu0 %v507_v41 }
  0x48   : > { %346 = vadd.xlane.f32.xlu0 %v345_v23  ;;  %516 = vmatpush.msra.mxu1 %v515_v56 }
  0x49   : > { %369 = vmax.xlane.f32.xlu2 %v368_v24  ;;  %610 = vmatpush.msrb.mxu0 %v513_v46 }
  0x4a   : > { %522 = vmatpush.msra.mxu1 %v521_v59 }
  0x4b   : > { %614 = vmatpush.msrb.mxu0 %v519_v54 }
  0x4c   : > { %528 = vmatpush.msra.mxu1 %v527_v62 }
  0x4d   : > { %618 = vmatpush.msrb.mxu0 %v525_v58  ;;  %v650_v58 = vld [vmem:[%s6698_s3] sm:$0x3] }
  0x4e   : > { %637 = vmatpush.msrb.mxu1 %v476_v36  ;;  %v660_v59 = vsel %vm450_vm5, %v650_v58, 0  ;;  %v1018_v58 = vld [vmem:[#allocation6 + $0xe0] sm:$0xff] }
  0x4f   : > { %381 = vmax.xlane.f32.xlu1 %v380_v25  ;;  %v677_v60 = vand.u32 4294901760, %v660_v59 }
  0x50   : > { %372 = vmax.xlane.f32.xlu0 %v371_v26  ;;  %639 = vmatpush.msrb.mxu1 %v478_v39 }
  0x51   : > { %384 = vmax.xlane.f32.xlu2 %v383_v27  ;;  %678 = vmatpush.msrb.mxu2 %v677_v60 }
  0x52   : > { %641 = vmatpush.msrb.mxu1 %v480_v43 }
  0x54   : > { %643 = vmatpush.msrb.mxu1 %v482_v48 }
  0x57   : > { %387 = vmax.xlane.f32.xlu1 %v386_v28 }
  0x58   : > { %375 = vmax.xlane.f32.xlu0 %v374_v29 }
  0x59   : > { %378 = vmax.xlane.f32.xlu2 %v377_v30 }
  0x60   : > { %390 = vmax.xlane.f32.xlu0 %v389_v31 }
  0xaa   : > { %v350_v32 = vpop.xlane.xlu1 %349 }
  0xab   : > { %v4471_v34 = vpop.xlane.xlu0 %337  ;;  %v364_v6 = vmul.f32 0.00390625, %v350_v32 }
  0xac   : > { %v4473_v35 = vpop.xlane.xlu2 %343  ;;  %v360_v10 = vmul.f32 0.00390625, %v4471_v34 }
  0xad   : > { %v415_v12 = vperm.slane %v364_v6, %v401_v5  ;;  %v362_v13 = vmul.f32 0.00390625, %v4473_v35 }
  0xae   : > { %v402_v21 = vperm.slane %v360_v10, %v401_v5 }
  0xaf   : > { %v408_v27 = vperm.slane %v362_v13, %v407_v11 }
  0xb2   : > { %v353_v49 = vpop.xlane.xlu1 %352 }
  0xb3   : > { %v341_v50 = vpop.xlane.xlu0 %340  ;;  %v365_v8 = vmul.f32 0.00390625, %v353_v49 }
  0xb4   : > { %v356_v51 = vpop.xlane.xlu2 %355  ;;  %v361_v9 = vmul.f32 0.00390625, %v341_v50 }
  0xb5   : > { %v366_v14 = vmul.f32 0.00390625, %v356_v51  ;;  %v416_v17 = vperm.slane %v365_v8, %v403_v7 }
  0xb6   : > { %v404_v18 = vperm.slane %v361_v9, %v403_v7 }
  0xb7   : > { %v418_v28 = vperm.slane %v366_v14, %v407_v11  ;;  %v417_v31 = vsel %vm405_vm0, %v416_v17, %v415_v12 }
  0xb8   : > { %v406_v32 = vsel %vm405_vm0, %v404_v18, %v402_v21 }
  0xb9   : > { %v419_v39 = vsel %vm409_vm1, %v418_v28, %v417_v31  ;;  %v410_v40 = vsel %vm409_vm1, %v408_v27, %v406_v32 }
  0xba   : > { %v359_v61 = vpop.xlane.xlu1 %358 }
  0xbb   : > { %v347_v63 = vpop.xlane.xlu0 %346  ;;  %v367_v19 = vmul.f32 0.00390625, %v359_v61  ;;  %v704_v61 = vsub.f32 %v660_v59, %v677_v60 }
  0xbc   : > { %v370_v0 = vpop.xlane.xlu2 %369  ;;  %v363_v20 = vmul.f32 0.00390625, %v347_v63 }
  0xbd   : > { %v433_v22 = vperm.slane %v370_v0, %v401_v5  ;;  %v420_v33 = vperm.slane %v367_v19, %v411_v15  ;;  %v705_v62 = vand.u32 4294901760, %v704_v61 }
  0xbe   : > { %v412_v34 = vperm.slane %v363_v20, %v411_v15 }
  0xbf   : > { %v421_v43 = vsel %vm413_vm2, %v420_v33, %v419_v39  ;;  %v706_v63 = vsub.f32 %v704_v61, %v705_v62 }
  0xc0   : > { %v414_v44 = vsel %vm413_vm2, %v412_v34, %v410_v40 }
  0xc1   : > { %v423_v49 = vsel %vm422_vm3, %v421_v43, %v414_v44  ;;  %v707_v0 = vand.u32 4294901760, %v706_v63 }
  0xc2   : > { %v382_v3 = vpop.xlane.xlu1 %381 }
  0xc3   : > { %v373_v2 = vpop.xlane.xlu0 %372  ;;  %v440_v23 = vperm.slane %v382_v3, %v401_v5  ;;  %708 = vmatpush.msrb.mxu3 %v707_v0 }
  0xc4   : > { %v385_v4 = vpop.xlane.xlu2 %384  ;;  %v434_v24 = vperm.slane %v373_v2, %v403_v7  ;;  %v4127_v2 = vld [vmem:[%s6697_s2] ss:$0 sm:$0xff] }
  0xc5   : > { %v441_v25 = vperm.slane %v385_v4, %v403_v7 }
  0xc6   : > { %v435_v36 = vsel %vm405_vm0, %v434_v24, %v433_v22  ;;  %v4128_v22 = vld [vmem:[%s6699_s4] ss:$0 sm:$0xff] }
  0xc7   : > { %v442_v37 = vsel %vm405_vm0, %v441_v25, %v440_v23  ;;  %v834_v23 = vshrl.u32 %v400_v1, 7 }
  0xc9   : > { %4121 = vset.pattern.permute.xlu0 %v834_v23  ;;  %4119 = vset.pattern.permute.xlu1 %v834_v23 }
  0xca   : > { %v388_v26 = vpop.xlane.xlu1 %387 }
  0xcb   : > { %v376_v16 = vpop.xlane.xlu0 %375  ;;  %v443_v35 = vperm.slane %v388_v26, %v407_v11  ;;  %v841_v26 = vadd.s32 8, %v834_v23 }
  0xcc   : > { %v436_v29 = vperm.slane %v376_v16, %v407_v11  ;;  %v379_v30 = vpop.xlane.xlu2 %378 }
  0xcd   : > { %v438_v38 = vperm.slane %v379_v30, %v411_v15  ;;  %v444_v46 = vsel %vm409_vm1, %v443_v35, %v442_v37  ;;  %4120 = vset.pattern.permute.xlu2 %v841_v26 }
  0xce   : > { %v437_v41 = vsel %vm409_vm1, %v436_v29, %v435_v36 }
  0xcf   : > { %v439_v47 = vsel %vm413_vm2, %v438_v38, %v437_v41 }
  0xd3   : > { %v391_v42 = vpop.xlane.xlu0 %390 }
  0xd4   : > { %v445_v45 = vperm.slane %v391_v42, %v411_v15 }
  0xd6   : > { %v446_v48 = vsel %vm413_vm2, %v445_v45, %v444_v46 }
  0xd7   : > { %v448_v50 = vsel %vm447_vm4, %v446_v48, %v439_v47  ;;  %vm3889_vm4 = vcmask 1040384  }
  0xd8   : > { %v451_v51 = vsel %vm450_vm5, %v423_v49, %v448_v50 }
  0xd9   : > { %v462_v52 = vsel %vm460_vm6, %v451_v51, 0 }
  0xda   : > { %v484_v53 = vand.u32 4294901760, %v462_v52 }
  0xdc   : > { %530 = vmatmul.f32.vlgmr.msra.gmra.mxu1 %v484_v53  ;;  %v485_v54 = vsub.f32 %v462_v52, %v484_v53 }
  0xdd   : > { %754 = vmatpush.msra.mxu1 %v677_v60 }
  0xde   : > { %560 = vmatmul.f32.vlgmr.msra.gmra.mxu2 %v485_v54  ;;  %v486_v55 = vand.u32 4294901760, %v485_v54 }
  0xdf   : > { %780 = vmatpush.msra.mxu2 %v705_v62 }
  0xe0   : > { %587 = vmatmul.f32.vlgmr.msra.gmra.mxu3 %v486_v55  ;;  %v487_v56 = vsub.f32 %v485_v54, %v486_v55  ;;  %v847_v54 = vadd.s32 16, %v834_v23  ;;  %v853_v55 = vadd.s32 24, %v834_v23 }
  0xe1   : > { %802 = vmatpush.msra.mxu3 %v677_v60  ;;  %v4517_v60 = vand.u32 4294901760, %v1018_v58 }
  0xe2   : > { %v488_v57 = vand.u32 4294901760, %v487_v56  ;;  %v1020_v56 = vld [vmem:[#allocation6 + $0xf0] sm:$0xff] }
  0xe3   : > { %v4523_v63 = vsub.f32 %v1018_v58, %v4517_v60 }
  0xe4   : > { %489 = vmatmul.f32.vlgmr.msra.gmra.mxu0 %v488_v57  ;;  %645 = vmatmul.f32.vlgmr.msrb.gmra.mxu1 %v484_v53  ;;  %v4512_v57 = vand.u32 4294901760, %v1020_v56 }
  0xe5   : > { %731 = vmatpush.msra.mxu0 %v704_v61  ;;  %v1016_v61 = vld [vmem:[#allocation6 + $0xd0] sm:$0xff] }
  0xe6   : > { %v4515_v59 = vsub.f32 %v1020_v56, %v4512_v57  ;;  %v4526_v0 = vand.u32 4294901760, %v1016_v61 }
  0xe8   : > { %v1163_v62 = vand.u32 4294901760, %v4515_v59 }
  0xec   : > { %620 = vmatmul.f32.vlgmr.msrb.gmra.mxu0 %v484_v53 }
  0xed   : > { %1121 = vmatpush.msrb.mxu0 %v4512_v57 }
  0xef   : > { %1123 = vmatpush.msrb.mxu0 %v4517_v60 }
  0xf1   : > { %1125 = vmatpush.msrb.mxu0 %v4526_v0 }
 0x159   : > { %v531_v3 = vpop.f32.mrf.mxu1 }
 0x161   : > { %v490_v4 = vpop.f32.mrf.mxu0  ;;  %v561_v7 = vpop.f32.mrf.mxu2 }
 0x162   : > { %v491_v5 = vadd.f32 %v4127_v2, %v490_v4  ;;  %v646_v13 = vpop.f32.mrf.mxu1  ;;  %v1014_v2 = vld [vmem:[#allocation6 + $0xc0] sm:$0xff] }
 0x163   : > { %v588_v9 = vpop.f32.mrf.mxu3  ;;  %v1010_v4 = vld [vmem:[#allocation6 + $0xa0] sm:$0xff] }
 0x164   : > { %v532_v6 = vadd.f32 %v531_v3, %v491_v5  ;;  %v1012_v3 = vld [vmem:[#allocation6 + $0xb0] sm:$0xff]  ;;  %v4529_v5 = vand.u32 4294901760, %v1014_v2 }
 0x166   : > { %v562_v8 = vadd.f32 %v561_v7, %v532_v6  ;;  %v4531_v6 = vand.u32 4294901760, %v1012_v3  ;;  %v4534_v7 = vand.u32 4294901760, %v1010_v4  ;;  %1127 = vmatpush.msrb.mxu0 %v4529_v5 }
 0x168   : > { %v589_v10 = vadd.f32 %v588_v9, %v562_v8  ;;  %v1164_v8 = vsub.f32 %v4515_v59, %v1163_v62  ;;  %v1169_v9 = vand.u32 4294901760, %v4523_v63  ;;  %1129 = vmatpush.msrb.mxu0 %v4531_v6 }
 0x169   : > { %v621_v11 = vpop.f32.mrf.mxu0 }
 0x16a   : > { %v622_v12 = vadd.f32 %v621_v11, %v589_v10  ;;  %v4541_v10 = vsub.f32 %v1016_v61, %v4526_v0  ;;  %v4546_v11 = vsub.f32 %v1014_v2, %v4529_v5  ;;  %1131 = vmatpush.msrb.mxu0 %v4534_v7  ;;  %v994_v2 = vld [vmem:[#allocation6 + $0x20] sm:$0xff] }
 0x16c   : > { %v647_v14 = vadd.f32 %v646_v13, %v622_v12  ;;  %v4549_v12 = vsub.f32 %v1012_v3, %v4531_v6  ;;  %v4552_v13 = vsub.f32 %v1010_v4, %v4534_v7  ;;  %v4648_v4 = vand.u32 4294901760, %v994_v2 }
 0x16e   : > { %v649_v15 = vmax.f32 %v647_v14, 0.0  ;;  %v1165_v14 = vand.u32 4294901760, %v1164_v8 }
 0x170   : > { %v657_v16 = vsel %vm655_vm7, %v649_v15, 0  ;;  %v1170_v15 = vsub.f32 %v4523_v63, %v1169_v9  ;;  %1166 = vmatpush.msrb.mxu1 %v1165_v14 }
 0x171   : > { %v679_v17 = vand.u32 4294901760, %v657_v16 }
 0x173   : > { %v680_v18 = vsub.f32 %v657_v16, %v679_v17  ;;  %710 = vmatmul.f32.vlgmr.msrb.gmra.mxu3 %v679_v17  ;;  %v1175_v16 = vand.u32 4294901760, %v4541_v10 }
 0x174   : > { %1317 = vmatpush.msrb.mxu3 %v4512_v57 }
 0x175   : > { %734 = vmatmul.f32.vlgmr.msra.gmra.mxu0 %v680_v18  ;;  %v681_v19 = vand.u32 4294901760, %v680_v18 }
 0x176   : > { %1319 = vmatpush.msrb.mxu3 %v4517_v60 }
 0x177   : > { %758 = vmatmul.f32.vlgmr.msra.gmra.mxu1 %v681_v19  ;;  %v682_v20 = vsub.f32 %v680_v18, %v681_v19  ;;  %v1187_v18 = vand.u32 4294901760, %v4549_v12  ;;  %v1193_v19 = vand.u32 4294901760, %v4552_v13 }
 0x178   : > { %1321 = vmatpush.msrb.mxu3 %v4526_v0 }
 0x179   : > { %v683_v21 = vand.u32 4294901760, %v682_v20  ;;  %v1171_v20 = vand.u32 4294901760, %v1170_v15  ;;  %v1188_v23 = vsub.f32 %v4549_v12, %v1187_v18  ;;  %v1194_v26 = vsub.f32 %v4552_v13, %v1193_v19 }
 0x17a   : > { %1323 = vmatpush.msrb.mxu3 %v4529_v5 }
 0x17b   : > { %684 = vmatmul.f32.vlgmr.msrb.gmra.mxu2 %v683_v21  ;;  %804 = vmatmul.f32.vlgmr.msra.gmra.mxu3 %v679_v17  ;;  %v1176_v21 = vsub.f32 %v4541_v10, %v1175_v16 }
 0x17c   : > { %1264 = vmatpush.msrb.mxu2 %v4515_v59  ;;  %1325 = vmatpush.msrb.mxu3 %v4531_v6 }
 0x17d   : > { %1172 = vmatpush.msrb.mxu1 %v1171_v20 }
 0x17e   : > { %1267 = vmatpush.msrb.mxu2 %v4523_v63  ;;  %1327 = vmatpush.msrb.mxu3 %v4534_v7 }
 0x180   : > { %1270 = vmatpush.msrb.mxu2 %v4541_v10  ;;  %v1044_v10 = vld [vmem:[#allocation6 + $0x1b0] sm:$0xff] }
 0x182   : > { %1273 = vmatpush.msrb.mxu2 %v4546_v11 }
 0x183   : > { %782 = vmatmul.f32.vlgmr.msra.gmra.mxu2 %v679_v17  ;;  %v1181_v17 = vand.u32 4294901760, %v4546_v11 }
 0x184   : > { %1276 = vmatpush.msrb.mxu2 %v4549_v12 }
 0x186   : > { %1279 = vmatpush.msrb.mxu2 %v4552_v13 }
 0x1f2   : > { %v735_v29 = vpop.f32.mrf.mxu0 }
 0x1f4   : > { %v759_v31 = vpop.f32.mrf.mxu1 }
 0x1f6   : > { %v711_v24 = vpop.f32.mrf.mxu3 }
 0x1fe   : > { %v685_v25 = vpop.f32.mrf.mxu2  ;;  %v805_v35 = vpop.f32.mrf.mxu3 }
 0x1ff   : > { %v686_v27 = vadd.f32 %v4128_v22, %v685_v25  ;;  %v1182_v22 = vsub.f32 %v4546_v11, %v1181_v17  ;;  %v1177_v25 = vand.u32 4294901760, %v1176_v21  ;;  %v4661_v21 = vsub.f32 %v994_v2, %v4648_v4  ;;  %v1050_v2 = vld [vmem:[#allocation6 + $0x1e0] sm:$0xff] }
 0x201   : > { %v712_v28 = vadd.f32 %v711_v24, %v686_v27  ;;  %v1008_v24 = vld [vmem:[#allocation6 + $0x90] sm:$0xff]  ;;  %1178 = vmatpush.msrb.mxu1 %v1177_v25 }
 0x202   : > { %v4581_v27 = vand.u32 4294901760, %v1008_v24 }
 0x203   : > { %v736_v30 = vadd.f32 %v735_v29, %v712_v28  ;;  %v1183_v28 = vand.u32 4294901760, %v1182_v22  ;;  %v1006_v29 = vld [vmem:[#allocation6 + $0x80] sm:$0xff]  ;;  %v992_v22 = vld [vmem:[#allocation6 + $0x10] sm:$0xff] }
 0x204   : > { %1329 = vmatpush.msrb.mxu3 %v4581_v27  ;;  %1133 = vmatpush.msrb.mxu0 %v4581_v27 }
 0x205   : > { %v760_v32 = vadd.f32 %v759_v31, %v736_v30  ;;  %v1189_v30 = vand.u32 4294901760, %v1188_v23  ;;  %v4586_v31 = vsub.f32 %v1008_v24, %v4581_v27  ;;  %1184 = vmatpush.msrb.mxu1 %v1183_v28  ;;  %v4671_v28 = vand.u32 4294901760, %v992_v22 }
 0x206   : > { %v783_v33 = vpop.f32.mrf.mxu2 }
 0x207   : > { %v784_v34 = vadd.f32 %v783_v33, %v760_v32  ;;  %v4589_v32 = vand.u32 4294901760, %v1006_v29  ;;  %v1004_v33 = vld [vmem:[#allocation6 + $0x70] sm:$0xff]  ;;  %1282 = vmatpush.msrb.mxu2 %v4586_v31  ;;  %1190 = vmatpush.msrb.mxu1 %v1189_v30 }
 0x209   : > { %v806_v36 = vadd.f32 %v805_v35, %v784_v34  ;;  %v1195_v34 = vand.u32 4294901760, %v1194_v26  ;;  %v1199_v35 = vand.u32 4294901760, %v4586_v31  ;;  %1331 = vmatpush.msrb.mxu3 %v4589_v32  ;;  %1135 = vmatpush.msrb.mxu0 %v4589_v32  ;;  %v1241_v26 = vand.u32 4294901760, %v4661_v21 }
 0x20b   : > { %v808_v37 = vmax.f32 %v806_v36, 0.0  ;;  %v4595_v36 = vsub.f32 %v1006_v29, %v4589_v32  ;;  %1196 = vmatpush.msrb.mxu1 %v1195_v34  ;;  %v990_v29 = vld [vmem:[#allocation6] sm:$0xff] }
 0x20c   : > { %v4677_v34 = vand.u32 4294901760, %v990_v29 }
 0x20d   : > { %v810_v38 = vrot.slane %v808_v37, 2  ;;  %1285 = vmatpush.msrb.mxu2 %v4595_v36 }
 0x20f   : > { %v812_v39 = vadd.f32 %v810_v38, %v808_v37  ;;  %v4598_v37 = vand.u32 4294901760, %v1004_v33  ;;  %v1002_v38 = vld [vmem:[#allocation6 + $0x60] sm:$0xff] }
 0x211   : > { %v4045_v1 = vmul.f32 -1.442695, %v812_v39  ;;  %v1200_v39 = vsub.f32 %v4586_v31, %v1199_v35  ;;  %1333 = vmatpush.msrb.mxu3 %v4598_v37  ;;  %1137 = vmatpush.msrb.mxu0 %v4598_v37 }
 0x213   : > { %4129 = vpow2.f32 %v4045_v1  ;;  %v1205_v1 = vand.u32 4294901760, %v4595_v36 }
 0x219   : > { %v4130_v40 = vpop.eup %4129 }
 0x21a   : > { %v816_v41 = vadd.f32 1.0, %v4130_v40  ;;  %v4607_v40 = vsub.f32 %v1004_v33, %v4598_v37 }
 0x21c   : > { %4131 = vrcp.f32 %v816_v41  ;;  %v828_v45 = vand.u32 2147483648, %v816_v41  ;;  %v826_v47 = vand.u32 2147483647, %v816_v41  ;;  %vm822_vm9 = vweird.f32 %v816_v41  ;;  %1288 = vmatpush.msrb.mxu2 %v4607_v40 }
 0x21e   : > { %v829_v49 = vor.u32 1.1754944e-38, %v828_v45  ;;  %vm827_vm11 = vcmp.eq.f32.partialorder %v826_v47, 8.507059e+37  ;;  %v1211_v45 = vand.u32 4294901760, %v4607_v40 }
 0x222   : > { %v4132_v42 = vpop.eup %4131 }
 0x223   : > { %v818_v43 = vmul.f32 %v4132_v42, %v816_v41  ;;  %vm823_vm8 = vweird.f32 %v4132_v42  ;;  %v4610_v41 = vand.u32 4294901760, %v1002_v38 }
 0x224   : > { %vm824_vm10 = vmor %vm822_vm9, %vm823_vm8 }
 0x225   : > { %v819_v44 = vsub.f32 1.0, %v818_v43  ;;  %v1201_v43 = vand.u32 4294901760, %v1200_v39  ;;  %1335 = vmatpush.msrb.mxu3 %v4610_v41  ;;  %1139 = vmatpush.msrb.mxu0 %v4610_v41  ;;  %v4684_v39 = vsub.f32 %v992_v22, %v4671_v28  ;;  %v4712_v22 = vand.u32 4294901760, %v1050_v2 }
 0x227   : > { %v820_v46 = vmul.f32 %v4132_v42, %v819_v44  ;;  %v1206_v44 = vsub.f32 %v4595_v36, %v1205_v1  ;;  %1202 = vmatpush.msrb.mxu1 %v1201_v43  ;;  %v4688_v43 = vsub.f32 %v990_v29, %v4677_v34  ;;  %v4721_v29 = vsub.f32 %v1050_v2, %v4712_v22 }
 0x229   : > { %v821_v48 = vadd.f32 %v4132_v42, %v820_v46  ;;  %v4619_v46 = vsub.f32 %v1002_v38, %v4610_v41  ;;  %v1242_v38 = vsub.f32 %v4661_v21, %v1241_v26 }
 0x22b   : > { %v825_v50 = vsel %vm824_vm10, %v4132_v42, %v821_v48  ;;  %v1000_v42 = vld [vmem:[#allocation6 + $0x50] sm:$0xff]  ;;  %v998_v48 = vld [vmem:[#allocation6 + $0x40] sm:$0xff]  ;;  %1291 = vmatpush.msrb.mxu2 %v4619_v46 }
 0x22c   : > { %v830_v51 = vsel %vm827_vm11, %v829_v49, %v825_v50  ;;  %v4622_v47 = vand.u32 4294901760, %v1000_v42  ;;  %v1207_v49 = vand.u32 4294901760, %v1206_v44  ;;  %v1212_v50 = vsub.f32 %v4607_v40, %v1211_v45 }
 0x22d   : > { %v857_v52 = vperm.slane %v830_v51, 1  ;;  %v832_v53 = vperm.slane %v830_v51, 0  ;;  %v1217_v51 = vand.u32 4294901760, %v4619_v46  ;;  %v1243_v44 = vand.u32 4294901760, %v1242_v38 }
 0x22e   : > { %1337 = vmatpush.msrb.mxu3 %v4622_v47  ;;  %1141 = vmatpush.msrb.mxu0 %v4622_v47 }
 0x22f   : > { %862 = vperm.xlu0 %4121, %v857_v52   ;;  %843 = vperm.xlu2 %4120, %v832_v53   ;;  %v1218_v56 = vsub.f32 %v4619_v46, %v1217_v51  ;;  %v4141_v46 = vld [vmem:[%s4442_s30 + $0x40] sm:$0xff] }
 0x230   : > { %837 = vperm.xlu1 %4119, %v832_v53   ;;  %1208 = vmatpush.msrb.mxu1 %v1207_v49  ;;  %v1253_v49 = vand.u32 4294901760, %v4688_v43 }
 0x231   : > { %v1219_v8 = vand.u32 4294901760, %v1218_v56 }
 0x232   : > { %v1254_v56 = vsub.f32 %v4688_v43, %v1253_v49 }
 0x237   : > { %868 = vperm.xlu2 %4120, %v857_v52   ;;  %4126 = vset.pattern.permute.xlu0 %v853_v55 }
 0x238   : > { %4122 = vset.pattern.permute.xlu1 %v847_v54 }
 0x23f   : > { %4123 = vset.pattern.permute.xlu2 %v847_v54  ;;  %v996_v54 = vld [vmem:[#allocation6 + $0x30] sm:$0xff] }
 0x240   : > { %849 = vperm.xlu1 %4122, %v832_v53   ;;  %v4644_v61 = vand.u32 4294901760, %v996_v54 }
 0x242   : > { %v4653_v15 = vsub.f32 %v996_v54, %v4644_v61 }
 0x244   : > { %v1235_v24 = vand.u32 4294901760, %v4653_v15 }
 0x246   : > { %v1236_v33 = vsub.f32 %v4653_v15, %v1235_v24 }
 0x247   : > { %874 = vperm.xlu2 %4123, %v857_v52  }
 0x248   : > { %4124 = vset.pattern.permute.xlu1 %v853_v55 }
 0x24f   : > { %4125 = vset.pattern.permute.xlu2 %v853_v55  ;;  %v1213_v55 = vand.u32 4294901760, %v1212_v50  ;;  %v1052_v50 = vld [vmem:[#allocation6 + $0x1f0] sm:$0xff] }
 0x250   : > { %855 = vperm.xlu1 %4124, %v832_v53   ;;  %v4634_v53 = vsub.f32 %v1000_v42, %v4622_v47  ;;  %v1237_v42 = vand.u32 4294901760, %v1236_v33 }
 0x251   : > { %1214 = vmatpush.msrb.mxu1 %v1213_v55  ;;  %v4701_v55 = vand.u32 4294901760, %v1052_v50 }
 0x252   : > { %v1223_v3 = vand.u32 4294901760, %v4634_v53  ;;  %1294 = vmatpush.msrb.mxu2 %v4634_v53 }
 0x253   : > { %1220 = vmatpush.msrb.mxu1 %v1219_v8 }
 0x254   : > { %v1224_v20 = vsub.f32 %v4634_v53, %v1223_v3 }
 0x256   : > { %v1225_v25 = vand.u32 4294901760, %v1224_v20  ;;  %v4710_v20 = vsub.f32 %v1052_v50, %v4701_v55 }
 0x257   : > { %880 = vperm.xlu2 %4125, %v857_v52   ;;  %v4631_v52 = vand.u32 4294901760, %v998_v48 }
 0x258   : > { %1226 = vmatpush.msrb.mxu1 %v1225_v25  ;;  %v1048_v25 = vld [vmem:[#allocation6 + $0x1d0] sm:$0xff]  ;;  %v6720_v59 = vand.u32 4294901760, %v4710_v20 }
 0x259   : > { %v4642_v58 = vsub.f32 %v998_v48, %v4631_v52  ;;  %1339 = vmatpush.msrb.mxu3 %v4631_v52  ;;  %1143 = vmatpush.msrb.mxu0 %v4631_v52  ;;  %v1247_v48 = vand.u32 4294901760, %v4684_v39 }
 0x25a   : > { %v1505_v63 = vsub.f32 %v4710_v20, %v6720_v59 }
 0x25b   : > { %v1229_v14 = vand.u32 4294901760, %v4642_v58  ;;  %1297 = vmatpush.msrb.mxu2 %v4642_v58  ;;  %1341 = vmatpush.msrb.mxu3 %v4644_v61  ;;  %v1248_v54 = vsub.f32 %v4684_v39, %v1247_v48 }
 0x25c   : > { %1145 = vmatpush.msrb.mxu0 %v4644_v61 }
 0x25d   : > { %v1230_v23 = vsub.f32 %v4642_v58, %v1229_v14  ;;  %1300 = vmatpush.msrb.mxu2 %v4653_v15  ;;  %1343 = vmatpush.msrb.mxu3 %v4648_v4  ;;  %v1249_v8 = vand.u32 4294901760, %v1248_v54  ;;  %v4745_v54 = vand.u32 4294901760, %v1044_v10 }
 0x25e   : > { %1147 = vmatpush.msrb.mxu0 %v4648_v4 }
 0x25f   : > { %v1231_v30 = vand.u32 4294901760, %v1230_v23  ;;  %1303 = vmatpush.msrb.mxu2 %v4661_v21  ;;  %1345 = vmatpush.msrb.mxu3 %v4671_v28  ;;  %v1255_v23 = vand.u32 4294901760, %v1254_v56 }
 0x260   : > { %1149 = vmatpush.msrb.mxu0 %v4671_v28 }
 0x261   : > { %1232 = vmatpush.msrb.mxu1 %v1231_v30  ;;  %1306 = vmatpush.msrb.mxu2 %v4684_v39  ;;  %v1046_v30 = vld [vmem:[#allocation6 + $0x1c0] sm:$0xff] }
 0x262   : > { %1347 = vmatpush.msrb.mxu3 %v4677_v34  ;;  %1151 = vmatpush.msrb.mxu0 %v4677_v34  ;;  %v4730_v33 = vand.u32 4294901760, %v1046_v30 }
 0x263   : > { %1238 = vmatpush.msrb.mxu1 %v1237_v42  ;;  %1309 = vmatpush.msrb.mxu2 %v4688_v43  ;;  %v4152_v43 = vld [vmem:[%s4442_s30 + $0x18] sm:$0xff] }
 0x264   : > { %1358 = vmatpush.msra.mxu0 %v1163_v62  ;;  %v4718_v62 = vand.u32 4294901760, %v1048_v25  ;;  %v4749_v56 = vsub.f32 %v1046_v30, %v4730_v33 }
 0x265   : > { %1244 = vmatpush.msrb.mxu1 %v1243_v44  ;;  %1462 = vmatpush.msra.mxu2 %v4701_v55 }
 0x266   : > { %1362 = vmatpush.msra.mxu0 %v1169_v9  ;;  %v6712_v9 = vand.u32 4294901760, %v4721_v29  ;;  %v4733_v38 = vsub.f32 %v1048_v25, %v4718_v62 }
 0x267   : > { %1250 = vmatpush.msrb.mxu1 %v1249_v8  ;;  %1464 = vmatpush.msra.mxu2 %v4712_v22  ;;  %v4760_v8 = vsub.f32 %v1044_v10, %v4745_v54 }
 0x268   : > { %1366 = vmatpush.msra.mxu0 %v1175_v16  ;;  %v1506_v16 = vand.u32 4294901760, %v1505_v63  ;;  %v1511_v44 = vsub.f32 %v4721_v29, %v6712_v9  ;;  %v6711_v50 = vand.u32 4294901760, %v4733_v38  ;;  %v1038_v63 = vld [vmem:[#allocation6 + $0x180] sm:$0xff] }
 0x269   : > { %1256 = vmatpush.msrb.mxu1 %v1255_v23  ;;  %1466 = vmatpush.msra.mxu2 %v4718_v62  ;;  %v1040_v23 = vld [vmem:[#allocation6 + $0x190] sm:$0xff]  ;;  %v4784_v10 = vand.u32 4294901760, %v1038_v63 }
 0x26a   : > { %1370 = vmatpush.msra.mxu0 %v1181_v17  ;;  %1507 = vmatpush.msra.mxu3 %v1506_v16  ;;  %v1512_v11 = vand.u32 4294901760, %v1511_v44  ;;  %v1517_v17 = vsub.f32 %v4733_v38, %v6711_v50  ;;  %v4768_v25 = vand.u32 4294901760, %v1040_v23  ;;  %v1036_v44 = vld [vmem:[#allocation6 + $0x170] sm:$0xff]  ;;  %v4142_v50 = vld [vmem:[%s4442_s30 + $0x48] sm:$0xff] }
 0x26b   : > { %1425 = vmatpush.msra.mxu1 %v4512_v57  ;;  %1468 = vmatpush.msra.mxu2 %v4730_v33  ;;  %v1042_v57 = vld [vmem:[#allocation6 + $0x1a0] sm:$0xff] }
 0x26c   : > { %1374 = vmatpush.msra.mxu0 %v1187_v18  ;;  %v4757_v2 = vand.u32 4294901760, %v1042_v57  ;;  %1513 = vmatpush.msra.mxu3 %v1512_v11  ;;  %v1518_v12 = vand.u32 4294901760, %v1517_v17  ;;  %v6709_v18 = vand.u32 4294901760, %v4760_v8  ;;  %v4797_v11 = vand.u32 4294901760, %v1036_v44 }
 0x26d   : > { %1427 = vmatpush.msra.mxu1 %v4517_v60  ;;  %1470 = vmatpush.msra.mxu2 %v4745_v54  ;;  %v6710_v60 = vand.u32 4294901760, %v4749_v56 }
 0x26e   : > { %1378 = vmatpush.msra.mxu0 %v1193_v19  ;;  %v4771_v30 = vsub.f32 %v1042_v57, %v4757_v2  ;;  %1519 = vmatpush.msra.mxu3 %v1518_v12  ;;  %v1529_v13 = vsub.f32 %v4760_v8, %v6709_v18  ;;  %v1030_v12 = vld [vmem:[#allocation6 + $0x140] sm:$0xff] }
 0x26f   : > { %1429 = vmatpush.msra.mxu1 %v4526_v0  ;;  %1472 = vmatpush.msra.mxu2 %v4757_v2  ;;  %v1523_v0 = vsub.f32 %v4749_v56, %v6710_v60 }
 0x270   : > { %1382 = vmatpush.msra.mxu0 %v1199_v35  ;;  %v6708_v19 = vand.u32 4294901760, %v4771_v30  ;;  %v1530_v31 = vand.u32 4294901760, %v1529_v13 }
 0x271   : > { %1431 = vmatpush.msra.mxu1 %v4529_v5  ;;  %1474 = vmatpush.msra.mxu2 %v4768_v25  ;;  %v4787_v5 = vsub.f32 %v1040_v23, %v4768_v25  ;;  %v1524_v16 = vand.u32 4294901760, %v1523_v0  ;;  %v1032_v23 = vld [vmem:[#allocation6 + $0x150] sm:$0xff] }
 0x272   : > { %1386 = vmatpush.msra.mxu0 %v1205_v1  ;;  %v1535_v35 = vsub.f32 %v4771_v30, %v6708_v19  ;;  %v1034_v1 = vld [vmem:[#allocation6 + $0x160] sm:$0xff]  ;;  %v1024_v19 = vld [vmem:[#allocation6 + $0x110] sm:$0xff] }
 0x273   : > { %1433 = vmatpush.msra.mxu1 %v4531_v6  ;;  %1476 = vmatpush.msra.mxu2 %v4784_v10  ;;  %v6705_v57 = vand.u32 4294901760, %v4787_v5  ;;  %v4811_v13 = vand.u32 4294901760, %v1034_v1 }
 0x274   : > { %1525 = vmatpush.msra.mxu3 %v1524_v16  ;;  %v1536_v6 = vand.u32 4294901760, %v1535_v35  ;;  %v4814_v16 = vsub.f32 %v1036_v44, %v4797_v11  ;;  %1390 = vmatpush.msra.mxu0 %v1211_v45 }
 0x275   : > { %1435 = vmatpush.msra.mxu1 %v4534_v7  ;;  %v1541_v36 = vsub.f32 %v4787_v5, %v6705_v57  ;;  %1478 = vmatpush.msra.mxu2 %v4797_v11  ;;  %v4809_v7 = vsub.f32 %v1038_v63, %v4784_v10 }
 0x276   : > { %1531 = vmatpush.msra.mxu3 %v1530_v31  ;;  %v4821_v31 = vand.u32 4294901760, %v1030_v12  ;;  %v6707_v44 = vand.u32 4294901760, %v4814_v16  ;;  %1394 = vmatpush.msra.mxu0 %v1217_v51 }
 0x277   : > { %1437 = vmatpush.msra.mxu1 %v4581_v27  ;;  %v1542_v0 = vand.u32 4294901760, %v1541_v36  ;;  %v4819_v27 = vand.u32 4294901760, %v1032_v23  ;;  %v6706_v63 = vand.u32 4294901760, %v4809_v7  ;;  %1480 = vmatpush.msra.mxu2 %v4811_v13 }
 0x278   : > { %1537 = vmatpush.msra.mxu3 %v1536_v6  ;;  %v4827_v6 = vsub.f32 %v1034_v1, %v4811_v13  ;;  %v4840_v36 = vsub.f32 %v1030_v12, %v4821_v31  ;;  %v1553_v57 = vsub.f32 %v4814_v16, %v6707_v44  ;;  %1398 = vmatpush.msra.mxu0 %v1223_v3 }
 0x279   : > { %1439 = vmatpush.msra.mxu1 %v4589_v32  ;;  %v1028_v32 = vld [vmem:[#allocation6 + $0x130] sm:$0xff]  ;;  %v4835_v45 = vsub.f32 %v1032_v23, %v4819_v27  ;;  %v1547_v1 = vsub.f32 %v4809_v7, %v6706_v63  ;;  %1482 = vmatpush.msra.mxu2 %v4819_v27 }
 0x27a   : > { %1543 = vmatpush.msra.mxu3 %v1542_v0  ;;  %v4829_v40 = vand.u32 4294901760, %v1028_v32  ;;  %v1026_v0 = vld [vmem:[#allocation6 + $0x120] sm:$0xff]  ;;  %v6715_v63 = vand.u32 4294901760, %v4840_v36  ;;  %v1554_v60 = vand.u32 4294901760, %v1553_v57  ;;  %1402 = vmatpush.msra.mxu0 %v1229_v14 }
 0x27b   : > { %1441 = vmatpush.msra.mxu1 %v4598_v37  ;;  %v4850_v23 = vand.u32 4294901760, %v1026_v0  ;;  %v6713_v12 = vand.u32 4294901760, %v4835_v45  ;;  %v1548_v18 = vand.u32 4294901760, %v1547_v1  ;;  %1484 = vmatpush.msra.mxu2 %v4821_v31 }
 0x27c   : > { %v4861_v44 = vsub.f32 %v1028_v32, %v4829_v40  ;;  %1406 = vmatpush.msra.mxu0 %v1235_v24 }
 0x27d   : > { %1443 = vmatpush.msra.mxu1 %v4610_v41  ;;  %v6717_v41 = vand.u32 4294901760, %v4827_v6  ;;  %v1565_v53 = vsub.f32 %v4835_v45, %v6713_v12  ;;  %v4880_v57 = vsub.f32 %v1026_v0, %v4850_v23  ;;  %1549 = vmatpush.msra.mxu3 %v1548_v18  ;;  %v4144_v12 = vld [vmem:[%s4442_s30 + $0x58] sm:$0xff] }
 0x27e   : > { %v6714_v3 = vand.u32 4294901760, %v4861_v44  ;;  %1486 = vmatpush.msra.mxu2 %v4829_v40  ;;  %1410 = vmatpush.msra.mxu0 %v1241_v26  ;;  %v4147_v26 = vld [vmem:[%s4442_s30 + $0x70] sm:$0xff] }
 0x27f   : > { %1445 = vmatpush.msra.mxu1 %v4622_v47  ;;  %v4867_v47 = vand.u32 4294901760, %v1024_v19  ;;  %v6716_v14 = vand.u32 4294901760, %v4880_v57  ;;  %1555 = vmatpush.msra.mxu3 %v1554_v60  ;;  %v1566_v18 = vand.u32 4294901760, %v1565_v53 }
 0x280   : > { %1488 = vmatpush.msra.mxu2 %v4850_v23  ;;  %v1577_v0 = vsub.f32 %v4861_v44, %v6714_v3  ;;  %v4145_v3 = vld [vmem:[%s4442_s30 + $0x60] sm:$0xff]  ;;  %1414 = vmatpush.msra.mxu0 %v1247_v48 }
 0x281   : > { %1447 = vmatpush.msra.mxu1 %v4631_v52  ;;  %v1571_v52 = vsub.f32 %v4840_v36, %v6715_v63  ;;  %v4149_v48 = vld [vmem:[%s4442_s30] sm:$0xff] }
 0x282   : > { %1490 = vmatpush.msra.mxu2 %v4867_v47  ;;  %1418 = vmatpush.msra.mxu0 %v1253_v49 }
 0x283   : > { %1449 = vmatpush.msra.mxu1 %v4644_v61 }
 0x285   : > { %1451 = vmatpush.msra.mxu1 %v4648_v4  ;;  %v4146_v4 = vld [vmem:[%s4442_s30 + $0x68] sm:$0xff] }
 0x287   : > { %1453 = vmatpush.msra.mxu1 %v4671_v28 }
 0x289   : > { %v4735_v42 = vpop.permute.xlu2 %843  ;;  %1455 = vmatpush.msra.mxu1 %v4677_v34 }
 0x28a   : > { %v4966_v49 = vmul.f32 %v4152_v43, %v4735_v42  ;;  %v4155_v43 = vld [vmem:[%s4442_s30 + $0x30] sm:$0xff] }
 0x28c   : > { %6855 = vst [vmem:[#allocation25_spill] sm:$0xff] %v4966_v49 }
 0x291   : > { %v4799_v17 = vpop.permute.xlu2 %868 }
 0x292   : > { %v4892_v58 = vmul.f32 %v4144_v12, %v4799_v17  ;;  %v1572_v12 = vand.u32 4294901760, %v1571_v52  ;;  %v4148_v52 = vld [vmem:[%s4442_s30 + $0x78] sm:$0xff] }
 0x294   : > { %6845 = vst [vmem:[#allocation15_spill] sm:$0xff] %v4892_v58 }
 0x2a1   : > { %v863_v35 = vpop.permute.xlu0 %862  ;;  %v4831_v37 = vpop.permute.xlu2 %874 }
 0x2a2   : > { %v4853_v51 = vmul.f32 %v4141_v46, %v863_v35  ;;  %v1559_v46 = vsub.f32 %v4827_v6, %v6717_v41  ;;  %v4870_v9 = vmul.f32 %v4142_v50, %v863_v35  ;;  %v1022_v50 = vld [vmem:[#allocation6 + $0x100] sm:$0xff]  ;;  %v4143_v35 = vld [vmem:[%s4442_s30 + $0x50] sm:$0xff]  ;;  %v838_v24 = vpop.permute.xlu1 %837  ;;  %v4924_v63 = vmul.f32 %v4145_v3, %v4831_v37 }
 0x2a3   : > { %v4888_v1 = vmul.f32 %v4143_v35, %v4799_v17  ;;  %v4905_v17 = vsub.f32 %v1024_v19, %v4867_v47  ;;  %v1583_v19 = vsub.f32 %v4880_v57, %v6716_v14  ;;  %v4929_v21 = vmul.f32 %v4146_v4, %v4831_v37 }
 0x2a4   : > { %6842 = vst [vmem:[#allocation12_spill] sm:$0xff] %v4853_v51  ;;  %v1560_v32 = vand.u32 4294901760, %v1559_v46  ;;  %v4902_v46 = vand.u32 4294901760, %v1022_v50  ;;  %v925_v15 = vmax.f32 %v4870_v9, %v4892_v58  ;;  %v1578_v41 = vand.u32 4294901760, %v1577_v0 }
 0x2a5   : > { %6843 = vst [vmem:[#allocation13_spill] sm:$0xff] %v4870_v9  ;;  %v916_v61 = vmax.f32 %v4853_v51, %v4888_v1  ;;  %v6719_v53 = vand.u32 4294901760, %v4905_v17  ;;  %v1584_v37 = vand.u32 4294901760, %v1583_v19  ;;  %v4150_v19 = vld [vmem:[%s4442_s30 + $0x8] sm:$0xff] }
 0x2a6   : > { %6844 = vst [vmem:[#allocation14_spill] sm:$0xff] %v4888_v1  ;;  %1561 = vmatpush.msra.mxu3 %v1560_v32  ;;  %v4920_v35 = vsub.f32 %v1022_v50, %v4902_v46  ;;  %1492 = vmatpush.msra.mxu2 %v4902_v46  ;;  %v926_v28 = vmax.f32 %v925_v15, %v4929_v21 }
 0x2a7   : > { %6846 = vst [vmem:[#allocation16_spill] sm:$0xff] %v4905_v17  ;;  %v917_v50 = vmax.f32 %v916_v61, %v4924_v63  ;;  %v1589_v3 = vsub.f32 %v4905_v17, %v6719_v53  ;;  %v4958_v4 = vmul.f32 %v4150_v19, %v838_v24  ;;  %v4156_v53 = vld [vmem:[%s4442_s30 + $0x38] sm:$0xff] }
 0x2a8   : > { %6847 = vst [vmem:[#allocation17_spill] sm:$0xff] %v4920_v35  ;;  %1567 = vmatpush.msra.mxu3 %v1566_v18 }
 0x2a9   : > { %6848 = vst [vmem:[#allocation18_spill] sm:$0xff] %v4924_v63  ;;  %v1590_v0 = vand.u32 4294901760, %v1589_v3  ;;  %v4154_v3 = vld [vmem:[%s4442_s30 + $0x28] sm:$0xff] }
 0x2aa   : > { %6849 = vst [vmem:[#allocation19_spill] sm:$0xff] %v4929_v21  ;;  %1573 = vmatpush.msra.mxu3 %v1572_v12  ;;  %v4955_v12 = vmul.f32 %v4149_v48, %v838_v24 }
 0x2ab   : > { %6853 = vst [vmem:[#allocation23_spill] sm:$0xff] %v4958_v4 }
 0x2ac   : > { %1579 = vmatpush.msra.mxu3 %v1578_v41  ;;  %6852 = vst [vmem:[#allocation22_spill] sm:$0xff] %v4955_v12 }
 0x2ae   : > { %1585 = vmatpush.msra.mxu3 %v1584_v37 }
 0x2b0   : > { %1591 = vmatpush.msra.mxu3 %v1590_v0  ;;  %v907_v0 = vmax.f32 %v4958_v4, %v4966_v49 }
 0x2b1   : > { %v881_v60 = vpop.permute.xlu2 %880 }
 0x2b2   : > { %v4932_v32 = vmul.f32 %v4147_v26, %v881_v60  ;;  %v4935_v14 = vmul.f32 %v4148_v52, %v881_v60  ;;  %v6718_v60 = vand.u32 4294901760, %v4920_v35  ;;  %v850_v15 = vpop.permute.xlu1 %849  ;;  %v4151_v52 = vld [vmem:[%s4442_s30 + $0x10] sm:$0xff] }
 0x2b4   : > { %6850 = vst [vmem:[#allocation20_spill] sm:$0xff] %v4932_v32  ;;  %v918_v18 = vmax.f32 %v917_v50, %v4932_v32  ;;  %v927_v34 = vmax.f32 %v926_v28, %v4935_v14  ;;  %v1595_v61 = vsub.f32 %v4920_v35, %v6718_v60  ;;  %v4962_v50 = vmul.f32 %v4151_v52, %v4735_v42  ;;  %v4153_v28 = vld [vmem:[%s4442_s30 + $0x20] sm:$0xff]  ;;  %s1118_s30 = sld [smem:[#allocation2]] }
 0x2b5   : > { %6851 = vst [vmem:[#allocation21_spill] sm:$0xff] %v4935_v14  ;;  %v4969_v37 = vmul.f32 %v4153_v28, %v850_v15 }
 0x2b6   : > { %v1596_v39 = vand.u32 4294901760, %v1595_v61  ;;  %v919_v41 = vrot.slane %v918_v18, 4  ;;  %v928_v26 = vrot.slane %v927_v34, 4  ;;  %6854 = vst [vmem:[#allocation24_spill] sm:$0xff] %v4962_v50  ;;  %v4972_v61 = vmul.f32 %v4154_v3, %v850_v15 }
 0x2b7   : > { %6856 = vst [vmem:[#allocation26_spill] sm:$0xff] %v4969_v37  ;;  %v898_v24 = vmax.f32 %v4955_v12, %v4962_v50 }
 0x2b8   : > { %6857 = vst [vmem:[#allocation27_spill] sm:$0xff] %v4972_v61  ;;  %1597 = vmatpush.msra.mxu3 %v1596_v39  ;;  %v920_v48 = vmax.f32 %v918_v18, %v919_v41  ;;  %v929_v19 = vmax.f32 %v927_v34, %v928_v26  ;;  %v908_v42 = vmax.f32 %v907_v0, %v4972_v61 }
 0x2b9   : > { %v899_v60 = vmax.f32 %v898_v24, %v4969_v37 }
 0x2ba   : > { %v921_v39 = vrot.slane %v920_v48, 2  ;;  %v930_v3 = vrot.slane %v929_v19, 2 }
 0x2bc   : > { %v922_v34 = vmax.f32 %v920_v48, %v921_v39  ;;  %v931_v41 = vmax.f32 %v929_v19, %v930_v3  ;;  %v6869_v19 = vand.u32 4294901760, %v4733_v38  ;;  %v1082_v39 = vld [vmem:[#allocation6 + $0x2e0] sm:$0xff]  ;;  %v1080_v3 = vld [vmem:[#allocation6 + $0x2d0] sm:$0xff] }
 0x2be   : > { %v923_v61 = vrot.slane %v922_v34, 1 }
 0x2c0   : > { %v924_v9 = vmax.f32 %v922_v34, %v923_v61  ;;  %v5066_v34 = vand.u32 4294901760, %v1080_v3 }
 0x2c2   : > { %v856_v52 = vpop.permute.xlu1 %855 }
 0x2c3   : > { %v4981_v28 = vmul.f32 %v4155_v43, %v856_v52  ;;  %v4984_v15 = vmul.f32 %v4156_v53, %v856_v52  ;;  %v932_v43 = vrot.slane %v931_v41, 1 }
 0x2c5   : > { %6858 = vst [vmem:[#allocation28_spill] sm:$0xff] %v4981_v28  ;;  %v900_v59 = vmax.f32 %v899_v60, %v4981_v28  ;;  %v909_v14 = vmax.f32 %v908_v42, %v4984_v15  ;;  %v933_v35 = vmax.f32 %v931_v41, %v932_v43  ;;  %v934_v41 = vadd.f32 %v4962_v50, %v4955_v12  ;;  %v1110_v50 = vld [vmem:[#allocation6 + $0x3c0] sm:$0xff] }
 0x2c6   : > { %6859 = vst [vmem:[#allocation29_spill] sm:$0xff] %v4984_v15 }
 0x2c7   : > { %v901_v21 = vrot.slane %v900_v59, 4  ;;  %v910_v18 = vrot.slane %v909_v14, 4 }
 0x2c9   : > { %v902_v26 = vmax.f32 %v900_v59, %v901_v21  ;;  %v911_v24 = vmax.f32 %v909_v14, %v910_v18 }
 0x2cb   : > { %v903_v49 = vrot.slane %v902_v26, 2  ;;  %v912_v0 = vrot.slane %v911_v24, 2 }
 0x2cd   : > { %v904_v4 = vmax.f32 %v902_v26, %v903_v49  ;;  %v913_v58 = vmax.f32 %v911_v24, %v912_v0  ;;  %v6876_v26 = vand.u32 4294901760, %v4814_v16  ;;  %v6877_v0 = vand.u32 4294901760, %v4827_v6 }
 0x2cf   : > { %v905_v53 = vrot.slane %v904_v4, 1  ;;  %v914_v52 = vrot.slane %v913_v58, 1 }
 0x2d1   : > { %v906_v17 = vmax.f32 %v904_v4, %v905_v53  ;;  %v915_v60 = vmax.f32 %v913_v58, %v914_v52  ;;  %v6867_v4 = vand.u32 4294901760, %v4721_v29  ;;  %v1074_v52 = vld [vmem:[#allocation6 + $0x2a0] sm:$0xff] }
 0x2d3   : > { %v978_v42 = vsel %vm422_vm3, %v924_v9, %v906_v17  ;;  %v979_v15 = vsel %vm422_vm3, %v933_v35, %v915_v60  ;;  %v6866_v17 = vand.u32 4294901760, %v4710_v20 }
 0x2d4   : > { %v4990_v48 = vand.u32 4294901760, %v978_v42  ;;  %v4992_v59 = vand.u32 4294901760, %v979_v15 }
 0x2d6   : > { %6860 = vst [vmem:[#allocation30_spill] sm:$0xff] %v4990_v48  ;;  %1258 = vmatmul.f32.vlgmr.msrb.gmra.mxu1 %v4990_v48  ;;  %v4996_v14 = vsub.f32 %v978_v42, %v4990_v48  ;;  %v4999_v21 = vsub.f32 %v979_v15, %v4992_v59 }
 0x2d7   : > { %6861 = vst [vmem:[#allocation31_spill] sm:$0xff] %v4992_v59  ;;  %1658 = vmatpush.msrb.mxu1 %v4701_v55 }
 0x2d8   : > { %6862 = vst [vmem:[#allocation32_spill] sm:$0xff] %v4996_v14  ;;  %1312 = vmatmul.f32.vlgmr.msrb.gmra.mxu2 %v4996_v14  ;;  %v5004_v9 = vand.u32 4294901760, %v4996_v14  ;;  %v5007_v58 = vand.u32 4294901760, %v4999_v21 }
 0x2d9   : > { %6863 = vst [vmem:[#allocation33_spill] sm:$0xff] %v4999_v21  ;;  %1660 = vmatpush.msrb.mxu1 %v4712_v22  ;;  %1699 = vmatpush.msrb.mxu2 %v6866_v17  ;;  %v6878_v17 = vand.u32 4294901760, %v4835_v45 }
 0x2da   : > { %6864 = vst [vmem:[#allocation34_spill] sm:$0xff] %v5004_v9  ;;  %1351 = vmatmul.f32.vlgmr.msrb.gmra.mxu3 %v5004_v9  ;;  %v1155_v35 = vsub.f32 %v4996_v14, %v5004_v9  ;;  %v1496_v49 = vsub.f32 %v4999_v21, %v5007_v58  ;;  %v1098_v9 = vld [vmem:[#allocation6 + $0x360] sm:$0xff] }
 0x2db   : > { %6865 = vst [vmem:[#allocation35_spill] sm:$0xff] %v5007_v58  ;;  %1662 = vmatpush.msrb.mxu1 %v4718_v62  ;;  %1703 = vmatpush.msrb.mxu2 %v6867_v4 }
 0x2dc   : > { %1766 = vmatpush.msrb.mxu3 %v4701_v55  ;;  %v5021_v61 = vand.u32 4294901760, %v1155_v35  ;;  %v5030_v15 = vand.u32 4294901760, %v1496_v49  ;;  %v6871_v55 = vand.u32 4294901760, %v4749_v56  ;;  %v1070_v49 = vld [vmem:[#allocation6 + $0x280] sm:$0xff] }
 0x2dd   : > { %1664 = vmatpush.msrb.mxu1 %v4730_v33  ;;  %1707 = vmatpush.msrb.mxu2 %v6869_v19  ;;  %v6879_v19 = vand.u32 4294901760, %v4840_v36 }
 0x2de   : > { %6868 = vst [vmem:[#allocation36_spill] sm:$0xff] %v5021_v61  ;;  %1768 = vmatpush.msrb.mxu3 %v4712_v22  ;;  %1157 = vmatmul.f32.vlgmr.msrb.gmra.mxu0 %v5021_v61  ;;  %v6872_v22 = vand.u32 4294901760, %v4760_v8 }
 0x2df   : > { %1457 = vmatmul.f32.vlgmr.msra.gmra.mxu1 %v4990_v48  ;;  %1605 = vmatpush.msrb.mxu0 %v4710_v20  ;;  %6870 = vst [vmem:[#allocation37_spill] sm:$0xff] %v5030_v15  ;;  %v1084_v20 = vld [vmem:[#allocation6 + $0x2f0] sm:$0xff] }
 0x2e0   : > { %1666 = vmatpush.msrb.mxu1 %v4745_v54  ;;  %1711 = vmatpush.msrb.mxu2 %v6871_v55 }
 0x2e1   : > { %1770 = vmatpush.msrb.mxu3 %v4718_v62  ;;  %1498 = vmatmul.f32.vlgmr.msra.gmra.mxu2 %v5030_v15  ;;  %v6873_v62 = vand.u32 4294901760, %v4771_v30  ;;  %v1100_v15 = vld [vmem:[#allocation6 + $0x370] sm:$0xff] }
 0x2e2   : > { %1608 = vmatpush.msrb.mxu0 %v4721_v29  ;;  %1668 = vmatpush.msrb.mxu1 %v4757_v2  ;;  %v5049_v29 = vand.u32 4294901760, %v1084_v20  ;;  %v5375_v14 = vand.u32 4294901760, %v1100_v15 }
 0x2e3   : > { %1715 = vmatpush.msrb.mxu2 %v6872_v22  ;;  %1772 = vmatpush.msrb.mxu3 %v4730_v33  ;;  %v6874_v33 = vand.u32 4294901760, %v4787_v5 }
 0x2e4   : > { %1599 = vmatmul.f32.vlgmr.msra.gmra.mxu3 %v4992_v59  ;;  %1611 = vmatpush.msrb.mxu0 %v4733_v38  ;;  %v5056_v38 = vand.u32 4294901760, %v1082_v39  ;;  %v5064_v18 = vsub.f32 %v1084_v20, %v5049_v29 }
 0x2e5   : > { %1670 = vmatpush.msrb.mxu1 %v4768_v25  ;;  %1719 = vmatpush.msrb.mxu2 %v6873_v62  ;;  %v6880_v62 = vand.u32 4294901760, %v4861_v44 }
 0x2e6   : > { %1774 = vmatpush.msrb.mxu3 %v4745_v54  ;;  %1614 = vmatpush.msrb.mxu0 %v4749_v56  ;;  %v1078_v54 = vld [vmem:[#allocation6 + $0x2c0] sm:$0xff]  ;;  %v6875_v56 = vand.u32 4294901760, %v4809_v7  ;;  %v6748_v43 = vand.u32 4294901760, %v5064_v18 }
 0x2e7   : > { %1672 = vmatpush.msrb.mxu1 %v4784_v10  ;;  %1723 = vmatpush.msrb.mxu2 %v6874_v33  ;;  %v5080_v24 = vand.u32 4294901760, %v1078_v54  ;;  %v5131_v33 = vand.u32 4294901760, %v1070_v49 }
 0x2e8   : > { %1776 = vmatpush.msrb.mxu3 %v4757_v2  ;;  %1420 = vmatmul.f32.vlgmr.msra.gmra.mxu0 %v4990_v48  ;;  %v952_v2 = vadd.f32 %v4888_v1, %v4853_v51  ;;  %v6891_v1 = vld [vmem:[#allocation27_spill] sm:$0xff] }
 0x2e9   : > { %1617 = vmatpush.msrb.mxu0 %v4760_v8  ;;  %1674 = vmatpush.msrb.mxu1 %v4797_v11  ;;  %v1076_v8 = vld [vmem:[#allocation6 + $0x2b0] sm:$0xff]  ;;  %v5103_v35 = vsub.f32 %v1078_v54, %v5080_v24  ;;  %v6894_v51 = vld [vmem:[#allocation19_spill] sm:$0xff] }
 0x2ea   : > { %1727 = vmatpush.msrb.mxu2 %v6875_v56  ;;  %1778 = vmatpush.msrb.mxu3 %v4768_v25  ;;  %v5078_v25 = vsub.f32 %v1082_v39, %v5056_v38  ;;  %v5092_v53 = vand.u32 4294901760, %v1076_v8  ;;  %v953_v60 = vadd.f32 %v952_v2, %v4924_v63  ;;  %v6881_v56 = vand.u32 4294901760, %v4880_v57 }
 0x2eb   : > { %1620 = vmatpush.msrb.mxu0 %v4771_v30  ;;  %1676 = vmatpush.msrb.mxu1 %v4811_v13  ;;  %v935_v30 = vadd.f32 %v934_v41, %v4969_v37  ;;  %v6744_v39 = vand.u32 4294901760, %v5103_v35 }
 0x2ec   : > { %1731 = vmatpush.msrb.mxu2 %v6876_v26  ;;  %1780 = vmatpush.msrb.mxu3 %v4784_v10  ;;  %v5090_v10 = vsub.f32 %v1080_v3, %v5066_v34  ;;  %v954_v4 = vadd.f32 %v953_v60, %v4932_v32  ;;  %v5118_v22 = vsub.f32 %v1076_v8, %v5092_v53  ;;  %v1068_v3 = vld [vmem:[#allocation6 + $0x270] sm:$0xff] }
 0x2ed   : > { %1623 = vmatpush.msrb.mxu0 %v4787_v5  ;;  %1678 = vmatpush.msrb.mxu1 %v4819_v27  ;;  %v1072_v5 = vld [vmem:[#allocation6 + $0x290] sm:$0xff]  ;;  %v936_v42 = vadd.f32 %v935_v30, %v4981_v28  ;;  %v5150_v26 = vand.u32 4294901760, %v1068_v3  ;;  %v1864_v60 = vsub.f32 %v5103_v35, %v6744_v39 }
 0x2ee   : > { %1735 = vmatpush.msrb.mxu2 %v6877_v0  ;;  %1782 = vmatpush.msrb.mxu3 %v4797_v11  ;;  %v6747_v11 = vand.u32 4294901760, %v5078_v25  ;;  %v6745_v55 = vand.u32 4294901760, %v5090_v10  ;;  %v955_v54 = vrot.slane %v954_v4, 4  ;;  %v6742_v8 = vand.u32 4294901760, %v5118_v22  ;;  %v6882_v0 = vld [vmem:[#allocation16_spill] sm:$0xff] }
 0x2ef   : > { %1626 = vmatpush.msrb.mxu0 %v4809_v7  ;;  %1680 = vmatpush.msrb.mxu1 %v4821_v31  ;;  %v5108_v7 = vand.u32 4294901760, %v1074_v52  ;;  %v937_v20 = vrot.slane %v936_v42, 4 }
 0x2f0   : > { %1739 = vmatpush.msrb.mxu2 %v6878_v17  ;;  %1784 = vmatpush.msrb.mxu3 %v4811_v13  ;;  %v1846_v13 = vsub.f32 %v5064_v18, %v6748_v43  ;;  %v1858_v2 = vsub.f32 %v5090_v10, %v6745_v55  ;;  %v1064_v17 = vld [vmem:[#allocation6 + $0x250] sm:$0xff] }
 0x2f1   : > { %1629 = vmatpush.msrb.mxu0 %v4814_v16  ;;  %1682 = vmatpush.msrb.mxu1 %v4829_v40  ;;  %v5120_v16 = vand.u32 4294901760, %v1072_v5  ;;  %v938_v30 = vadd.f32 %v937_v20, %v936_v42 }
 0x2f2   : > { %1743 = vmatpush.msrb.mxu2 %v6879_v19  ;;  %1786 = vmatpush.msrb.mxu3 %v4819_v27  ;;  %v1852_v27 = vsub.f32 %v5078_v25, %v6747_v11  ;;  %v956_v19 = vadd.f32 %v955_v54, %v954_v4  ;;  %v1859_v20 = vand.u32 4294901760, %v1858_v2  ;;  %v5177_v4 = vand.u32 4294901760, %v1064_v17  ;;  %v1060_v2 = vld [vmem:[#allocation6 + $0x230] sm:$0xff] }
 0x2f3   : > { %1632 = vmatpush.msrb.mxu0 %v4827_v6  ;;  %1684 = vmatpush.msrb.mxu1 %v4850_v23  ;;  %v5136_v6 = vsub.f32 %v1074_v52, %v5108_v7  ;;  %v5146_v41 = vsub.f32 %v1072_v5, %v5120_v16  ;;  %v5159_v5 = vsub.f32 %v1070_v49, %v5131_v33  ;;  %v939_v54 = vrot.slane %v938_v30, 2 }
 0x2f4   : > { %1747 = vmatpush.msrb.mxu2 %v6880_v62  ;;  %1788 = vmatpush.msrb.mxu3 %v4821_v31  ;;  %v1847_v31 = vand.u32 4294901760, %v1846_v13  ;;  %v1853_v52 = vand.u32 4294901760, %v1852_v27  ;;  %v1870_v49 = vsub.f32 %v5118_v22, %v6742_v8  ;;  %v1062_v27 = vld [vmem:[#allocation6 + $0x240] sm:$0xff] }
 0x2f5   : > { %1635 = vmatpush.msrb.mxu0 %v4835_v45  ;;  %1686 = vmatpush.msrb.mxu1 %v4867_v47  ;;  %v1066_v45 = vld [vmem:[#allocation6 + $0x260] sm:$0xff]  ;;  %v6743_v62 = vand.u32 4294901760, %v5146_v41  ;;  %v940_v8 = vadd.f32 %v939_v54, %v938_v30 }
 0x2f6   : > { %1751 = vmatpush.msrb.mxu2 %v6881_v56  ;;  %1790 = vmatpush.msrb.mxu3 %v4829_v40  ;;  %v6883_v40 = vand.u32 4294901760, %v6882_v0  ;;  %v5164_v42 = vand.u32 4294901760, %v1066_v45  ;;  %v1865_v56 = vand.u32 4294901760, %v1864_v60  ;;  %v1871_v60 = vand.u32 4294901760, %v1870_v49  ;;  %v1056_v49 = vld [vmem:[#allocation6 + $0x210] sm:$0xff]  ;;  %v1054_v54 = vld [vmem:[#allocation6 + $0x200] sm:$0xff] }
 0x2f7   : > { %1638 = vmatpush.msrb.mxu0 %v4840_v36  ;;  %1688 = vmatpush.msrb.mxu1 %v4902_v46  ;;  %v6741_v36 = vand.u32 4294901760, %v5136_v6  ;;  %v941_v43 = vrot.slane %v940_v8, 1  ;;  %v5241_v63 = vand.u32 4294901760, %v1054_v54 }
 0x2f8   : > { %1755 = vmatpush.msrb.mxu2 %v6883_v40  ;;  %1792 = vmatpush.msrb.mxu3 %v4850_v23  ;;  %v6884_v23 = vld [vmem:[#allocation17_spill] sm:$0xff]  ;;  %v5189_v40 = vand.u32 4294901760, %v1062_v27 }
 0x2f9   : > { %1692 = vmatmul.f32.vlgmr.msrb.gmra.mxu1 %v5007_v58  ;;  %1641 = vmatpush.msrb.mxu0 %v4861_v44  ;;  %v6885_v13 = vand.u32 4294901760, %v6884_v23  ;;  %v5175_v44 = vsub.f32 %v1068_v3, %v5150_v26  ;;  %v5187_v3 = vsub.f32 %v1066_v45, %v5164_v42  ;;  %v5199_v45 = vsub.f32 %v1064_v17, %v5177_v4  ;;  %v1102_v58 = vld [vmem:[#allocation6 + $0x380] sm:$0xff] }
 0x2fa   : > { %1848 = vmatpush.msra.mxu1 %v1847_v31  ;;  %1794 = vmatpush.msrb.mxu3 %v4867_v47  ;;  %v6746_v31 = vand.u32 4294901760, %v5159_v5  ;;  %v1876_v47 = vsub.f32 %v5136_v6, %v6741_v36  ;;  %v5201_v36 = vand.u32 4294901760, %v1060_v2  ;;  %v5211_v17 = vsub.f32 %v1062_v27, %v5189_v40 }
 0x2fb   : > { %1759 = vmatpush.msrb.mxu2 %v6885_v13  ;;  %1644 = vmatpush.msrb.mxu0 %v4880_v57  ;;  %v1882_v57 = vsub.f32 %v5146_v41, %v6743_v62  ;;  %v1058_v13 = vld [vmem:[#allocation6 + $0x220] sm:$0xff] }
 0x2fc   : > { %1761 = vmatmul.f32.vlgmr.msrb.gmra.mxu2 %v4992_v59  ;;  %1854 = vmatpush.msra.mxu1 %v1853_v52  ;;  %v957_v52 = vrot.slane %v956_v19, 2  ;;  %v1877_v62 = vand.u32 4294901760, %v1876_v47  ;;  %v5213_v55 = vand.u32 4294901760, %v1058_v13  ;;  %v5223_v27 = vsub.f32 %v1060_v2, %v5201_v36 }
 0x2fd   : > { %1946 = vmatpush.msra.mxu2 %v5064_v18  ;;  %1796 = vmatpush.msrb.mxu3 %v4902_v46  ;;  %v6749_v46 = vand.u32 4294901760, %v5175_v44  ;;  %v6890_v2 = vand.u32 4294901760, %v5187_v3 }
 0x2fe   : > { %1798 = vmatmul.f32.vlgmr.msrb.gmra.mxu3 %v4992_v59  ;;  %1860 = vmatpush.msra.mxu1 %v1859_v20  ;;  %v1888_v20 = vsub.f32 %v5159_v5, %v6746_v31  ;;  %v958_v30 = vadd.f32 %v957_v52, %v956_v19  ;;  %v5225_v31 = vand.u32 4294901760, %v1056_v49  ;;  %v6886_v19 = vld [vmem:[#allocation13_spill] sm:$0xff]  ;;  %v5239_v32 = vsub.f32 %v1058_v13, %v5213_v55 }
 0x2ff   : > { %1949 = vmatpush.msra.mxu2 %v5078_v25  ;;  %1999 = vmatpush.msra.mxu3 %v5049_v29  ;;  %v5264_v13 = vsub.f32 %v1054_v54, %v5241_v63 }
 0x300   : > { %1647 = vmatpush.msrb.mxu0 %v6882_v0  ;;  %1866 = vmatpush.msra.mxu1 %v1865_v56  ;;  %v1883_v0 = vand.u32 4294901760, %v1882_v57  ;;  %v1894_v56 = vsub.f32 %v5175_v44, %v6749_v46  ;;  %v6889_v57 = vld [vmem:[#allocation25_spill] sm:$0xff]  ;;  %v1889_v39 = vand.u32 4294901760, %v1888_v20  ;;  %v1900_v46 = vsub.f32 %v5187_v3, %v6890_v2 }
 0x301   : > { %1952 = vmatpush.msra.mxu2 %v5090_v10  ;;  %2001 = vmatpush.msra.mxu3 %v5056_v38  ;;  %v6892_v20 = vand.u32 4294901760, %v5199_v45  ;;  %v5252_v47 = vsub.f32 %v1056_v49, %v5225_v31  ;;  %6897 = vst [vmem:[#allocation17_spill] sm:$0xff] %v5264_v13 }
 0x302   : > { %1650 = vmatpush.msrb.mxu0 %v6884_v23  ;;  %1872 = vmatpush.msra.mxu1 %v1871_v60  ;;  %v6887_v23 = vld [vmem:[#allocation15_spill] sm:$0xff] }
 0x303   : > { %1653 = vmatmul.f32.vlgmr.msrb.gmra.mxu0 %v4999_v21  ;;  %1955 = vmatpush.msra.mxu2 %v5103_v35  ;;  %v961_v52 = vadd.f32 %v6887_v23, %v6886_v19  ;;  %v6888_v60 = vld [vmem:[#allocation23_spill] sm:$0xff]  ;;  %v959_v23 = vrot.slane %v958_v30, 1  ;;  %v1906_v2 = vsub.f32 %v5199_v45, %v6892_v20  ;;  %6893 = vst [vmem:[#allocation16_spill] sm:$0xff] %v5252_v47 }
 0x304   : > { %v943_v11 = vadd.f32 %v6889_v57, %v6888_v60  ;;  %1803 = vmatpush.msra.mxu0 %v5049_v29  ;;  %2003 = vmatpush.msra.mxu3 %v5066_v34 }
 0x305   : > { %1878 = vmatpush.msra.mxu1 %v1877_v62  ;;  %1958 = vmatpush.msra.mxu2 %v5118_v22  ;;  %v1895_v62 = vand.u32 4294901760, %v1894_v56  ;;  %v962_v28 = vadd.f32 %v961_v52, %v6894_v51  ;;  %v6896_v56 = vand.u32 4294901760, %v5211_v17  ;;  %v6899_v52 = vand.u32 4294901760, %v5223_v27 }
 0x306   : > { %v944_v19 = vadd.f32 %v943_v11, %v6891_v1  ;;  %1805 = vmatpush.msra.mxu0 %v5056_v38  ;;  %2005 = vmatpush.msra.mxu3 %v5080_v24  ;;  %v942_v11 = vadd.f32 %v941_v43, %v940_v8  ;;  %v6895_v1 = vld [vmem:[#allocation29_spill] sm:$0xff]  ;;  %v960_v43 = vadd.f32 %v959_v23, %v958_v30  ;;  %v1116_v8 = vld [vmem:[#allocation6 + $0x3f0] sm:$0xff]  ;;  %v1114_v30 = vld [vmem:[#allocation6 + $0x3e0] sm:$0xff]  ;;  %v6900_v23 = vand.u32 4294901760, %v5239_v32 }
 0x307   : > { %1884 = vmatpush.msra.mxu1 %v1883_v0  ;;  %1961 = vmatpush.msra.mxu2 %v5136_v6  ;;  %v1901_v0 = vand.u32 4294901760, %v1900_v46  ;;  %v1912_v20 = vsub.f32 %v5211_v17, %v6896_v56  ;;  %v1907_v46 = vand.u32 4294901760, %v1906_v2  ;;  %v1918_v56 = vsub.f32 %v5223_v27, %v6899_v52 }
 0x308   : > { %v945_v37 = vadd.f32 %v944_v19, %v6895_v1  ;;  %1807 = vmatpush.msra.mxu0 %v5066_v34  ;;  %2007 = vmatpush.msra.mxu3 %v5092_v53  ;;  %v6898_v19 = vld [vmem:[#allocation21_spill] sm:$0xff]  ;;  %v970_v51 = vmul.f32 0.03125, %v942_v11  ;;  %v5281_v52 = vand.u32 4294901760, %v1116_v8  ;;  %v972_v49 = vmul.f32 0.03125, %v960_v43 }
 0x309   : > { %1890 = vmatpush.msra.mxu1 %v1889_v39  ;;  %1964 = vmatpush.msra.mxu2 %v5146_v41  ;;  %v963_v39 = vadd.f32 %v962_v28, %v6898_v19  ;;  %v1913_v28 = vand.u32 4294901760, %v1912_v20  ;;  %v6901_v20 = vand.u32 4294901760, %v5252_v47  ;;  %v5289_v1 = vand.u32 4294901760, %v1114_v30 }
 0x30a   : > { %1809 = vmatpush.msra.mxu0 %v5080_v24  ;;  %2009 = vmatpush.msra.mxu3 %v5108_v7  ;;  %v946_v54 = vrot.slane %v945_v37, 4  ;;  %v986_v2 = vsel %vm422_vm3, %v972_v49, %v970_v51  ;;  %v1108_v49 = vld [vmem:[#allocation6 + $0x3b0] sm:$0xff] }
 0x30b   : > { %1896 = vmatpush.msra.mxu1 %v1895_v62  ;;  %1967 = vmatpush.msra.mxu2 %v5159_v5  ;;  %v1924_v62 = vsub.f32 %v5239_v32, %v6900_v23  ;;  %v964_v11 = vrot.slane %v963_v39, 4  ;;  %v1930_v19 = vsub.f32 %v5252_v47, %v6901_v20  ;;  %v1112_v23 = vld [vmem:[#allocation6 + $0x3d0] sm:$0xff]  ;;  %v5299_v20 = vsub.f32 %v1116_v8, %v5281_v52 }
 0x30c   : > { %1811 = vmatpush.msra.mxu0 %v5092_v53  ;;  %2011 = vmatpush.msra.mxu3 %v5120_v16  ;;  %v947_v43 = vadd.f32 %v946_v54, %v945_v37  ;;  %v5303_v51 = vand.u32 4294901760, %v1112_v23  ;;  %v5305_v54 = vand.u32 4294901760, %v986_v2  ;;  %v5313_v8 = vand.u32 4294901760, %v1110_v50 }
 0x30d   : > { %1902 = vmatpush.msra.mxu1 %v1901_v0  ;;  %1970 = vmatpush.msra.mxu2 %v5175_v44  ;;  %v1919_v0 = vand.u32 4294901760, %v1918_v56  ;;  %v6902_v56 = vand.u32 4294901760, %v5264_v13  ;;  %v965_v37 = vadd.f32 %v964_v11, %v963_v39  ;;  %v1104_v11 = vld [vmem:[#allocation6 + $0x390] sm:$0xff] }
 0x30e   : > { %1813 = vmatpush.msra.mxu0 %v5108_v7  ;;  %2013 = vmatpush.msra.mxu3 %v5131_v33  ;;  %6903 = vst [vmem:[#allocation38_spill] sm:$0xff] %v5305_v54  ;;  %v948_v60 = vrot.slane %v947_v43, 2  ;;  %v5334_v21 = vsub.f32 %v1110_v50, %v5313_v8  ;;  %v5346_v50 = vand.u32 4294901760, %v1104_v11 }
 0x30f   : > { %1908 = vmatpush.msra.mxu1 %v1907_v46  ;;  %1973 = vmatpush.msra.mxu2 %v5187_v3  ;;  %v1925_v46 = vand.u32 4294901760, %v1924_v62  ;;  %v1936_v57 = vsub.f32 %v5264_v13, %v6902_v56  ;;  %v5309_v62 = vsub.f32 %v1114_v30, %v5289_v1  ;;  %v1106_v56 = vld [vmem:[#allocation6 + $0x3a0] sm:$0xff]  ;;  %v966_v30 = vrot.slane %v965_v37, 2 }
 0x310   : > { %1815 = vmatpush.msra.mxu0 %v5120_v16  ;;  %2015 = vmatpush.msra.mxu3 %v5150_v26  ;;  %v5329_v12 = vand.u32 4294901760, %v1106_v56  ;;  %6906 = vst [vmem:[#allocation41_spill] sm:$0xff] %v5334_v21 }
 0x311   : > { %1914 = vmatpush.msra.mxu1 %v1913_v28  ;;  %1976 = vmatpush.msra.mxu2 %v5199_v45  ;;  %v1931_v28 = vand.u32 4294901760, %v1930_v19  ;;  %v1937_v39 = vand.u32 4294901760, %v1936_v57  ;;  %v5322_v19 = vsub.f32 %v1112_v23, %v5303_v51  ;;  %v949_v23 = vadd.f32 %v948_v60, %v947_v43 }
 0x312   : > { %1817 = vmatpush.msra.mxu0 %v5131_v33  ;;  %2017 = vmatpush.msra.mxu3 %v5164_v42  ;;  %v967_v60 = vadd.f32 %v966_v30, %v965_v37  ;;  %v5362_v30 = vand.u32 4294901760, %v1102_v58  ;;  %v5373_v37 = vsub.f32 %v1104_v11, %v5346_v50  ;;  %v6912_v11 = vand.u32 4294901760, %v5334_v21 }
 0x313   : > { %1920 = vmatpush.msra.mxu1 %v1919_v0  ;;  %1979 = vmatpush.msra.mxu2 %v5211_v17  ;;  %v5317_v0 = vand.u32 4294901760, %v1108_v49  ;;  %6904 = vst [vmem:[#allocation39_spill] sm:$0xff] %v5322_v19  ;;  %v950_v59 = vrot.slane %v949_v23, 1 }
 0x314   : > { %1819 = vmatpush.msra.mxu0 %v5150_v26  ;;  %2019 = vmatpush.msra.mxu3 %v5177_v4  ;;  %v968_v48 = vrot.slane %v967_v60, 1 }
 0x315   : > { %1926 = vmatpush.msra.mxu1 %v1925_v46  ;;  %1982 = vmatpush.msra.mxu2 %v5223_v27  ;;  %v5326_v46 = vsub.f32 %v986_v2, %v5305_v54  ;;  %v5341_v57 = vsub.f32 %v1108_v49, %v5317_v0  ;;  %v6910_v49 = vand.u32 4294901760, %v5309_v62 }
 0x316   : > { %1821 = vmatpush.msra.mxu0 %v5164_v42  ;;  %2021 = vmatpush.msra.mxu3 %v5189_v40 }
 0x317   : > { %1932 = vmatpush.msra.mxu1 %v1931_v28  ;;  %1985 = vmatpush.msra.mxu2 %v5239_v32  ;;  %6905 = vst [vmem:[#allocation40_spill] sm:$0xff] %v5326_v46  ;;  %v6907_v28 = vand.u32 4294901760, %v5299_v20  ;;  %v5351_v43 = vand.u32 4294901760, %v5326_v46 }
 0x318   : > { %1823 = vmatpush.msra.mxu0 %v5177_v4  ;;  %2023 = vmatpush.msra.mxu3 %v5201_v36  ;;  %6908 = vst [vmem:[#allocation42_spill] sm:$0xff] %v5341_v57 }
 0x319   : > { %1938 = vmatpush.msra.mxu1 %v1937_v39  ;;  %1988 = vmatpush.msra.mxu2 %v5252_v47  ;;  %v2187_v2 = vsub.f32 %v5299_v20, %v6907_v28  ;;  %6909 = vst [vmem:[#allocation43_spill] sm:$0xff] %v5351_v43  ;;  %v2193_v39 = vsub.f32 %v5309_v62, %v6910_v49  ;;  %v5390_v47 = vand.u32 4294901760, %v1098_v9  ;;  %v6913_v49 = vand.u32 4294901760, %v5341_v57 }
 0x31a   : > { %1825 = vmatpush.msra.mxu0 %v5189_v40  ;;  %2025 = vmatpush.msra.mxu3 %v5213_v55  ;;  %v5357_v28 = vsub.f32 %v1106_v56, %v5329_v12 }
 0x31b   : > { %1940 = vmatmul.f32.vlgmr.msra.gmra.mxu1 %v5305_v54  ;;  %1991 = vmatpush.msra.mxu2 %v5264_v13  ;;  %v2188_v61 = vand.u32 4294901760, %v2187_v2  ;;  %v2194_v2 = vand.u32 4294901760, %v2193_v39  ;;  %v1096_v13 = vld [vmem:[#allocation6 + $0x350] sm:$0xff]  ;;  %v951_v39 = vadd.f32 %v950_v59, %v949_v23  ;;  %v969_v59 = vadd.f32 %v968_v48, %v967_v60 }
 0x31c   : > { %2107 = vmatpush.msrb.mxu1 %v5049_v29  ;;  %1827 = vmatpush.msra.mxu0 %v5201_v36  ;;  %v6911_v29 = vand.u32 4294901760, %v5322_v19  ;;  %v6915_v23 = vand.u32 4294901760, %v5357_v28 }
 0x31d   : > { %2027 = vmatpush.msra.mxu3 %v5225_v31  ;;  %1994 = vmatmul.f32.vlgmr.msra.gmra.mxu2 %v5326_v46  ;;  %v971_v60 = vmul.f32 0.03125, %v951_v39 }
 0x31e   : > { %2109 = vmatpush.msrb.mxu1 %v5056_v38  ;;  %2144 = vmatpush.msrb.mxu2 %v5281_v52  ;;  %v2199_v56 = vsub.f32 %v5322_v19, %v6911_v29  ;;  %v1837_v38 = vsub.f32 %v5326_v46, %v5351_v43  ;;  %v2205_v29 = vsub.f32 %v5334_v21, %v6912_v11  ;;  %v6778_v11 = vand.u32 4294901760, %v5373_v37 }
 0x31f   : > { %1829 = vmatpush.msra.mxu0 %v5213_v55  ;;  %2029 = vmatpush.msra.mxu3 %v5241_v63  ;;  %v5388_v19 = vsub.f32 %v1102_v58, %v5362_v30  ;;  %v2211_v46 = vsub.f32 %v5341_v57, %v6913_v49  ;;  %v5400_v58 = vsub.f32 %v1100_v15, %v5375_v14  ;;  %v5402_v21 = vand.u32 4294901760, %v1096_v13  ;;  %v1092_v57 = vld [vmem:[#allocation6 + $0x330] sm:$0xff] }
 0x320   : > { %2033 = vmatmul.f32.vlgmr.msra.gmra.mxu3 %v5351_v43  ;;  %2111 = vmatpush.msrb.mxu1 %v5066_v34  ;;  %v1094_v43 = vld [vmem:[#allocation6 + $0x340] sm:$0xff]  ;;  %v2200_v34 = vand.u32 4294901760, %v2199_v56  ;;  %v2217_v49 = vsub.f32 %v5357_v28, %v6915_v23  ;;  %v5414_v56 = vsub.f32 %v1098_v9, %v5390_v47  ;;  %v6916_v23 = vand.u32 4294901760, %v5064_v18 }
 0x321   : > { %2146 = vmatpush.msrb.mxu2 %v5289_v1  ;;  %2189 = vmatpush.msrb.mxu3 %v2188_v61  ;;  %v5405_v61 = vand.u32 4294901760, %v1837_v38  ;;  %v5416_v48 = vand.u32 4294901760, %v1094_v43  ;;  %v1090_v38 = vld [vmem:[#allocation6 + $0x320] sm:$0xff]  ;;  %v5429_v39 = vand.u32 4294901760, %v1092_v57  ;;  %v973_v15 = vmul.f32 0.03125, %v969_v59  ;;  %v1088_v59 = vld [vmem:[#allocation6 + $0x310] sm:$0xff] }
 0x322   : > { %1831 = vmatpush.msra.mxu0 %v5225_v31  ;;  %2113 = vmatpush.msrb.mxu1 %v5080_v24  ;;  %v2206_v24 = vand.u32 4294901760, %v2205_v29  ;;  %v5427_v29 = vsub.f32 %v1096_v13, %v5402_v21  ;;  %v6917_v18 = vand.u32 4294901760, %v5078_v25  ;;  %v5442_v9 = vand.u32 4294901760, %v1090_v38 }
 0x323   : > { %2148 = vmatpush.msrb.mxu2 %v5303_v51  ;;  %2195 = vmatpush.msrb.mxu3 %v2194_v2  ;;  %6914 = vst [vmem:[#allocation44_spill] sm:$0xff] %v5405_v61  ;;  %v2212_v2 = vand.u32 4294901760, %v2211_v46  ;;  %v2218_v46 = vand.u32 4294901760, %v2217_v49  ;;  %v5440_v13 = vsub.f32 %v1094_v43, %v5416_v48  ;;  %v6919_v25 = vand.u32 4294901760, %v5090_v10 }
 0x324   : > { %1833 = vmatpush.msra.mxu0 %v5241_v63  ;;  %2115 = vmatpush.msrb.mxu1 %v5092_v53  ;;  %v2223_v53 = vsub.f32 %v5373_v37, %v6778_v11  ;;  %v2246_v43 = vand.u32 4294901760, %v5427_v29  ;;  %v1086_v11 = vld [vmem:[#allocation6 + $0x300] sm:$0xff]  ;;  %v6921_v10 = vand.u32 4294901760, %v5103_v35  ;;  %v6924_v35 = vand.u32 4294901760, %v5118_v22 }
 0x325   : > { %1839 = vmatmul.f32.vlgmr.msra.gmra.mxu0 %v5405_v61  ;;  %2150 = vmatpush.msrb.mxu2 %v5313_v8  ;;  %v1029_v61 = vld [vmem:[#allocation6 + $0x138] sm:$0xff] }
 0x326   : > { %2040 = vmatpush.msrb.mxu0 %v6916_v23  ;;  %2201 = vmatpush.msrb.mxu3 %v2200_v34  ;;  %v6918_v34 = vand.u32 4294901760, %v5388_v19  ;;  %v2224_v49 = vand.u32 4294901760, %v2223_v53  ;;  %v2252_v53 = vand.u32 4294901760, %v5440_v13 }
 0x327   : > { %2117 = vmatpush.msrb.mxu1 %v5108_v7  ;;  %2152 = vmatpush.msrb.mxu2 %v5317_v0  ;;  %v987_v7 = vsel %vm422_vm3, %v973_v15, %v971_v60  ;;  %v6922_v60 = vand.u32 4294901760, %v5414_v56 }
 0x328   : > { %2044 = vmatpush.msrb.mxu0 %v6917_v18  ;;  %2207 = vmatpush.msrb.mxu3 %v2206_v24  ;;  %v2229_v23 = vsub.f32 %v5388_v19, %v6918_v34  ;;  %v6920_v24 = vand.u32 4294901760, %v5400_v58  ;;  %v5454_v34 = vsub.f32 %v1092_v57, %v5429_v39  ;;  %v5467_v57 = vsub.f32 %v1090_v38, %v5442_v9 }
 0x329   : > { %2119 = vmatpush.msrb.mxu1 %v5120_v16  ;;  %2154 = vmatpush.msrb.mxu2 %v5329_v12  ;;  %v5458_v16 = vand.u32 4294901760, %v1088_v59 }
 0x32a   : > { %2048 = vmatpush.msrb.mxu0 %v6919_v25  ;;  %2213 = vmatpush.msrb.mxu3 %v2212_v2  ;;  %v2235_v18 = vsub.f32 %v5400_v58, %v6920_v24  ;;  %v2230_v15 = vand.u32 4294901760, %v2229_v23  ;;  %v2241_v2 = vsub.f32 %v5414_v56, %v6922_v60  ;;  %v5469_v25 = vand.u32 4294901760, %v987_v7 }
 0x32b   : > { %2121 = vmatpush.msrb.mxu1 %v5131_v33  ;;  %2156 = vmatpush.msrb.mxu2 %v5346_v50  ;;  %v5473_v33 = vand.u32 4294901760, %v1086_v11  ;;  %v2247_v23 = vsub.f32 %v5427_v29, %v2246_v43  ;;  %v2258_v38 = vand.u32 4294901760, %v5454_v34  ;;  %v6925_v24 = vand.u32 4294901760, %v5136_v6 }
 0x32c   : > { %2052 = vmatpush.msrb.mxu0 %v6921_v10  ;;  %2219 = vmatpush.msrb.mxu3 %v2218_v46  ;;  %6923 = vst [vmem:[#allocation45_spill] sm:$0xff] %v5469_v25  ;;  %v2236_v46 = vand.u32 4294901760, %v2235_v18  ;;  %v2242_v22 = vand.u32 4294901760, %v2241_v2  ;;  %v2264_v18 = vand.u32 4294901760, %v5467_v57  ;;  %v6927_v6 = vand.u32 4294901760, %v5146_v41 }
 0x32d   : > { %2123 = vmatpush.msrb.mxu1 %v5150_v26  ;;  %2158 = vmatpush.msrb.mxu2 %v5362_v30  ;;  %v5484_v26 = vsub.f32 %v1088_v59, %v5458_v16  ;;  %v5498_v59 = vsub.f32 %v1086_v11, %v5473_v33  ;;  %v2248_v10 = vand.u32 4294901760, %v2247_v23  ;;  %v6930_v2 = vand.u32 4294901760, %v5175_v44 }
 0x32e   : > { %2056 = vmatpush.msrb.mxu0 %v6924_v35  ;;  %2225 = vmatpush.msrb.mxu3 %v2224_v49  ;;  %v2253_v49 = vsub.f32 %v5440_v13, %v2252_v53  ;;  %v2265_v41 = vsub.f32 %v5467_v57, %v2264_v18  ;;  %v6931_v35 = vand.u32 4294901760, %v5187_v3  ;;  %v6932_v23 = vand.u32 4294901760, %v5199_v45 }
 0x32f   : > { %2125 = vmatpush.msrb.mxu1 %v5164_v42  ;;  %2160 = vmatpush.msrb.mxu2 %v5375_v14  ;;  %v5495_v42 = vsub.f32 %v987_v7, %v5469_v25  ;;  %v6928_v7 = vand.u32 4294901760, %v5159_v5  ;;  %v6935_v45 = vand.u32 4294901760, %v5223_v27  ;;  %v6939_v27 = vld [vmem:[#allocation16_spill] sm:$0xff] }
 0x330   : > { %2060 = vmatpush.msrb.mxu0 %v6925_v24  ;;  %2231 = vmatpush.msrb.mxu3 %v2230_v15  ;;  %v2259_v15 = vsub.f32 %v5454_v34, %v2258_v38  ;;  %v2254_v11 = vand.u32 4294901760, %v2253_v49  ;;  %v6938_v49 = vand.u32 4294901760, %v5309_v62 }
 0x331   : > { %2127 = vmatpush.msrb.mxu1 %v5177_v4  ;;  %2162 = vmatpush.msrb.mxu2 %v5390_v47  ;;  %6926 = vst [vmem:[#allocation46_spill] sm:$0xff] %v5495_v42  ;;  %v2270_v4 = vand.u32 4294901760, %v5484_v26  ;;  %v5516_v60 = vand.u32 4294901760, %v5495_v42 }
 0x332   : > { %2064 = vmatpush.msrb.mxu0 %v6927_v6  ;;  %2237 = vmatpush.msrb.mxu3 %v2236_v46  ;;  %v2260_v5 = vand.u32 4294901760, %v2259_v15  ;;  %v2266_v46 = vand.u32 4294901760, %v2265_v41  ;;  %v6940_v6 = vand.u32 4294901760, %v6939_v27  ;;  %v1005_v27 = vld [vmem:[#allocation6 + $0x78] sm:$0xff] }
 0x333   : > { %2129 = vmatpush.msrb.mxu1 %v5189_v40  ;;  %2164 = vmatpush.msrb.mxu2 %v5402_v21  ;;  %6929 = vst [vmem:[#allocation47_spill] sm:$0xff] %v5516_v60  ;;  %v2276_v40 = vand.u32 4294901760, %v5498_v59  ;;  %v2178_v44 = vsub.f32 %v5495_v42, %v5516_v60 }
 0x334   : > { %2068 = vmatpush.msrb.mxu0 %v6928_v7  ;;  %2243 = vmatpush.msrb.mxu3 %v2242_v22 }
 0x335   : > { %2131 = vmatpush.msrb.mxu1 %v5201_v36  ;;  %2166 = vmatpush.msrb.mxu2 %v5416_v48  ;;  %v2271_v36 = vsub.f32 %v5484_v26, %v2270_v4  ;;  %v5543_v24 = vand.u32 4294901760, %v2178_v44 }
 0x336   : > { %2072 = vmatpush.msrb.mxu0 %v6930_v2  ;;  %2249 = vmatpush.msrb.mxu3 %v2248_v10  ;;  %v6941_v10 = vld [vmem:[#allocation39_spill] sm:$0xff] }
 0x337   : > { %2133 = vmatpush.msrb.mxu1 %v5213_v55  ;;  %2168 = vmatpush.msrb.mxu2 %v5429_v39  ;;  %v2277_v55 = vsub.f32 %v5498_v59, %v2276_v40  ;;  %v2272_v3 = vand.u32 4294901760, %v2271_v36  ;;  %6934 = vst [vmem:[#allocation48_spill] sm:$0xff] %v5543_v24  ;;  %v6942_v15 = vand.u32 4294901760, %v6941_v10  ;;  %v1019_v36 = vld [vmem:[#allocation6 + $0xe8] sm:$0xff] }
 0x338   : > { %2076 = vmatpush.msrb.mxu0 %v6931_v35  ;;  %2255 = vmatpush.msrb.mxu3 %v2254_v11  ;;  %v6945_v11 = vld [vmem:[#allocation41_spill] sm:$0xff]  ;;  %v6951_v35 = vand.u32 4294901760, %v5388_v19 }
 0x339   : > { %2135 = vmatpush.msrb.mxu1 %v5225_v31  ;;  %2170 = vmatpush.msrb.mxu2 %v5442_v9  ;;  %v6933_v31 = vand.u32 4294901760, %v5211_v17  ;;  %v2278_v22 = vand.u32 4294901760, %v2277_v55  ;;  %v6937_v17 = vand.u32 4294901760, %v5239_v32  ;;  %v6943_v32 = vld [vmem:[#allocation17_spill] sm:$0xff]  ;;  %v6946_v41 = vand.u32 4294901760, %v6945_v11  ;;  %v1013_v55 = vld [vmem:[#allocation6 + $0xb8] sm:$0xff] }
 0x33a   : > { %2080 = vmatpush.msrb.mxu0 %v6932_v23  ;;  %2261 = vmatpush.msrb.mxu3 %v2260_v5  ;;  %v6944_v7 = vand.u32 4294901760, %v6943_v32  ;;  %v6949_v5 = vand.u32 4294901760, %v5357_v28 }
 0x33b   : > { %2137 = vmatpush.msrb.mxu1 %v5241_v63  ;;  %2172 = vmatpush.msrb.mxu2 %v5458_v16  ;;  %v6936_v63 = vand.u32 4294901760, %v5299_v20 }
 0x33c   : > { %2084 = vmatpush.msrb.mxu0 %v6933_v31  ;;  %2267 = vmatpush.msrb.mxu3 %v2266_v46 }
 0x33d   : > { %2139 = vmatmul.f32.vlgmr.msrb.gmra.mxu1 %v5305_v54  ;;  %2174 = vmatpush.msrb.mxu2 %v5473_v33 }
 0x33e   : > { %2340 = vmatpush.msra.mxu1 %v5281_v52  ;;  %2088 = vmatpush.msrb.mxu0 %v6935_v45  ;;  %v1009_v45 = vld [vmem:[#allocation6 + $0x98] sm:$0xff] }
 0x33f   : > { %2273 = vmatpush.msrb.mxu3 %v2272_v3  ;;  %2180 = vmatmul.f32.vlgmr.msrb.gmra.mxu2 %v5543_v24  ;;  %v1031_v24 = vld [vmem:[#allocation6 + $0x148] sm:$0xff] }
 0x340   : > { %2342 = vmatpush.msra.mxu1 %v5289_v1  ;;  %2381 = vmatpush.msra.mxu2 %v6936_v63 }
 0x341   : > { %2092 = vmatpush.msrb.mxu0 %v6937_v17  ;;  %2279 = vmatpush.msrb.mxu3 %v2278_v22  ;;  %v1011_v22 = vld [vmem:[#allocation6 + $0xa8] sm:$0xff] }
 0x342   : > { %2281 = vmatmul.f32.vlgmr.msrb.gmra.mxu3 %v5469_v25  ;;  %2344 = vmatpush.msra.mxu1 %v5303_v51  ;;  %v5635_v63 = vand.u32 4294901760, %v1011_v22  ;;  %v1007_v17 = vld [vmem:[#allocation6 + $0x88] sm:$0xff] }
 0x343   : > { %2385 = vmatpush.msra.mxu2 %v6938_v49  ;;  %2448 = vmatpush.msra.mxu3 %v5281_v52  ;;  %v6947_v52 = vld [vmem:[#allocation42_spill] sm:$0xff]  ;;  %v5646_v49 = vand.u32 4294901760, %v1009_v45 }
 0x344   : > { %2096 = vmatpush.msrb.mxu0 %v6940_v6  ;;  %2346 = vmatpush.msra.mxu1 %v5313_v8  ;;  %v6948_v2 = vand.u32 4294901760, %v6947_v52 }
 0x345   : > { %2389 = vmatpush.msra.mxu2 %v6942_v15  ;;  %2450 = vmatpush.msra.mxu3 %v5289_v1  ;;  %v1021_v1 = vld [vmem:[#allocation6 + $0xf8] sm:$0xff]  ;;  %v1003_v15 = vld [vmem:[#allocation6 + $0x68] sm:$0xff] }
 0x346   : > { %2100 = vmatpush.msrb.mxu0 %v6944_v7  ;;  %2348 = vmatpush.msra.mxu1 %v5317_v0  ;;  %v1001_v7 = vld [vmem:[#allocation6 + $0x58] sm:$0xff] }
 0x347   : > { %2102 = vmatmul.f32.vlgmr.msrb.gmra.mxu0 %v5305_v54  ;;  %2393 = vmatpush.msra.mxu2 %v6946_v41  ;;  %v6963_v54 = vld [vmem:[#allocation36_spill] sm:$0xff] }
 0x348   : > { %2287 = vmatpush.msra.mxu0 %v5299_v20  ;;  %2452 = vmatpush.msra.mxu3 %v5303_v51  ;;  %v5583_v20 = vand.u32 4294901760, %v1021_v1  ;;  %v6950_v51 = vand.u32 4294901760, %v5373_v37 }
 0x349   : > { %2350 = vmatpush.msra.mxu1 %v5329_v12  ;;  %2397 = vmatpush.msra.mxu2 %v6948_v2  ;;  %v5703_v2 = vand.u32 4294901760, %v1001_v7 }
 0x34a   : > { %2290 = vmatpush.msra.mxu0 %v5309_v62  ;;  %2454 = vmatpush.msra.mxu3 %v5313_v8  ;;  %v1017_v62 = vld [vmem:[#allocation6 + $0xd8] sm:$0xff]  ;;  %v5590_v8 = vand.u32 4294901760, %v1019_v36  ;;  %v5598_v46 = vsub.f32 %v1021_v1, %v5583_v20 }
 0x34b   : > { %2352 = vmatpush.msra.mxu1 %v5346_v50  ;;  %2401 = vmatpush.msra.mxu2 %v6949_v5  ;;  %v5600_v44 = vand.u32 4294901760, %v1017_v62  ;;  %v997_v5 = vld [vmem:[#allocation6 + $0x38] sm:$0xff] }
 0x34c   : > { %2293 = vmatpush.msra.mxu0 %v6941_v10  ;;  %2456 = vmatpush.msra.mxu3 %v5317_v0  ;;  %v1015_v0 = vld [vmem:[#allocation6 + $0xc8] sm:$0xff]  ;;  %v5608_v23 = vsub.f32 %v1019_v36, %v5590_v8  ;;  %v6795_v31 = vand.u32 4294901760, %v5598_v46  ;;  %v5672_v10 = vsub.f32 %v1009_v45, %v5646_v49 }
 0x34d   : > { %2354 = vmatpush.msra.mxu1 %v5362_v30  ;;  %2405 = vmatpush.msra.mxu2 %v6950_v51  ;;  %v5610_v3 = vand.u32 4294901760, %v1015_v0 }
 0x34e   : > { %2296 = vmatpush.msra.mxu0 %v6945_v11  ;;  %2458 = vmatpush.msra.mxu3 %v5329_v12  ;;  %v6952_v12 = vand.u32 4294901760, %v5400_v58  ;;  %v5691_v11 = vand.u32 4294901760, %v1003_v15  ;;  %v6788_v41 = vand.u32 4294901760, %v5672_v10 }
 0x34f   : > { %2356 = vmatpush.msra.mxu1 %v5375_v14  ;;  %2409 = vmatpush.msra.mxu2 %v6951_v35 }
 0x350   : > { %2299 = vmatpush.msra.mxu0 %v6947_v52  ;;  %2460 = vmatpush.msra.mxu3 %v5346_v50  ;;  %v6953_v50 = vand.u32 4294901760, %v5414_v56  ;;  %v999_v52 = vld [vmem:[#allocation6 + $0x48] sm:$0xff]  ;;  %v5713_v36 = vsub.f32 %v1003_v15, %v5691_v11  ;;  %v2564_v35 = vsub.f32 %v5672_v10, %v6788_v41 }
 0x351   : > { %2358 = vmatpush.msra.mxu1 %v5390_v47  ;;  %2413 = vmatpush.msra.mxu2 %v6952_v12  ;;  %v5715_v51 = vand.u32 4294901760, %v999_v52  ;;  %v5727_v12 = vand.u32 4294901760, %v997_v5  ;;  %v1039_v41 = vld [vmem:[#allocation6 + $0x188] sm:$0xff] }
 0x352   : > { %2302 = vmatpush.msra.mxu0 %v5357_v28  ;;  %2462 = vmatpush.msra.mxu3 %v5362_v30  ;;  %v5619_v28 = vsub.f32 %v1017_v62, %v5600_v44  ;;  %v5621_v30 = vand.u32 4294901760, %v1013_v55  ;;  %v6785_v45 = vand.u32 4294901760, %v5713_v36 }
 0x353   : > { %2360 = vmatpush.msra.mxu1 %v5402_v21  ;;  %2417 = vmatpush.msra.mxu2 %v6953_v50  ;;  %v993_v50 = vld [vmem:[#allocation6 + $0x18] sm:$0xff] }
 0x354   : > { %2305 = vmatpush.msra.mxu0 %v5373_v37  ;;  %2464 = vmatpush.msra.mxu3 %v5375_v14  ;;  %v6794_v14 = vand.u32 4294901760, %v5608_v23  ;;  %v5630_v37 = vsub.f32 %v1015_v0, %v5610_v3  ;;  %v5725_v0 = vsub.f32 %v1001_v7, %v5703_v2  ;;  %v5751_v15 = vand.u32 4294901760, %v993_v50 }
 0x355   : > { %2362 = vmatpush.msra.mxu1 %v5416_v48  ;;  %2421 = vmatpush.msra.mxu2 %v2246_v43  ;;  %v5644_v43 = vsub.f32 %v1013_v55, %v5621_v30 }
 0x356   : > { %2308 = vmatpush.msra.mxu0 %v5388_v19  ;;  %2466 = vmatpush.msra.mxu3 %v5390_v47  ;;  %v2528_v47 = vsub.f32 %v5598_v46, %v6795_v31  ;;  %v6793_v19 = vand.u32 4294901760, %v5619_v28 }
 0x357   : > { %2364 = vmatpush.msra.mxu1 %v5429_v39  ;;  %2425 = vmatpush.msra.mxu2 %v2252_v53  ;;  %v5657_v53 = vand.u32 4294901760, %v1007_v17  ;;  %v6790_v6 = vand.u32 4294901760, %v5644_v43 }
 0x358   : > { %2311 = vmatpush.msra.mxu0 %v5400_v58  ;;  %2468 = vmatpush.msra.mxu3 %v5402_v21  ;;  %v2534_v21 = vsub.f32 %v5608_v23, %v6794_v14  ;;  %v6792_v58 = vand.u32 4294901760, %v5630_v37  ;;  %v6957_v14 = vld [vmem:[#allocation32_spill] sm:$0xff] }
 0x359   : > { %2366 = vmatpush.msra.mxu1 %v5442_v9  ;;  %2429 = vmatpush.msra.mxu2 %v2258_v38  ;;  %v5663_v38 = vsub.f32 %v1011_v22, %v5635_v63  ;;  %v5685_v32 = vsub.f32 %v1007_v17, %v5657_v53  ;;  %v5737_v17 = vsub.f32 %v999_v52, %v5715_v51 }
 0x35a   : > { %2314 = vmatpush.msra.mxu0 %v5414_v56  ;;  %2470 = vmatpush.msra.mxu3 %v5416_v48  ;;  %v2529_v56 = vand.u32 4294901760, %v2528_v47  ;;  %v2540_v48 = vsub.f32 %v5619_v28, %v6793_v19  ;;  %v5871_v19 = vand.u32 4294901760, %v1039_v41 }
 0x35b   : > { %2368 = vmatpush.msra.mxu1 %v5458_v16  ;;  %2433 = vmatpush.msra.mxu2 %v2264_v18  ;;  %v5677_v18 = vand.u32 4294901760, %v1005_v27  ;;  %v6787_v1 = vand.u32 4294901760, %v5685_v32 }
 0x35c   : > { %2317 = vmatpush.msra.mxu0 %v5427_v29  ;;  %2472 = vmatpush.msra.mxu3 %v5429_v39  ;;  %v2535_v29 = vand.u32 4294901760, %v2534_v21  ;;  %v2546_v39 = vsub.f32 %v5630_v37, %v6792_v58  ;;  %v991_v21 = vld [vmem:[#allocation6 + $0x8] sm:$0xff] }
 0x35d   : > { %2370 = vmatpush.msra.mxu1 %v5473_v33  ;;  %2437 = vmatpush.msra.mxu2 %v2270_v4  ;;  %v6789_v4 = vand.u32 4294901760, %v5663_v38  ;;  %v2570_v55 = vsub.f32 %v5685_v32, %v6787_v1  ;;  %v1041_v1 = vld [vmem:[#allocation6 + $0x198] sm:$0xff] }
 0x35e   : > { %2320 = vmatpush.msra.mxu0 %v5440_v13  ;;  %2474 = vmatpush.msra.mxu3 %v5442_v9  ;;  %v2541_v9 = vand.u32 4294901760, %v2540_v48  ;;  %v2552_v13 = vsub.f32 %v5644_v43, %v6790_v6  ;;  %v5749_v48 = vsub.f32 %v997_v5, %v5727_v12  ;;  %v5773_v5 = vsub.f32 %v993_v50, %v5751_v15 }
 0x35f   : > { %2374 = vmatmul.f32.vlgmr.msra.gmra.mxu1 %v5516_v60  ;;  %2441 = vmatpush.msra.mxu2 %v2276_v40  ;;  %v5701_v40 = vsub.f32 %v1005_v27, %v5677_v18  ;;  %v5858_v6 = vand.u32 4294901760, %v1041_v1 }
 0x360   : > { %2530 = vmatpush.msrb.mxu1 %v2529_v56  ;;  %2323 = vmatpush.msra.mxu0 %v5454_v34  ;;  %v2547_v34 = vand.u32 4294901760, %v2546_v39  ;;  %v2553_v62 = vand.u32 4294901760, %v2552_v13  ;;  %v6783_v56 = vand.u32 4294901760, %v5725_v0  ;;  %v6781_v39 = vand.u32 4294901760, %v5737_v17 }
 0x361   : > { %2476 = vmatpush.msra.mxu3 %v5458_v16  ;;  %2443 = vmatmul.f32.vlgmr.msra.gmra.mxu2 %v5469_v25  ;;  %v2558_v16 = vsub.f32 %v5663_v38, %v6789_v4  ;;  %v5882_v58 = vsub.f32 %v1041_v1, %v5858_v6  ;;  %v1033_v4 = vld [vmem:[#allocation6 + $0x158] sm:$0xff]  ;;  %v5895_v1 = vsub.f32 %v1039_v41, %v5871_v19 }
 0x362   : > { %2536 = vmatpush.msrb.mxu1 %v2535_v29  ;;  %2628 = vmatpush.msrb.mxu2 %v5598_v46  ;;  %v2582_v29 = vsub.f32 %v5713_v36, %v6785_v45  ;;  %v2588_v52 = vsub.f32 %v5725_v0, %v6783_v56  ;;  %v1045_v56 = vld [vmem:[#allocation6 + $0x1b8] sm:$0xff] }
 0x363   : > { %2326 = vmatpush.msra.mxu0 %v5467_v57  ;;  %2478 = vmatpush.msra.mxu3 %v5473_v33  ;;  %v995_v57 = vld [vmem:[#allocation6 + $0x28] sm:$0xff]  ;;  %v6786_v33 = vand.u32 4294901760, %v5701_v40  ;;  %v2559_v22 = vand.u32 4294901760, %v2558_v16 }
 0x364   : > { %2480 = vmatmul.f32.vlgmr.msra.gmra.mxu3 %v5469_v25  ;;  %2542 = vmatpush.msrb.mxu1 %v2541_v9  ;;  %v5739_v47 = vand.u32 4294901760, %v995_v57  ;;  %v5763_v9 = vand.u32 4294901760, %v991_v21  ;;  %v2583_v16 = vand.u32 4294901760, %v2582_v29  ;;  %v2589_v50 = vand.u32 4294901760, %v2588_v52 }
 0x365   : > { %2631 = vmatpush.msrb.mxu2 %v5608_v23  ;;  %2681 = vmatpush.msrb.mxu3 %v5583_v20  ;;  %v2576_v27 = vsub.f32 %v5701_v40, %v6786_v33 }
 0x366   : > { %2329 = vmatpush.msra.mxu0 %v5484_v26  ;;  %2548 = vmatpush.msrb.mxu1 %v2547_v34  ;;  %v2565_v26 = vand.u32 4294901760, %v2564_v35  ;;  %v5761_v7 = vsub.f32 %v995_v57, %v5739_v47  ;;  %v6779_v34 = vand.u32 4294901760, %v5749_v48  ;;  %v5783_v57 = vsub.f32 %v991_v21, %v5763_v9  ;;  %v1051_v21 = vld [vmem:[#allocation6 + $0x1e8] sm:$0xff] }
 0x367   : > { %2634 = vmatpush.msrb.mxu2 %v5619_v28  ;;  %2683 = vmatpush.msrb.mxu3 %v5590_v8  ;;  %v2577_v13 = vand.u32 4294901760, %v2576_v27 }
 0x368   : > { %2332 = vmatpush.msra.mxu0 %v5498_v59  ;;  %2554 = vmatpush.msrb.mxu1 %v2553_v62  ;;  %v2571_v59 = vand.u32 4294901760, %v2570_v55  ;;  %v2594_v62 = vsub.f32 %v5737_v17, %v6781_v39  ;;  %v6780_v35 = vand.u32 4294901760, %v5761_v7  ;;  %v1053_v55 = vld [vmem:[#allocation6 + $0x1f8] sm:$0xff]  ;;  %v6784_v29 = vand.u32 4294901760, %v5783_v57  ;;  %v1047_v39 = vld [vmem:[#allocation6 + $0x1c8] sm:$0xff] }
 0x369   : > { %2335 = vmatmul.f32.vlgmr.msra.gmra.mxu0 %v5495_v42  ;;  %2637 = vmatpush.msrb.mxu2 %v5630_v37 }
 0x36a   : > { %2485 = vmatpush.msrb.mxu0 %v5583_v20  ;;  %2685 = vmatpush.msrb.mxu3 %v5600_v44  ;;  %v2595_v27 = vand.u32 4294901760, %v2594_v62  ;;  %v5807_v62 = vand.u32 4294901760, %v1051_v21 }
 0x36b   : > { %2560 = vmatpush.msrb.mxu1 %v2559_v22  ;;  %2640 = vmatpush.msrb.mxu2 %v5644_v43  ;;  %v2600_v22 = vsub.f32 %v5749_v48, %v6779_v34  ;;  %v1049_v34 = vld [vmem:[#allocation6 + $0x1d8] sm:$0xff] }
 0x36c   : > { %2487 = vmatpush.msrb.mxu0 %v5590_v8  ;;  %2687 = vmatpush.msrb.mxu3 %v5610_v3 }
 0x36d   : > { %2566 = vmatpush.msrb.mxu1 %v2565_v26  ;;  %2643 = vmatpush.msrb.mxu2 %v5663_v38  ;;  %v6782_v26 = vand.u32 4294901760, %v5773_v5  ;;  %v2601_v52 = vand.u32 4294901760, %v2600_v22 }
 0x36e   : > { %2489 = vmatpush.msrb.mxu0 %v5600_v44  ;;  %2689 = vmatpush.msrb.mxu3 %v5621_v30 }
 0x36f   : > { %2572 = vmatpush.msrb.mxu1 %v2571_v59  ;;  %2646 = vmatpush.msrb.mxu2 %v5672_v10  ;;  %v2606_v59 = vsub.f32 %v5761_v7, %v6780_v35 }
 0x370   : > { %2491 = vmatpush.msrb.mxu0 %v5610_v3  ;;  %2691 = vmatpush.msrb.mxu3 %v5635_v63 }
 0x371   : > { %2578 = vmatpush.msrb.mxu1 %v2577_v13  ;;  %2649 = vmatpush.msrb.mxu2 %v5685_v32  ;;  %v5799_v13 = vand.u32 4294901760, %v1053_v55  ;;  %v2607_v35 = vand.u32 4294901760, %v2606_v59  ;;  %v5824_v59 = vsub.f32 %v1051_v21, %v5807_v62 }
 0x372   : > { %2493 = vmatpush.msrb.mxu0 %v5621_v30  ;;  %2693 = vmatpush.msrb.mxu3 %v5646_v49 }
 0x373   : > { %2584 = vmatpush.msrb.mxu1 %v2583_v16  ;;  %2652 = vmatpush.msrb.mxu2 %v5701_v40  ;;  %v2612_v16 = vsub.f32 %v5773_v5, %v6782_v26  ;;  %v5816_v22 = vsub.f32 %v1053_v55, %v5799_v13  ;;  %v5820_v26 = vand.u32 4294901760, %v1049_v34  ;;  %v5828_v55 = vand.u32 4294901760, %v1047_v39 }
 0x374   : > { %2495 = vmatpush.msrb.mxu0 %v5635_v63  ;;  %2695 = vmatpush.msrb.mxu3 %v5657_v53 }
 0x375   : > { %2590 = vmatpush.msrb.mxu1 %v2589_v50  ;;  %2655 = vmatpush.msrb.mxu2 %v5713_v36  ;;  %v2618_v50 = vsub.f32 %v5783_v57, %v6784_v29  ;;  %v1043_v29 = vld [vmem:[#allocation6 + $0x1a8] sm:$0xff]  ;;  %v6791_v33 = vand.u32 4294901760, %v5816_v22  ;;  %v5837_v21 = vsub.f32 %v1049_v34, %v5820_v26 }
 0x376   : > { %2497 = vmatpush.msrb.mxu0 %v5646_v49  ;;  %2697 = vmatpush.msrb.mxu3 %v5677_v18 }
 0x377   : > { %2596 = vmatpush.msrb.mxu1 %v2595_v27  ;;  %2658 = vmatpush.msrb.mxu2 %v5725_v0  ;;  %v2613_v27 = vand.u32 4294901760, %v2612_v16  ;;  %v2619_v45 = vand.u32 4294901760, %v2618_v50  ;;  %v6796_v16 = vand.u32 4294901760, %v5824_v59  ;;  %v5846_v50 = vsub.f32 %v1047_v39, %v5828_v55  ;;  %v6955_v39 = vld [vmem:[#allocation30_spill] sm:$0xff] }
 0x378   : > { %2499 = vmatpush.msrb.mxu0 %v5657_v53  ;;  %2699 = vmatpush.msrb.mxu3 %v5691_v11  ;;  %v2869_v34 = vsub.f32 %v5816_v22, %v6791_v33  ;;  %v1037_v33 = vld [vmem:[#allocation6 + $0x178] sm:$0xff] }
 0x379   : > { %2602 = vmatpush.msrb.mxu1 %v2601_v52  ;;  %2661 = vmatpush.msrb.mxu2 %v5737_v17  ;;  %v5832_v52 = vand.u32 4294901760, %v1045_v56  ;;  %v5884_v42 = vand.u32 4294901760, %v1037_v33  ;;  %v6960_v60 = vand.u32 4294901760, %v5846_v50 }
 0x37a   : > { %2501 = vmatpush.msrb.mxu0 %v5677_v18  ;;  %2701 = vmatpush.msrb.mxu3 %v5703_v2  ;;  %v2870_v31 = vand.u32 4294901760, %v2869_v34 }
 0x37b   : > { %2608 = vmatpush.msrb.mxu1 %v2607_v35  ;;  %2664 = vmatpush.msrb.mxu2 %v5749_v48  ;;  %v5841_v35 = vand.u32 4294901760, %v1043_v29  ;;  %v5907_v41 = vsub.f32 %v1037_v33, %v5884_v42 }
 0x37c   : > { %2503 = vmatpush.msrb.mxu0 %v5691_v11  ;;  %2703 = vmatpush.msrb.mxu3 %v5715_v51 }
 0x37d   : > { %2614 = vmatpush.msrb.mxu1 %v2613_v27  ;;  %2667 = vmatpush.msrb.mxu2 %v5761_v7  ;;  %v5853_v27 = vsub.f32 %v1045_v56, %v5832_v52  ;;  %v5866_v56 = vsub.f32 %v1043_v29, %v5841_v35 }
 0x37e   : > { %2505 = vmatpush.msrb.mxu0 %v5703_v2  ;;  %2705 = vmatpush.msrb.mxu3 %v5727_v12 }
 0x37f   : > { %2620 = vmatpush.msrb.mxu1 %v2619_v45  ;;  %2670 = vmatpush.msrb.mxu2 %v5773_v5  ;;  %6954 = vst [vmem:[#allocation16_spill] sm:$0xff] %v5853_v27  ;;  %v2875_v45 = vsub.f32 %v5824_v59, %v6796_v16  ;;  %v1035_v16 = vld [vmem:[#allocation6 + $0x168] sm:$0xff] }
 0x380   : > { %2507 = vmatpush.msrb.mxu0 %v5715_v51  ;;  %2707 = vmatpush.msrb.mxu3 %v5739_v47  ;;  %6956 = vst [vmem:[#allocation39_spill] sm:$0xff] %v5866_v56  ;;  %v5897_v25 = vand.u32 4294901760, %v1035_v16 }
 0x381   : > { %2622 = vmatmul.f32.vlgmr.msrb.gmra.mxu1 %v6955_v39  ;;  %2673 = vmatpush.msrb.mxu2 %v5783_v57 }
 0x382   : > { %2789 = vmatpush.msra.mxu1 %v5583_v20  ;;  %2509 = vmatpush.msrb.mxu0 %v5727_v12  ;;  %v6958_v20 = vand.u32 4294901760, %v5837_v21  ;;  %v5919_v33 = vsub.f32 %v1035_v16, %v5897_v25 }
 0x383   : > { %2709 = vmatpush.msrb.mxu3 %v5751_v15  ;;  %2676 = vmatmul.f32.vlgmr.msrb.gmra.mxu2 %v6957_v14  ;;  %v2876_v14 = vand.u32 4294901760, %v2875_v45  ;;  %v6961_v45 = vand.u32 4294901760, %v5853_v27 }
 0x384   : > { %2791 = vmatpush.msra.mxu1 %v5590_v8  ;;  %2826 = vmatpush.msra.mxu2 %v5799_v13  ;;  %v2881_v29 = vsub.f32 %v5837_v21, %v6958_v20  ;;  %v6959_v8 = vld [vmem:[#allocation34_spill] sm:$0xff]  ;;  %v2887_v20 = vsub.f32 %v5846_v50, %v6960_v60  ;;  %v5921_v60 = vand.u32 4294901760, %v1031_v24 }
 0x385   : > { %2511 = vmatpush.msrb.mxu0 %v5739_v47  ;;  %2711 = vmatpush.msrb.mxu3 %v5763_v9  ;;  %v2893_v34 = vsub.f32 %v5853_v27, %v6961_v45  ;;  %v1027_v27 = vld [vmem:[#allocation6 + $0x128] sm:$0xff] }
 0x386   : > { %2715 = vmatmul.f32.vlgmr.msrb.gmra.mxu3 %v6959_v8  ;;  %2793 = vmatpush.msra.mxu1 %v5600_v44  ;;  %v2882_v44 = vand.u32 4294901760, %v2881_v29  ;;  %v5909_v8 = vand.u32 4294901760, %v1033_v4  ;;  %v1025_v29 = vld [vmem:[#allocation6 + $0x118] sm:$0xff] }
 0x387   : > { %2828 = vmatpush.msra.mxu2 %v5807_v62  ;;  %2871 = vmatpush.msra.mxu3 %v2870_v31  ;;  %v6962_v31 = vand.u32 4294901760, %v5866_v56 }
 0x388   : > { %2513 = vmatpush.msrb.mxu0 %v5751_v15  ;;  %2795 = vmatpush.msra.mxu1 %v5610_v3  ;;  %v2888_v3 = vand.u32 4294901760, %v2887_v20  ;;  %v5932_v16 = vsub.f32 %v1033_v4, %v5909_v8  ;;  %v5945_v4 = vsub.f32 %v1031_v24, %v5921_v60 }
 0x389   : > { %2830 = vmatpush.msra.mxu2 %v5820_v26  ;;  %2877 = vmatpush.msra.mxu3 %v2876_v14  ;;  %v2899_v45 = vsub.f32 %v5866_v56, %v6962_v31  ;;  %v2894_v14 = vand.u32 4294901760, %v2893_v34  ;;  %v6964_v31 = vand.u32 4294901760, %v5598_v46  ;;  %v5934_v56 = vand.u32 4294901760, %v1029_v61 }
 0x38a   : > { %2515 = vmatpush.msrb.mxu0 %v5763_v9  ;;  %2797 = vmatpush.msra.mxu1 %v5621_v30  ;;  %v6965_v30 = vand.u32 4294901760, %v5882_v58  ;;  %v6966_v46 = vand.u32 4294901760, %v5608_v23  ;;  %v6967_v34 = vand.u32 4294901760, %v5895_v1  ;;  %v6968_v23 = vand.u32 4294901760, %v5619_v28 }
 0x38b   : > { %2521 = vmatmul.f32.vlgmr.msrb.gmra.mxu0 %v6963_v54  ;;  %2832 = vmatpush.msra.mxu2 %v5828_v55  ;;  %v2900_v54 = vand.u32 4294901760, %v2899_v45  ;;  %v6969_v45 = vand.u32 4294901760, %v5907_v41  ;;  %v5958_v24 = vsub.f32 %v1029_v61, %v5934_v56  ;;  %v6970_v28 = vand.u32 4294901760, %v5630_v37 }
 0x38c   : > { %2722 = vmatpush.msra.mxu0 %v6964_v31  ;;  %2883 = vmatpush.msra.mxu3 %v2882_v44  ;;  %v2905_v20 = vsub.f32 %v5882_v58, %v6965_v30  ;;  %v2911_v44 = vsub.f32 %v5895_v1, %v6967_v34  ;;  %v2922_v31 = vand.u32 4294901760, %v5919_v33  ;;  %v5947_v30 = vand.u32 4294901760, %v1027_v27  ;;  %v1023_v34 = vld [vmem:[#allocation6 + $0x108] sm:$0xff] }
 0x38d   : > { %2799 = vmatpush.msra.mxu1 %v5635_v63  ;;  %2834 = vmatpush.msra.mxu2 %v5832_v52  ;;  %v6971_v37 = vand.u32 4294901760, %v5644_v43 }
 0x38e   : > { %2726 = vmatpush.msra.mxu0 %v6966_v46  ;;  %2889 = vmatpush.msra.mxu3 %v2888_v3  ;;  %v2906_v63 = vand.u32 4294901760, %v2905_v20  ;;  %v2917_v3 = vsub.f32 %v5907_v41, %v6969_v45  ;;  %v2928_v46 = vand.u32 4294901760, %v5932_v16  ;;  %v2923_v20 = vsub.f32 %v5919_v33, %v2922_v31 }
 0x38f   : > { %2801 = vmatpush.msra.mxu1 %v5646_v49  ;;  %2836 = vmatpush.msra.mxu2 %v5841_v35  ;;  %v5962_v49 = vand.u32 4294901760, %v1025_v29  ;;  %v5971_v61 = vsub.f32 %v1027_v27, %v5947_v30  ;;  %v2940_v45 = vand.u32 4294901760, %v5958_v24  ;;  %v6972_v27 = vand.u32 4294901760, %v5663_v38 }
 0x390   : > { %2730 = vmatpush.msra.mxu0 %v6968_v23  ;;  %2895 = vmatpush.msra.mxu3 %v2894_v14  ;;  %v2912_v14 = vand.u32 4294901760, %v2911_v44  ;;  %v2934_v23 = vand.u32 4294901760, %v5945_v4  ;;  %v2929_v44 = vsub.f32 %v5932_v16, %v2928_v46  ;;  %v2924_v43 = vand.u32 4294901760, %v2923_v20 }
 0x391   : > { %2803 = vmatpush.msra.mxu1 %v5657_v53  ;;  %2838 = vmatpush.msra.mxu2 %v5858_v6  ;;  %v5975_v53 = vand.u32 4294901760, %v1023_v34 }
 0x392   : > { %2734 = vmatpush.msra.mxu0 %v6970_v28  ;;  %2901 = vmatpush.msra.mxu3 %v2900_v54  ;;  %v2918_v54 = vand.u32 4294901760, %v2917_v3  ;;  %v2946_v3 = vand.u32 4294901760, %v5971_v61  ;;  %v2930_v38 = vand.u32 4294901760, %v2929_v44  ;;  %v2941_v28 = vsub.f32 %v5958_v24, %v2940_v45 }
 0x393   : > { %2805 = vmatpush.msra.mxu1 %v5677_v18  ;;  %2840 = vmatpush.msra.mxu2 %v5871_v19  ;;  %v5986_v18 = vsub.f32 %v1025_v29, %v5962_v49  ;;  %v6973_v29 = vand.u32 4294901760, %v5672_v10  ;;  %v6978_v44 = vand.u32 4294901760, %v5737_v17  ;;  %v6982_v17 = vand.u32 4294901760, %v5761_v7 }
 0x394   : > { %2738 = vmatpush.msra.mxu0 %v6971_v37  ;;  %2907 = vmatpush.msra.mxu3 %v2906_v63  ;;  %v2935_v63 = vsub.f32 %v5945_v4, %v2934_v23  ;;  %v2947_v10 = vsub.f32 %v5971_v61, %v2946_v3  ;;  %v2942_v37 = vand.u32 4294901760, %v2941_v28  ;;  %v6987_v7 = vand.u32 4294901760, %v5783_v57  ;;  %v6991_v57 = vld [vmem:[#allocation39_spill] sm:$0xff]  ;;  %v1083_v28 = vld [vmem:[#allocation6 + $0x2e8] sm:$0xff] }
 0x395   : > { %2807 = vmatpush.msra.mxu1 %v5691_v11  ;;  %2842 = vmatpush.msra.mxu2 %v5884_v42  ;;  %v5997_v11 = vsub.f32 %v1023_v34, %v5975_v53 }
 0x396   : > { %2742 = vmatpush.msra.mxu0 %v6972_v27  ;;  %2913 = vmatpush.msra.mxu3 %v2912_v14  ;;  %v6974_v14 = vand.u32 4294901760, %v5685_v32  ;;  %v2936_v34 = vand.u32 4294901760, %v2935_v63  ;;  %v6980_v27 = vld [vmem:[#allocation37_spill] sm:$0xff]  ;;  %v6984_v63 = vand.u32 4294901760, %v5824_v59 }
 0x397   : > { %2809 = vmatpush.msra.mxu1 %v5703_v2  ;;  %2844 = vmatpush.msra.mxu2 %v5897_v25  ;;  %v2952_v2 = vand.u32 4294901760, %v5986_v18  ;;  %v2958_v20 = vand.u32 4294901760, %v5997_v11 }
 0x398   : > { %2746 = vmatpush.msra.mxu0 %v6973_v29  ;;  %2919 = vmatpush.msra.mxu3 %v2918_v54  ;;  %v6976_v54 = vand.u32 4294901760, %v5713_v36  ;;  %v6986_v29 = vand.u32 4294901760, %v5837_v21 }
 0x399   : > { %2811 = vmatpush.msra.mxu1 %v5715_v51  ;;  %2846 = vmatpush.msra.mxu2 %v5909_v8  ;;  %v6975_v51 = vand.u32 4294901760, %v5701_v40  ;;  %v2953_v32 = vsub.f32 %v5986_v18, %v2952_v2  ;;  %v2959_v40 = vsub.f32 %v5997_v11, %v2958_v20 }
 0x39a   : > { %2750 = vmatpush.msra.mxu0 %v6974_v14  ;;  %2925 = vmatpush.msra.mxu3 %v2924_v43  ;;  %v6983_v43 = vld [vmem:[#allocation31_spill] sm:$0xff] }
 0x39b   : > { %2813 = vmatpush.msra.mxu1 %v5727_v12  ;;  %2848 = vmatpush.msra.mxu2 %v5921_v60  ;;  %v2948_v12 = vand.u32 4294901760, %v2947_v10  ;;  %v2954_v36 = vand.u32 4294901760, %v2953_v32  ;;  %v1075_v32 = vld [vmem:[#allocation6 + $0x2a8] sm:$0xff] }
 0x39c   : > { %2754 = vmatpush.msra.mxu0 %v6975_v51  ;;  %2931 = vmatpush.msra.mxu3 %v2930_v38  ;;  %v6988_v38 = vand.u32 4294901760, %v5846_v50 }
 0x39d   : > { %2815 = vmatpush.msra.mxu1 %v5739_v47  ;;  %2850 = vmatpush.msra.mxu2 %v5934_v56  ;;  %v6977_v47 = vand.u32 4294901760, %v5725_v0  ;;  %v6979_v0 = vand.u32 4294901760, %v5749_v48  ;;  %v6985_v48 = vand.u32 4294901760, %v5773_v5  ;;  %v6989_v5 = vld [vmem:[#allocation16_spill] sm:$0xff] }
 0x39e   : > { %2758 = vmatpush.msra.mxu0 %v6976_v54  ;;  %2937 = vmatpush.msra.mxu3 %v2936_v34  ;;  %v1073_v54 = vld [vmem:[#allocation6 + $0x298] sm:$0xff] }
 0x39f   : > { %2817 = vmatpush.msra.mxu1 %v5751_v15  ;;  %2852 = vmatpush.msra.mxu2 %v5947_v30  ;;  %v2960_v15 = vand.u32 4294901760, %v2959_v40  ;;  %v6138_v40 = vand.u32 4294901760, %v1073_v54 }
 0x3a0   : > { %2762 = vmatpush.msra.mxu0 %v6977_v47  ;;  %2943 = vmatpush.msra.mxu3 %v2942_v37  ;;  %v1069_v47 = vld [vmem:[#allocation6 + $0x278] sm:$0xff] }
 0x3a1   : > { %2819 = vmatpush.msra.mxu1 %v5763_v9  ;;  %2854 = vmatpush.msra.mxu2 %v5962_v49  ;;  %v6981_v9 = vand.u32 4294901760, %v5816_v22 }
 0x3a2   : > { %2766 = vmatpush.msra.mxu0 %v6978_v44  ;;  %2949 = vmatpush.msra.mxu3 %v2948_v12  ;;  %v1071_v12 = vld [vmem:[#allocation6 + $0x288] sm:$0xff]  ;;  %v6164_v44 = vsub.f32 %v1073_v54, %v6138_v40 }
 0x3a3   : > { %2821 = vmatmul.f32.vlgmr.msra.gmra.mxu1 %v6955_v39  ;;  %2856 = vmatpush.msra.mxu2 %v5975_v53 }
 0x3a4   : > { %3022 = vmatpush.msrb.mxu1 %v5799_v13  ;;  %2770 = vmatpush.msra.mxu0 %v6979_v0 }
 0x3a5   : > { %2955 = vmatpush.msra.mxu3 %v2954_v36  ;;  %2862 = vmatmul.f32.vlgmr.msra.gmra.mxu2 %v6980_v27  ;;  %v1065_v27 = vld [vmem:[#allocation6 + $0x258] sm:$0xff] }
 0x3a6   : > { %3024 = vmatpush.msrb.mxu1 %v5807_v62  ;;  %3063 = vmatpush.msrb.mxu2 %v6981_v9  ;;  %v6996_v9 = vld [vmem:[#allocation35_spill] sm:$0xff] }
 0x3a7   : > { %2774 = vmatpush.msra.mxu0 %v6982_v17  ;;  %2961 = vmatpush.msra.mxu3 %v2960_v15  ;;  %v1067_v15 = vld [vmem:[#allocation6 + $0x268] sm:$0xff] }
 0x3a8   : > { %2963 = vmatmul.f32.vlgmr.msra.gmra.mxu3 %v6983_v43  ;;  %3026 = vmatpush.msrb.mxu1 %v5820_v26  ;;  %v6183_v17 = vand.u32 4294901760, %v1067_v15 }
 0x3a9   : > { %3067 = vmatpush.msrb.mxu2 %v6984_v63  ;;  %3130 = vmatpush.msrb.mxu3 %v5799_v13  ;;  %v6990_v13 = vand.u32 4294901760, %v6989_v5  ;;  %v6819_v63 = vand.u32 4294901760, %v6164_v44 }
 0x3aa   : > { %2778 = vmatpush.msra.mxu0 %v6985_v48  ;;  %3028 = vmatpush.msrb.mxu1 %v5828_v55  ;;  %v1063_v48 = vld [vmem:[#allocation6 + $0x248] sm:$0xff] }
 0x3ab   : > { %3071 = vmatpush.msrb.mxu2 %v6986_v29  ;;  %3132 = vmatpush.msrb.mxu3 %v5807_v62  ;;  %v1085_v62 = vld [vmem:[#allocation6 + $0x2f8] sm:$0xff]  ;;  %v6195_v29 = vand.u32 4294901760, %v1065_v27 }
 0x3ac   : > { %2782 = vmatpush.msra.mxu0 %v6987_v7  ;;  %3030 = vmatpush.msrb.mxu1 %v5832_v52 }
 0x3ad   : > { %2784 = vmatmul.f32.vlgmr.msra.gmra.mxu0 %v6955_v39  ;;  %3075 = vmatpush.msrb.mxu2 %v6988_v38  ;;  %v6992_v39 = vand.u32 4294901760, %v6991_v57  ;;  %v1061_v38 = vld [vmem:[#allocation6 + $0x238] sm:$0xff] }
 0x3ae   : > { %2969 = vmatpush.msrb.mxu0 %v5816_v22  ;;  %3134 = vmatpush.msrb.mxu3 %v5820_v26  ;;  %v6075_v26 = vand.u32 4294901760, %v1085_v62  ;;  %v6993_v22 = vand.u32 4294901760, %v5882_v58 }
 0x3af   : > { %3032 = vmatpush.msrb.mxu1 %v5841_v35  ;;  %3079 = vmatpush.msrb.mxu2 %v6990_v13  ;;  %v6207_v13 = vand.u32 4294901760, %v1063_v48 }
 0x3b0   : > { %2972 = vmatpush.msrb.mxu0 %v5824_v59  ;;  %3136 = vmatpush.msrb.mxu3 %v5828_v55  ;;  %v1081_v59 = vld [vmem:[#allocation6 + $0x2d8] sm:$0xff]  ;;  %v6082_v55 = vand.u32 4294901760, %v1083_v28  ;;  %v6090_v14 = vsub.f32 %v1085_v62, %v6075_v26 }
 0x3b1   : > { %3034 = vmatpush.msrb.mxu1 %v5858_v6  ;;  %3083 = vmatpush.msrb.mxu2 %v6992_v39  ;;  %v6092_v34 = vand.u32 4294901760, %v1081_v59  ;;  %v6217_v39 = vsub.f32 %v1065_v27, %v6195_v29 }
 0x3b2   : > { %2975 = vmatpush.msrb.mxu0 %v5837_v21  ;;  %3138 = vmatpush.msrb.mxu3 %v5832_v52  ;;  %v6994_v21 = vand.u32 4294901760, %v5895_v1  ;;  %v1079_v52 = vld [vmem:[#allocation6 + $0x2c8] sm:$0xff]  ;;  %v6100_v10 = vsub.f32 %v1083_v28, %v6082_v55  ;;  %v6219_v28 = vand.u32 4294901760, %v1061_v38 }
 0x3b3   : > { %3036 = vmatpush.msrb.mxu1 %v5871_v19  ;;  %3087 = vmatpush.msrb.mxu2 %v6993_v22  ;;  %v6102_v51 = vand.u32 4294901760, %v1079_v52  ;;  %v6111_v37 = vsub.f32 %v1081_v59, %v6092_v34  ;;  %v1057_v22 = vld [vmem:[#allocation6 + $0x218] sm:$0xff] }
 0x3b4   : > { %2978 = vmatpush.msrb.mxu0 %v5846_v50  ;;  %3140 = vmatpush.msrb.mxu3 %v5841_v35  ;;  %v6995_v35 = vand.u32 4294901760, %v5907_v41  ;;  %v1077_v50 = vld [vmem:[#allocation6 + $0x2b8] sm:$0xff] }
 0x3b5   : > { %3038 = vmatpush.msrb.mxu1 %v5884_v42  ;;  %3091 = vmatpush.msrb.mxu2 %v6994_v21 }
 0x3b6   : > { %2981 = vmatpush.msrb.mxu0 %v6989_v5  ;;  %3142 = vmatpush.msrb.mxu3 %v5858_v6  ;;  %v6829_v6 = vand.u32 4294901760, %v6090_v14  ;;  %v6205_v5 = vsub.f32 %v1067_v15, %v6183_v17 }
 0x3b7   : > { %3040 = vmatpush.msrb.mxu1 %v5897_v25  ;;  %3095 = vmatpush.msrb.mxu2 %v6995_v35 }
 0x3b8   : > { %2984 = vmatpush.msrb.mxu0 %v6991_v57  ;;  %3144 = vmatpush.msrb.mxu3 %v5871_v19  ;;  %v6113_v19 = vand.u32 4294901760, %v1077_v50  ;;  %v3246_v57 = vsub.f32 %v6164_v44, %v6819_v63  ;;  %v6816_v21 = vand.u32 4294901760, %v6205_v5 }
 0x3b9   : > { %3042 = vmatpush.msrb.mxu1 %v5909_v8  ;;  %3099 = vmatpush.msrb.mxu2 %v2922_v31  ;;  %v6127_v31 = vand.u32 4294901760, %v1075_v32 }
 0x3ba   : > { %2987 = vmatpush.msrb.mxu0 %v5882_v58  ;;  %3146 = vmatpush.msrb.mxu3 %v5884_v42  ;;  %v6826_v42 = vand.u32 4294901760, %v6100_v10  ;;  %v6122_v58 = vsub.f32 %v1079_v52, %v6102_v51  ;;  %v6229_v52 = vsub.f32 %v1063_v48, %v6207_v13 }
 0x3bb   : > { %3044 = vmatpush.msrb.mxu1 %v5921_v60  ;;  %3103 = vmatpush.msrb.mxu2 %v2928_v46  ;;  %v6136_v46 = vsub.f32 %v1077_v50, %v6113_v19  ;;  %v1055_v50 = vld [vmem:[#allocation6 + $0x208] sm:$0xff] }
 0x3bc   : > { %2990 = vmatpush.msrb.mxu0 %v5895_v1  ;;  %3148 = vmatpush.msrb.mxu3 %v5897_v25  ;;  %v3210_v25 = vsub.f32 %v6090_v14, %v6829_v6  ;;  %v6825_v1 = vand.u32 4294901760, %v6111_v37  ;;  %v6255_v15 = vand.u32 4294901760, %v1055_v50  ;;  %v7003_v6 = vld [vmem:[#allocation44_spill] sm:$0xff] }
 0x3bd   : > { %3046 = vmatpush.msrb.mxu1 %v5934_v56  ;;  %3107 = vmatpush.msrb.mxu2 %v2934_v23  ;;  %v6149_v23 = vand.u32 4294901760, %v1071_v12  ;;  %v6822_v36 = vand.u32 4294901760, %v6136_v46 }
 0x3be   : > { %2993 = vmatpush.msrb.mxu0 %v5907_v41  ;;  %3150 = vmatpush.msrb.mxu3 %v5909_v8  ;;  %v3216_v41 = vsub.f32 %v6100_v10, %v6826_v42  ;;  %v6823_v8 = vand.u32 4294901760, %v6122_v58  ;;  %v1095_v42 = vld [vmem:[#allocation6 + $0x348] sm:$0xff] }
 0x3bf   : > { %3048 = vmatpush.msrb.mxu1 %v5947_v30  ;;  %3111 = vmatpush.msrb.mxu2 %v2940_v45  ;;  %v6155_v45 = vsub.f32 %v1075_v32, %v6127_v31  ;;  %v6177_v0 = vsub.f32 %v1071_v12, %v6149_v23  ;;  %v6997_v32 = vld [vmem:[#allocation33_spill] sm:$0xff]  ;;  %v6814_v12 = vand.u32 4294901760, %v6217_v39 }
 0x3c0   : > { %2996 = vmatpush.msrb.mxu0 %v5919_v33  ;;  %3152 = vmatpush.msrb.mxu3 %v5921_v60  ;;  %v3211_v60 = vand.u32 4294901760, %v3210_v25  ;;  %v3222_v33 = vsub.f32 %v6111_v37, %v6825_v1  ;;  %v6241_v25 = vsub.f32 %v1061_v38, %v6219_v28  ;;  %v1117_v38 = vld [vmem:[#allocation6 + $0x3f8] sm:$0xff] }
 0x3c1   : > { %3050 = vmatpush.msrb.mxu1 %v5962_v49  ;;  %3115 = vmatpush.msrb.mxu2 %v2946_v3  ;;  %v6169_v3 = vand.u32 4294901760, %v1069_v47  ;;  %v6818_v7 = vand.u32 4294901760, %v6177_v0 }
 0x3c2   : > { %2999 = vmatpush.msrb.mxu0 %v5932_v16  ;;  %3154 = vmatpush.msrb.mxu3 %v5934_v56  ;;  %v3217_v56 = vand.u32 4294901760, %v3216_v41  ;;  %v3228_v16 = vsub.f32 %v6122_v58, %v6823_v8  ;;  %v6243_v41 = vand.u32 4294901760, %v1057_v22  ;;  %v6812_v27 = vand.u32 4294901760, %v6241_v25  ;;  %v1097_v8 = vld [vmem:[#allocation6 + $0x358] sm:$0xff] }
 0x3c3   : > { %3052 = vmatpush.msrb.mxu1 %v5975_v53  ;;  %3119 = vmatpush.msrb.mxu2 %v2952_v2  ;;  %v6820_v2 = vand.u32 4294901760, %v6155_v45 }
 0x3c4   : > { %3002 = vmatpush.msrb.mxu0 %v5945_v4  ;;  %3156 = vmatpush.msrb.mxu3 %v5947_v30  ;;  %v3223_v4 = vand.u32 4294901760, %v3222_v33  ;;  %v3234_v30 = vsub.f32 %v6136_v46, %v6822_v36 }
 0x3c5   : > { %3056 = vmatmul.f32.vlgmr.msrb.gmra.mxu1 %v6996_v9  ;;  %3123 = vmatpush.msrb.mxu2 %v2958_v20  ;;  %v6193_v20 = vsub.f32 %v1069_v47, %v6169_v3  ;;  %v3264_v47 = vsub.f32 %v6205_v5, %v6816_v21  ;;  %v6265_v9 = vsub.f32 %v1057_v22, %v6243_v41 }
 0x3c6   : > { %3212 = vmatpush.msra.mxu1 %v3211_v60  ;;  %3005 = vmatpush.msrb.mxu0 %v5958_v24  ;;  %v3229_v24 = vand.u32 4294901760, %v3228_v16  ;;  %v3235_v62 = vand.u32 4294901760, %v3234_v30  ;;  %v6813_v60 = vand.u32 4294901760, %v6229_v52  ;;  %v3270_v16 = vsub.f32 %v6217_v39, %v6814_v12 }
 0x3c7   : > { %3158 = vmatpush.msrb.mxu3 %v5962_v49  ;;  %3125 = vmatmul.f32.vlgmr.msrb.gmra.mxu2 %v6983_v43  ;;  %v3240_v49 = vsub.f32 %v6155_v45, %v6820_v2 }
 0x3c8   : > { %3218 = vmatpush.msra.mxu1 %v3217_v56  ;;  %3310 = vmatpush.msra.mxu2 %v6090_v14  ;;  %v3276_v30 = vsub.f32 %v6229_v52, %v6813_v60 }
 0x3c9   : > { %3008 = vmatpush.msrb.mxu0 %v5971_v61  ;;  %3160 = vmatpush.msrb.mxu3 %v5975_v53  ;;  %v1059_v61 = vld [vmem:[#allocation6 + $0x228] sm:$0xff]  ;;  %v6817_v53 = vand.u32 4294901760, %v6193_v20  ;;  %v3241_v59 = vand.u32 4294901760, %v3240_v49  ;;  %v3271_v49 = vand.u32 4294901760, %v3270_v16 }
 0x3ca   : > { %3162 = vmatmul.f32.vlgmr.msrb.gmra.mxu3 %v6983_v43  ;;  %3224 = vmatpush.msra.mxu1 %v3223_v4  ;;  %v3252_v43 = vsub.f32 %v6177_v0, %v6818_v7  ;;  %v6231_v35 = vand.u32 4294901760, %v1059_v61  ;;  %v3265_v4 = vand.u32 4294901760, %v3264_v47  ;;  %v7001_v7 = vld [vmem:[#allocation40_spill] sm:$0xff] }
 0x3cb   : > { %3313 = vmatpush.msra.mxu2 %v6100_v10  ;;  %3363 = vmatpush.msra.mxu3 %v6075_v26  ;;  %v3258_v54 = vsub.f32 %v6193_v20, %v6817_v53 }
 0x3cc   : > { %3011 = vmatpush.msrb.mxu0 %v5986_v18  ;;  %3230 = vmatpush.msra.mxu1 %v3229_v24  ;;  %v3247_v18 = vand.u32 4294901760, %v3246_v57  ;;  %v6253_v33 = vsub.f32 %v1059_v61, %v6231_v35  ;;  %v6275_v24 = vsub.f32 %v1055_v50, %v6255_v15  ;;  %v6810_v57 = vand.u32 4294901760, %v6265_v9  ;;  %v1115_v61 = vld [vmem:[#allocation6 + $0x3e8] sm:$0xff] }
 0x3cd   : > { %3316 = vmatpush.msra.mxu2 %v6111_v37  ;;  %3365 = vmatpush.msra.mxu3 %v6082_v55  ;;  %v3259_v56 = vand.u32 4294901760, %v3258_v54  ;;  %v6299_v54 = vand.u32 4294901760, %v1115_v61 }
 0x3ce   : > { %3014 = vmatpush.msrb.mxu0 %v5997_v11  ;;  %3236 = vmatpush.msra.mxu1 %v3235_v62  ;;  %v3253_v11 = vand.u32 4294901760, %v3252_v43  ;;  %v6811_v48 = vand.u32 4294901760, %v6253_v33  ;;  %v3282_v62 = vsub.f32 %v6241_v25, %v6812_v27  ;;  %v3277_v43 = vand.u32 4294901760, %v3276_v30  ;;  %v1103_v27 = vld [vmem:[#allocation6 + $0x388] sm:$0xff] }
 0x3cf   : > { %3017 = vmatmul.f32.vlgmr.msrb.gmra.mxu0 %v6997_v32  ;;  %3319 = vmatpush.msra.mxu2 %v6122_v58  ;;  %v3294_v32 = vsub.f32 %v6265_v9, %v6810_v57  ;;  %v6363_v53 = vand.u32 4294901760, %v1103_v27 }
 0x3d0   : > { %3167 = vmatpush.msra.mxu0 %v6075_v26  ;;  %3367 = vmatpush.msra.mxu3 %v6092_v34  ;;  %v3288_v22 = vsub.f32 %v6253_v33, %v6811_v48  ;;  %v3283_v50 = vand.u32 4294901760, %v3282_v62  ;;  %v1105_v48 = vld [vmem:[#allocation6 + $0x398] sm:$0xff] }
 0x3d1   : > { %3242 = vmatpush.msra.mxu1 %v3241_v59  ;;  %3322 = vmatpush.msra.mxu2 %v6136_v46  ;;  %v6809_v59 = vand.u32 4294901760, %v6275_v24  ;;  %v3295_v62 = vand.u32 4294901760, %v3294_v32  ;;  %v6350_v12 = vand.u32 4294901760, %v1105_v48 }
 0x3d2   : > { %3169 = vmatpush.msra.mxu0 %v6082_v55  ;;  %3369 = vmatpush.msra.mxu3 %v6102_v51  ;;  %v3289_v47 = vand.u32 4294901760, %v3288_v22  ;;  %v1107_v22 = vld [vmem:[#allocation6 + $0x3a8] sm:$0xff] }
 0x3d3   : > { %3248 = vmatpush.msra.mxu1 %v3247_v18  ;;  %3325 = vmatpush.msra.mxu2 %v6155_v45  ;;  %v6291_v18 = vand.u32 4294901760, %v1117_v38 }
 0x3d4   : > { %3171 = vmatpush.msra.mxu0 %v6092_v34  ;;  %3371 = vmatpush.msra.mxu3 %v6113_v19 }
 0x3d5   : > { %3254 = vmatpush.msra.mxu1 %v3253_v11  ;;  %3328 = vmatpush.msra.mxu2 %v6164_v44  ;;  %v1113_v11 = vld [vmem:[#allocation6 + $0x3d8] sm:$0xff]  ;;  %v6308_v16 = vsub.f32 %v1117_v38, %v6291_v18 }
 0x3d6   : > { %3173 = vmatpush.msra.mxu0 %v6102_v51  ;;  %3373 = vmatpush.msra.mxu3 %v6127_v31  ;;  %v6312_v30 = vand.u32 4294901760, %v1113_v11 }
 0x3d7   : > { %3260 = vmatpush.msra.mxu1 %v3259_v56  ;;  %3331 = vmatpush.msra.mxu2 %v6177_v0  ;;  %v3300_v56 = vsub.f32 %v6275_v24, %v6809_v59  ;;  %v6815_v57 = vand.u32 4294901760, %v6308_v16 }
 0x3d8   : > { %3175 = vmatpush.msra.mxu0 %v6113_v19  ;;  %3375 = vmatpush.msra.mxu3 %v6138_v40 }
 0x3d9   : > { %3266 = vmatpush.msra.mxu1 %v3265_v4  ;;  %3334 = vmatpush.msra.mxu2 %v6193_v20  ;;  %v1111_v4 = vld [vmem:[#allocation6 + $0x3c8] sm:$0xff]  ;;  %v3301_v59 = vand.u32 4294901760, %v3300_v56 }
 0x3da   : > { %3177 = vmatpush.msra.mxu0 %v6127_v31  ;;  %3377 = vmatpush.msra.mxu3 %v6149_v23  ;;  %v6320_v38 = vand.u32 4294901760, %v1111_v4 }
 0x3db   : > { %3272 = vmatpush.msra.mxu1 %v3271_v49  ;;  %3337 = vmatpush.msra.mxu2 %v6205_v5  ;;  %v1109_v49 = vld [vmem:[#allocation6 + $0x3b8] sm:$0xff] }
 0x3dc   : > { %3179 = vmatpush.msra.mxu0 %v6138_v40  ;;  %3379 = vmatpush.msra.mxu3 %v6169_v3  ;;  %v6338_v56 = vsub.f32 %v1111_v4, %v6320_v38  ;;  %v6999_v4 = vld [vmem:[#allocation38_spill] sm:$0xff] }
 0x3dd   : > { %3278 = vmatpush.msra.mxu1 %v3277_v43  ;;  %3340 = vmatpush.msra.mxu2 %v6217_v39  ;;  %v6316_v43 = vsub.f32 %v1115_v61, %v6299_v54  ;;  %v6329_v61 = vsub.f32 %v1113_v11, %v6312_v30  ;;  %v3551_v11 = vsub.f32 %v6308_v16, %v6815_v57  ;;  %v1101_v57 = vld [vmem:[#allocation6 + $0x378] sm:$0xff] }
 0x3de   : > { %3181 = vmatpush.msra.mxu0 %v6149_v23  ;;  %3381 = vmatpush.msra.mxu3 %v6183_v17  ;;  %v6827_v21 = vand.u32 4294901760, %v6338_v56  ;;  %v6376_v36 = vand.u32 4294901760, %v1101_v57 }
 0x3df   : > { %3284 = vmatpush.msra.mxu1 %v3283_v50  ;;  %3343 = vmatpush.msra.mxu2 %v6229_v52  ;;  %v6324_v50 = vand.u32 4294901760, %v1109_v49  ;;  %v6821_v32 = vand.u32 4294901760, %v6316_v43  ;;  %v6824_v60 = vand.u32 4294901760, %v6329_v61  ;;  %v3552_v63 = vand.u32 4294901760, %v3551_v11 }
 0x3e0   : > { %3183 = vmatpush.msra.mxu0 %v6169_v3  ;;  %3383 = vmatpush.msra.mxu3 %v6195_v29 }
 0x3e1   : > { %3290 = vmatpush.msra.mxu1 %v3289_v47  ;;  %3346 = vmatpush.msra.mxu2 %v6241_v25  ;;  %v6333_v47 = vand.u32 4294901760, %v1107_v22 }
 0x3e2   : > { %3185 = vmatpush.msra.mxu0 %v6183_v17  ;;  %3385 = vmatpush.msra.mxu3 %v6207_v13 }
 0x3e3   : > { %3296 = vmatpush.msra.mxu1 %v3295_v62  ;;  %3349 = vmatpush.msra.mxu2 %v6253_v33  ;;  %v6345_v62 = vsub.f32 %v1109_v49, %v6324_v50  ;;  %v6358_v49 = vsub.f32 %v1107_v22, %v6333_v47  ;;  %v6374_v22 = vsub.f32 %v1105_v48, %v6350_v12 }
 0x3e4   : > { %3187 = vmatpush.msra.mxu0 %v6195_v29  ;;  %3387 = vmatpush.msra.mxu3 %v6219_v28  ;;  %v6387_v48 = vsub.f32 %v1103_v27, %v6363_v53  ;;  %v6399_v27 = vsub.f32 %v1101_v57, %v6376_v36 }
 0x3e5   : > { %3302 = vmatpush.msra.mxu1 %v3301_v59  ;;  %3352 = vmatpush.msra.mxu2 %v6265_v9  ;;  %6998 = vst [vmem:[#allocation17_spill] sm:$0xff] %v6345_v62  ;;  %v3557_v59 = vsub.f32 %v6316_v43, %v6821_v32  ;;  %v6828_v2 = vand.u32 4294901760, %v6345_v62  ;;  %v1099_v32 = vld [vmem:[#allocation6 + $0x368] sm:$0xff]  ;;  %v6832_v11 = vand.u32 4294901760, %v6358_v49 }
 0x3e6   : > { %3189 = vmatpush.msra.mxu0 %v6207_v13  ;;  %3389 = vmatpush.msra.mxu3 %v6231_v35  ;;  %7000 = vst [vmem:[#allocation41_spill] sm:$0xff] %v6358_v49  ;;  %v6389_v1 = vand.u32 4294901760, %v1099_v32 }
 0x3e7   : > { %3304 = vmatmul.f32.vlgmr.msra.gmra.mxu1 %v6999_v4  ;;  %3355 = vmatpush.msra.mxu2 %v6275_v24 }
 0x3e8   : > { %3471 = vmatpush.msrb.mxu1 %v6075_v26  ;;  %3191 = vmatpush.msra.mxu0 %v6219_v28  ;;  %v3563_v26 = vsub.f32 %v6329_v61, %v6824_v60  ;;  %v3569_v60 = vsub.f32 %v6338_v56, %v6827_v21  ;;  %v6401_v21 = vand.u32 4294901760, %v1097_v8  ;;  %v6411_v57 = vsub.f32 %v1099_v32, %v6389_v1 }
 0x3e9   : > { %3391 = vmatpush.msra.mxu3 %v6243_v41  ;;  %3358 = vmatmul.f32.vlgmr.msra.gmra.mxu2 %v7001_v7  ;;  %v3558_v7 = vand.u32 4294901760, %v3557_v59  ;;  %v3575_v59 = vsub.f32 %v6345_v62, %v6828_v2  ;;  %v1093_v2 = vld [vmem:[#allocation6 + $0x338] sm:$0xff]  ;;  %v1091_v62 = vld [vmem:[#allocation6 + $0x328] sm:$0xff] }
 0x3ea   : > { %3473 = vmatpush.msrb.mxu1 %v6082_v55  ;;  %3508 = vmatpush.msrb.mxu2 %v6291_v18  ;;  %v7002_v55 = vld [vmem:[#allocation43_spill] sm:$0xff]  ;;  %v6424_v32 = vsub.f32 %v1097_v8, %v6401_v21 }
 0x3eb   : > { %3193 = vmatpush.msra.mxu0 %v6231_v35  ;;  %3393 = vmatpush.msra.mxu3 %v6255_v15 }
 0x3ec   : > { %3397 = vmatmul.f32.vlgmr.msra.gmra.mxu3 %v7002_v55  ;;  %3475 = vmatpush.msrb.mxu1 %v6092_v34  ;;  %v3564_v34 = vand.u32 4294901760, %v3563_v26  ;;  %v6413_v55 = vand.u32 4294901760, %v1095_v42  ;;  %v1089_v26 = vld [vmem:[#allocation6 + $0x318] sm:$0xff] }
 0x3ed   : > { %3510 = vmatpush.msrb.mxu2 %v6299_v54  ;;  %3553 = vmatpush.msrb.mxu3 %v3552_v63  ;;  %v3581_v63 = vsub.f32 %v6358_v49, %v6832_v11  ;;  %v7004_v11 = vand.u32 4294901760, %v6090_v14  ;;  %v6426_v49 = vand.u32 4294901760, %v1093_v2  ;;  %v7006_v14 = vand.u32 4294901760, %v6100_v10 }
 0x3ee   : > { %3195 = vmatpush.msra.mxu0 %v6243_v41  ;;  %3477 = vmatpush.msrb.mxu1 %v6102_v51  ;;  %v3570_v51 = vand.u32 4294901760, %v3569_v60  ;;  %v6437_v8 = vsub.f32 %v1095_v42, %v6413_v55  ;;  %v7008_v10 = vand.u32 4294901760, %v6111_v37  ;;  %v7010_v37 = vand.u32 4294901760, %v6122_v58 }
 0x3ef   : > { %3512 = vmatpush.msrb.mxu2 %v6312_v30  ;;  %3559 = vmatpush.msrb.mxu3 %v3558_v7  ;;  %v3576_v7 = vand.u32 4294901760, %v3575_v59  ;;  %v6450_v42 = vsub.f32 %v1093_v2, %v6426_v49  ;;  %v7011_v58 = vand.u32 4294901760, %v6136_v46 }
 0x3f0   : > { %3197 = vmatpush.msra.mxu0 %v6255_v15  ;;  %3479 = vmatpush.msrb.mxu1 %v6113_v19  ;;  %v7005_v19 = vand.u32 4294901760, %v6374_v22 }
 0x3f1   : > { %3203 = vmatmul.f32.vlgmr.msra.gmra.mxu0 %v7003_v6  ;;  %3514 = vmatpush.msrb.mxu2 %v6320_v38  ;;  %v3582_v6 = vand.u32 4294901760, %v3581_v63  ;;  %v7009_v63 = vand.u32 4294901760, %v6399_v27 }
 0x3f2   : > { %3404 = vmatpush.msrb.mxu0 %v7004_v11  ;;  %3565 = vmatpush.msrb.mxu3 %v3564_v34  ;;  %v3587_v60 = vsub.f32 %v6374_v22, %v7005_v19  ;;  %v7007_v11 = vand.u32 4294901760, %v6387_v48  ;;  %v3604_v34 = vand.u32 4294901760, %v6411_v57  ;;  %v6439_v19 = vand.u32 4294901760, %v1091_v62 }
 0x3f3   : > { %3481 = vmatpush.msrb.mxu1 %v6127_v31  ;;  %3516 = vmatpush.msrb.mxu2 %v6324_v50 }
 0x3f4   : > { %3408 = vmatpush.msrb.mxu0 %v7006_v14  ;;  %3571 = vmatpush.msrb.mxu3 %v3570_v51  ;;  %v3593_v59 = vsub.f32 %v6387_v48, %v7007_v11  ;;  %v3588_v31 = vand.u32 4294901760, %v3587_v60  ;;  %v3599_v51 = vsub.f32 %v6399_v27, %v7009_v63  ;;  %v3610_v14 = vand.u32 4294901760, %v6424_v32  ;;  %v1087_v11 = vld [vmem:[#allocation6 + $0x308] sm:$0xff] }
 0x3f5   : > { %3483 = vmatpush.msrb.mxu1 %v6138_v40  ;;  %3518 = vmatpush.msrb.mxu2 %v6333_v47  ;;  %v6454_v40 = vand.u32 4294901760, %v1089_v26  ;;  %v3605_v60 = vsub.f32 %v6411_v57, %v3604_v34  ;;  %v6463_v2 = vsub.f32 %v1091_v62, %v6439_v19  ;;  %v3622_v63 = vand.u32 4294901760, %v6450_v42 }
 0x3f6   : > { %3412 = vmatpush.msrb.mxu0 %v7008_v10  ;;  %3577 = vmatpush.msrb.mxu3 %v3576_v7  ;;  %v3594_v7 = vand.u32 4294901760, %v3593_v59  ;;  %v3616_v10 = vand.u32 4294901760, %v6437_v8  ;;  %v3611_v59 = vsub.f32 %v6424_v32, %v3610_v14  ;;  %v7012_v62 = vand.u32 4294901760, %v6155_v45 }
 0x3f7   : > { %3485 = vmatpush.msrb.mxu1 %v6149_v23  ;;  %3520 = vmatpush.msrb.mxu2 %v6350_v12  ;;  %v6467_v23 = vand.u32 4294901760, %v1087_v11  ;;  %v3606_v46 = vand.u32 4294901760, %v3605_v60 }
 0x3f8   : > { %3416 = vmatpush.msrb.mxu0 %v7010_v37  ;;  %3583 = vmatpush.msrb.mxu3 %v3582_v6  ;;  %v3600_v6 = vand.u32 4294901760, %v3599_v51  ;;  %v3628_v51 = vand.u32 4294901760, %v6463_v2  ;;  %v3612_v45 = vand.u32 4294901760, %v3611_v59  ;;  %v3623_v37 = vsub.f32 %v6450_v42, %v3622_v63 }
 0x3f9   : > { %3487 = vmatpush.msrb.mxu1 %v6169_v3  ;;  %3522 = vmatpush.msrb.mxu2 %v6363_v53  ;;  %v6478_v3 = vsub.f32 %v1089_v26, %v6454_v40  ;;  %v7013_v26 = vand.u32 4294901760, %v6164_v44  ;;  %v7018_v59 = vand.u32 4294901760, %v6229_v52  ;;  %v7022_v52 = vand.u32 4294901760, %v6253_v33 }
 0x3fa   : > { %3420 = vmatpush.msrb.mxu0 %v7011_v58  ;;  %3589 = vmatpush.msrb.mxu3 %v3588_v31  ;;  %v3617_v31 = vsub.f32 %v6437_v8, %v3616_v10  ;;  %v3629_v44 = vsub.f32 %v6463_v2, %v3628_v51  ;;  %v3624_v58 = vand.u32 4294901760, %v3623_v37  ;;  %v7027_v33 = vand.u32 4294901760, %v6275_v24  ;;  %v7031_v24 = vld [vmem:[#allocation41_spill] sm:$0xff] }
 0x3fb   : > { %3489 = vmatpush.msrb.mxu1 %v6183_v17  ;;  %3524 = vmatpush.msrb.mxu2 %v6376_v36  ;;  %v6489_v17 = vsub.f32 %v1087_v11, %v6467_v23 }
 0x3fc   : > { %3424 = vmatpush.msrb.mxu0 %v7012_v62  ;;  %3595 = vmatpush.msrb.mxu3 %v3594_v7  ;;  %v7014_v7 = vand.u32 4294901760, %v6177_v0  ;;  %v3618_v11 = vand.u32 4294901760, %v3617_v31  ;;  %v7020_v62 = vld [vmem:[#allocation48_spill] sm:$0xff]  ;;  %v7024_v31 = vand.u32 4294901760, %v6316_v43 }
 0x3fd   : > { %3491 = vmatpush.msrb.mxu1 %v6195_v29  ;;  %3526 = vmatpush.msrb.mxu2 %v6389_v1  ;;  %v3634_v29 = vand.u32 4294901760, %v6478_v3  ;;  %v3640_v60 = vand.u32 4294901760, %v6489_v17 }
 0x3fe   : > { %3428 = vmatpush.msrb.mxu0 %v7013_v26  ;;  %3601 = vmatpush.msrb.mxu3 %v3600_v6  ;;  %v7016_v6 = vand.u32 4294901760, %v6205_v5  ;;  %v7026_v26 = vand.u32 4294901760, %v6329_v61 }
 0x3ff   : > { %3493 = vmatpush.msrb.mxu1 %v6207_v13  ;;  %3528 = vmatpush.msrb.mxu2 %v6401_v21  ;;  %v7015_v13 = vand.u32 4294901760, %v6193_v20  ;;  %v3635_v0 = vsub.f32 %v6478_v3, %v3634_v29  ;;  %v3641_v20 = vsub.f32 %v6489_v17, %v3640_v60 }
 0x400   : > { %3432 = vmatpush.msrb.mxu0 %v7014_v7  ;;  %3607 = vmatpush.msrb.mxu3 %v3606_v46  ;;  %v7023_v46 = vld [vmem:[#allocation45_spill] sm:$0xff] }
 0x401   : > { %3495 = vmatpush.msrb.mxu1 %v6219_v28  ;;  %3530 = vmatpush.msrb.mxu2 %v6413_v55  ;;  %v3630_v28 = vand.u32 4294901760, %v3629_v44  ;;  %v3636_v5 = vand.u32 4294901760, %v3635_v0 }
 0x402   : > { %3436 = vmatpush.msrb.mxu0 %v7015_v13  ;;  %3613 = vmatpush.msrb.mxu3 %v3612_v45  ;;  %v7028_v45 = vand.u32 4294901760, %v6338_v56 }
 0x403   : > { %3497 = vmatpush.msrb.mxu1 %v6231_v35  ;;  %3532 = vmatpush.msrb.mxu2 %v6426_v49  ;;  %v7017_v35 = vand.u32 4294901760, %v6217_v39  ;;  %v7019_v39 = vand.u32 4294901760, %v6241_v25  ;;  %v7025_v25 = vand.u32 4294901760, %v6265_v9  ;;  %v7029_v9 = vld [vmem:[#allocation17_spill] sm:$0xff] }
 0x404   : > { %3440 = vmatpush.msrb.mxu0 %v7016_v6  ;;  %3619 = vmatpush.msrb.mxu3 %v3618_v11 }
 0x405   : > { %3499 = vmatpush.msrb.mxu1 %v6243_v41  ;;  %3534 = vmatpush.msrb.mxu2 %v6439_v19  ;;  %v3642_v41 = vand.u32 4294901760, %v3641_v20 }
 0x406   : > { %3444 = vmatpush.msrb.mxu0 %v7017_v35  ;;  %3625 = vmatpush.msrb.mxu3 %v3624_v58 }
 0x407   : > { %3501 = vmatpush.msrb.mxu1 %v6255_v15  ;;  %3536 = vmatpush.msrb.mxu2 %v6454_v40  ;;  %v7021_v15 = vand.u32 4294901760, %v6308_v16 }
 0x408   : > { %3448 = vmatpush.msrb.mxu0 %v7018_v59  ;;  %3631 = vmatpush.msrb.mxu3 %v3630_v28 }
 0x409   : > { %3503 = vmatmul.f32.vlgmr.msrb.gmra.mxu1 %v6999_v4  ;;  %3538 = vmatpush.msrb.mxu2 %v6467_v23 }
 0x40a   : > { %3704 = vmatpush.msra.mxu1 %v6291_v18  ;;  %3452 = vmatpush.msrb.mxu0 %v7019_v39 }
 0x40b   : > { %3637 = vmatpush.msrb.mxu3 %v3636_v5  ;;  %3544 = vmatmul.f32.vlgmr.msrb.gmra.mxu2 %v7020_v62 }
 0x40c   : > { %3706 = vmatpush.msra.mxu1 %v6299_v54  ;;  %3745 = vmatpush.msra.mxu2 %v7021_v15 }
 0x40d   : > { %3456 = vmatpush.msrb.mxu0 %v7022_v52  ;;  %3643 = vmatpush.msrb.mxu3 %v3642_v41 }
 0x40e   : > { %3645 = vmatmul.f32.vlgmr.msrb.gmra.mxu3 %v7023_v46  ;;  %3708 = vmatpush.msra.mxu1 %v6312_v30 }
 0x40f   : > { %3749 = vmatpush.msra.mxu2 %v7024_v31  ;;  %3812 = vmatpush.msra.mxu3 %v6291_v18  ;;  %v7030_v18 = vand.u32 4294901760, %v7029_v9 }
 0x410   : > { %3460 = vmatpush.msrb.mxu0 %v7025_v25  ;;  %3710 = vmatpush.msra.mxu1 %v6320_v38 }
 0x411   : > { %3753 = vmatpush.msra.mxu2 %v7026_v26  ;;  %3814 = vmatpush.msra.mxu3 %v6299_v54  ;;  %v7032_v54 = vand.u32 4294901760, %v7031_v24 }
 0x412   : > { %3464 = vmatpush.msrb.mxu0 %v7027_v33  ;;  %3712 = vmatpush.msra.mxu1 %v6324_v50 }
 0x413   : > { %3466 = vmatmul.f32.vlgmr.msrb.gmra.mxu0 %v6999_v4  ;;  %3757 = vmatpush.msra.mxu2 %v7028_v45  ;;  %v1119_v4 = vstv %s1118_s30 }
 0x414   : > { %3651 = vmatpush.msra.mxu0 %v6308_v16  ;;  %3816 = vmatpush.msra.mxu3 %v6312_v30  ;;  %v7033_v16 = vand.u32 4294901760, %v6374_v22  ;;  %v7034_v30 = vand.u32 4294901760, %v6387_v48 }
 0x415   : > { %3714 = vmatpush.msra.mxu1 %v6333_v47  ;;  %3761 = vmatpush.msra.mxu2 %v7030_v18 }
 0x416   : > { %3654 = vmatpush.msra.mxu0 %v6316_v43  ;;  %3818 = vmatpush.msra.mxu3 %v6320_v38  ;;  %v7035_v43 = vand.u32 4294901760, %v6399_v27 }
 0x417   : > { %3716 = vmatpush.msra.mxu1 %v6350_v12  ;;  %3765 = vmatpush.msra.mxu2 %v7032_v54 }
 0x418   : > { %3657 = vmatpush.msra.mxu0 %v6329_v61  ;;  %3820 = vmatpush.msra.mxu3 %v6324_v50  ;;  %v1352_v50 = vpop.f32.mrf.mxu3 }
 0x419   : > { %3718 = vmatpush.msra.mxu1 %v6363_v53  ;;  %3769 = vmatpush.msra.mxu2 %v7033_v16 }
 0x41a   : > { %3660 = vmatpush.msra.mxu0 %v6338_v56  ;;  %3822 = vmatpush.msra.mxu3 %v6333_v47 }
 0x41b   : > { %3720 = vmatpush.msra.mxu1 %v6376_v36  ;;  %3773 = vmatpush.msra.mxu2 %v7034_v30 }
 0x41c   : > { %3663 = vmatpush.msra.mxu0 %v7029_v9  ;;  %3824 = vmatpush.msra.mxu3 %v6350_v12  ;;  %v1313_v12 = vpop.f32.mrf.mxu2 }
 0x41d   : > { %3722 = vmatpush.msra.mxu1 %v6389_v1  ;;  %3777 = vmatpush.msra.mxu2 %v7035_v43 }
 0x41e   : > { %3666 = vmatpush.msra.mxu0 %v7031_v24  ;;  %3826 = vmatpush.msra.mxu3 %v6363_v53  ;;  %v1158_v53 = vpop.f32.mrf.mxu0 }
 0x41f   : > { %3724 = vmatpush.msra.mxu1 %v6401_v21  ;;  %3781 = vmatpush.msra.mxu2 %v3604_v34 }
 0x420   : > { %3669 = vmatpush.msra.mxu0 %v6374_v22  ;;  %3828 = vmatpush.msra.mxu3 %v6376_v36  ;;  %v7037_v36 = vld [vmem:[#allocation46_spill] sm:$0xff] }
 0x421   : > { %3726 = vmatpush.msra.mxu1 %v6413_v55  ;;  %3785 = vmatpush.msra.mxu2 %v3610_v14 }
 0x422   : > { %3672 = vmatpush.msra.mxu0 %v6387_v48  ;;  %3830 = vmatpush.msra.mxu3 %v6389_v1  ;;  %v7036_v1 = vld [vmem:[#allocation47_spill] sm:$0xff] }
 0x423   : > { %3728 = vmatpush.msra.mxu1 %v6426_v49  ;;  %3789 = vmatpush.msra.mxu2 %v3616_v10 }
 0x424   : > { %3675 = vmatpush.msra.mxu0 %v6399_v27  ;;  %3832 = vmatpush.msra.mxu3 %v6401_v21  ;;  %v1259_v21 = vpop.f32.mrf.mxu1  ;;  %v1499_v56 = vpop.f32.mrf.mxu2 }
 0x425   : > { %3730 = vmatpush.msra.mxu1 %v6439_v19  ;;  %3793 = vmatpush.msra.mxu2 %v3622_v63 }
 0x426   : > { %3678 = vmatpush.msra.mxu0 %v6411_v57  ;;  %3834 = vmatpush.msra.mxu3 %v6413_v55  ;;  %v1421_v38 = vpop.f32.mrf.mxu0  ;;  %v1159_v55 = vadd.f32 %v1158_v53, %v1119_v4 }
 0x427   : > { %3732 = vmatpush.msra.mxu1 %v6454_v40  ;;  %3797 = vmatpush.msra.mxu2 %v3628_v51 }
 0x428   : > { %3681 = vmatpush.msra.mxu0 %v6424_v32  ;;  %3836 = vmatpush.msra.mxu3 %v6426_v49  ;;  %v1600_v49 = vpop.f32.mrf.mxu3  ;;  %v1260_v57 = vadd.f32 %v1259_v21, %v1159_v55 }
 0x429   : > { %3734 = vmatpush.msra.mxu1 %v6467_v23  ;;  %3801 = vmatpush.msra.mxu2 %v3634_v29 }
 0x42a   : > { %3684 = vmatpush.msra.mxu0 %v6437_v8  ;;  %3838 = vmatpush.msra.mxu3 %v6439_v19  ;;  %v1314_v19 = vadd.f32 %v1313_v12, %v1260_v57 }
 0x42b   : > { %3738 = vmatmul.f32.vlgmr.msra.gmra.mxu1 %v7036_v1  ;;  %3805 = vmatpush.msra.mxu2 %v3640_v60 }
 0x42c   : > { %3687 = vmatpush.msra.mxu0 %v6450_v42  ;;  %3840 = vmatpush.msra.mxu3 %v6454_v40  ;;  %v1458_v61 = vpop.f32.mrf.mxu1  ;;  %v1762_v27 = vpop.f32.mrf.mxu2  ;;  %v1353_v42 = vadd.f32 %v1352_v50, %v1314_v19 }
 0x42d   : > { %3807 = vmatmul.f32.vlgmr.msra.gmra.mxu2 %v7023_v46 }
 0x42e   : > { %3690 = vmatpush.msra.mxu0 %v6463_v2  ;;  %3842 = vmatpush.msra.mxu3 %v6467_v23  ;;  %v1654_v47 = vpop.f32.mrf.mxu0  ;;  %v1422_v23 = vadd.f32 %v1421_v38, %v1353_v42 }
 0x42f   : > { %3844 = vmatmul.f32.vlgmr.msra.gmra.mxu3 %v7023_v46 }
 0x430   : > { %3693 = vmatpush.msra.mxu0 %v6478_v3  ;;  %v1799_v32 = vpop.f32.mrf.mxu3  ;;  %v1459_v3 = vadd.f32 %v1458_v61, %v1422_v23 }
 0x432   : > { %3696 = vmatpush.msra.mxu0 %v6489_v17  ;;  %v1500_v29 = vadd.f32 %v1499_v56, %v1459_v3 }
 0x433   : > { %3699 = vmatmul.f32.vlgmr.msra.gmra.mxu0 %v7037_v36 }
 0x434   : > { %v1693_v22 = vpop.f32.mrf.mxu1  ;;  %v1995_v14 = vpop.f32.mrf.mxu2  ;;  %v1601_v44 = vadd.f32 %v1600_v49, %v1500_v29 }
 0x436   : > { %v1840_v48 = vpop.f32.mrf.mxu0  ;;  %v1655_v58 = vadd.f32 %v1654_v47, %v1601_v44 }
 0x438   : > { %v2034_v40 = vpop.f32.mrf.mxu3  ;;  %v1694_v28 = vadd.f32 %v1693_v22, %v1655_v58 }
 0x43a   : > { %v1763_v59 = vadd.f32 %v1762_v27, %v1694_v28 }
 0x43c   : > { %v1941_v34 = vpop.f32.mrf.mxu1  ;;  %v2181_v63 = vpop.f32.mrf.mxu2  ;;  %v1800_v62 = vadd.f32 %v1799_v32, %v1763_v59 }
 0x43e   : > { %v2103_v8 = vpop.f32.mrf.mxu0  ;;  %v1841_v52 = vadd.f32 %v1840_v48, %v1800_v62 }
 0x440   : > { %v2282_v51 = vpop.f32.mrf.mxu3  ;;  %v1942_v25 = vadd.f32 %v1941_v34, %v1841_v52 }
 0x442   : > { %v1996_v9 = vadd.f32 %v1995_v14, %v1942_v25 }
 0x444   : > { %v2140_v10 = vpop.f32.mrf.mxu1  ;;  %v2444_v7 = vpop.f32.mrf.mxu2  ;;  %v2035_v54 = vadd.f32 %v2034_v40, %v1996_v9 }
 0x446   : > { %v2336_v2 = vpop.f32.mrf.mxu0  ;;  %v2104_v30 = vadd.f32 %v2103_v8, %v2035_v54 }
 0x448   : > { %v2481_v60 = vpop.f32.mrf.mxu3  ;;  %v2141_v36 = vadd.f32 %v2140_v10, %v2104_v30 }
 0x44a   : > { %v2182_v38 = vadd.f32 %v2181_v63, %v2141_v36 }
 0x44c   : > { %v2375_v17 = vpop.f32.mrf.mxu1  ;;  %v2677_v6 = vpop.f32.mrf.mxu2  ;;  %v2283_v47 = vadd.f32 %v2282_v51, %v2182_v38  ;;  %v7039_v38 = vld [vmem:[#allocation23_spill] sm:$0xff] }
 0x44e   : > { %v2522_v37 = vpop.f32.mrf.mxu0 }
 0x44f   : > { %v2523_v11 = vadd.f32 %v2522_v37, %v1119_v4  ;;  %v2337_v4 = vadd.f32 %v2336_v2, %v2283_v47 }
 0x450   : > { %v2716_v35 = vpop.f32.mrf.mxu3 }
 0x451   : > { %v2376_v48 = vadd.f32 %v2375_v17, %v2337_v4 }
 0x453   : > { %v2445_v32 = vadd.f32 %v2444_v7, %v2376_v48 }
 0x454   : > { %v2623_v13 = vpop.f32.mrf.mxu1  ;;  %v2863_v31 = vpop.f32.mrf.mxu2 }
 0x455   : > { %v2624_v0 = vadd.f32 %v2623_v13, %v2523_v11  ;;  %v2482_v19 = vadd.f32 %v2481_v60, %v2445_v32  ;;  %v7044_v32 = vld [vmem:[#allocation28_spill] sm:$0xff] }
 0x456   : > { %v2785_v5 = vpop.f32.mrf.mxu0 }
 0x457   : > { %v2678_v20 = vadd.f32 %v2677_v6, %v2624_v0  ;;  %v4046_v40 = vmul.f32 -1.442695, %v2482_v19 }
 0x458   : > { %v2964_v33 = vpop.f32.mrf.mxu3 }
 0x459   : > { %v2717_v41 = vadd.f32 %v2716_v35, %v2678_v20  ;;  %4133 = vpow2.f32 %v4046_v40  ;;  %v7047_v40 = vld [vmem:[#allocation13_spill] sm:$0xff] }
 0x45b   : > { %v2786_v39 = vadd.f32 %v2785_v5, %v2717_v41 }
 0x45c   : > { %v2822_v15 = vpop.f32.mrf.mxu1  ;;  %v3126_v1 = vpop.f32.mrf.mxu2 }
 0x45d   : > { %v2823_v46 = vadd.f32 %v2822_v15, %v2786_v39 }
 0x45e   : > { %v3018_v45 = vpop.f32.mrf.mxu0 }
 0x45f   : > { %v2864_v26 = vadd.f32 %v2863_v31, %v2823_v46  ;;  %v4134_v29 = vpop.eup %4133 }
 0x460   : > { %v3163_v21 = vpop.f32.mrf.mxu3  ;;  %v3854_v13 = vadd.f32 1.0, %v4134_v29  ;;  %v7051_v29 = vld [vmem:[#allocation19_spill] sm:$0xff] }
 0x461   : > { %v2965_v18 = vadd.f32 %v2964_v33, %v2864_v26 }
 0x462   : > { %4135 = vrcp.f32 %v3854_v13  ;;  %vm3861_vm14 = vweird.f32 %v3854_v13  ;;  %v3867_v31 = vand.u32 2147483648, %v3854_v13  ;;  %v3865_v25 = vand.u32 2147483647, %v3854_v13 }
 0x463   : > { %v3019_v24 = vadd.f32 %v3018_v45, %v2965_v18 }
 0x464   : > { %v3057_v16 = vpop.f32.mrf.mxu1  ;;  %v3868_v18 = vor.u32 1.1754944e-38, %v3867_v31  ;;  %vm3866_vm5 = vcmp.eq.f32.partialorder %v3865_v25, 8.507059e+37 }
 0x465   : > { %v3058_v43 = vadd.f32 %v3057_v16, %v3019_v24 }
 0x467   : > { %v3127_v53 = vadd.f32 %v3126_v1, %v3058_v43 }
 0x468   : > { %v4136_v60 = vpop.eup %4135 }
 0x469   : > { %v3164_v50 = vadd.f32 %v3163_v21, %v3127_v53  ;;  %v3857_v20 = vmul.f32 %v4136_v60, %v3854_v13  ;;  %vm3862_vm12 = vweird.f32 %v4136_v60  ;;  %v7038_v21 = vld [vmem:[#allocation22_spill] sm:$0xff]  ;;  %v7053_v13 = vld [vmem:[#allocation21_spill] sm:$0xff] }
 0x46a   : > { %vm3863_vm15 = vmor %vm3861_vm14, %vm3862_vm12 }
 0x46b   : > { %v3858_v35 = vsub.f32 1.0, %v3857_v20 }
 0x46c   : > { %v3305_v56 = vpop.f32.mrf.mxu1  ;;  %v3359_v22 = vpop.f32.mrf.mxu2 }
 0x46d   : > { %v3859_v59 = vmul.f32 %v4136_v60, %v3858_v35 }
 0x46e   : > { %v3204_v12 = vpop.f32.mrf.mxu0 }
 0x46f   : > { %v3205_v61 = vadd.f32 %v3204_v12, %v3164_v50  ;;  %v3398_v27 = vpop.f32.mrf.mxu3  ;;  %v3860_v15 = vadd.f32 %v4136_v60, %v3859_v59 }
 0x471   : > { %v3306_v49 = vadd.f32 %v3305_v56, %v3205_v61  ;;  %v3864_v45 = vsel %vm3863_vm15, %v4136_v60, %v3860_v15  ;;  %v7040_v61 = vld [vmem:[#allocation24_spill] sm:$0xff]  ;;  %v7041_v56 = vld [vmem:[#allocation25_spill] sm:$0xff] }
 0x472   : > { %v3869_v16 = vsel %vm3866_vm5, %v3868_v18, %v3864_v45 }
 0x473   : > { %v3360_v55 = vadd.f32 %v3359_v22, %v3306_v49  ;;  %v7042_v22 = vld [vmem:[#allocation26_spill] sm:$0xff] }
 0x475   : > { %v3399_v34 = vadd.f32 %v3398_v27, %v3360_v55  ;;  %v7043_v27 = vld [vmem:[#allocation27_spill] sm:$0xff] }
 0x486   : > { %v3504_v14 = vpop.f32.mrf.mxu1 }
 0x48e   : > { %v3545_v10 = vpop.f32.mrf.mxu2 }
 0x490   : > { %v3467_v57 = vpop.f32.mrf.mxu0 }
 0x491   : > { %v3468_v8 = vadd.f32 %v3467_v57, %v3399_v34  ;;  %v3646_v63 = vpop.f32.mrf.mxu3 }
 0x493   : > { %v3505_v42 = vadd.f32 %v3504_v14, %v3468_v8  ;;  %v7045_v8 = vld [vmem:[#allocation29_spill] sm:$0xff]  ;;  %v7046_v14 = vld [vmem:[#allocation12_spill] sm:$0xff] }
 0x495   : > { %v3546_v23 = vadd.f32 %v3545_v10, %v3505_v42 }
 0x497   : > { %v3647_v3 = vadd.f32 %v3646_v63, %v3546_v23  ;;  %v7048_v23 = vld [vmem:[#allocation14_spill] sm:$0xff] }
 0x4a8   : > { %v3739_v37 = vpop.f32.mrf.mxu1 }
 0x4b0   : > { %v3700_v51 = vpop.f32.mrf.mxu0  ;;  %v3808_v11 = vpop.f32.mrf.mxu2 }
 0x4b1   : > { %v3701_v2 = vadd.f32 %v3700_v51, %v3647_v3  ;;  %v7049_v3 = vld [vmem:[#allocation15_spill] sm:$0xff] }
 0x4b2   : > { %v3845_v7 = vpop.f32.mrf.mxu3 }
 0x4b3   : > { %v3740_v17 = vadd.f32 %v3739_v37, %v3701_v2  ;;  %v7050_v2 = vld [vmem:[#allocation18_spill] sm:$0xff] }
 0x4b5   : > { %v3809_v44 = vadd.f32 %v3808_v11, %v3740_v17  ;;  %v7052_v11 = vld [vmem:[#allocation20_spill] sm:$0xff] }
 0x4b7   : > { %v3846_v58 = vadd.f32 %v3845_v7, %v3809_v44 }
 0x4b9   : > { %v4047_v0 = vmul.f32 -1.442695, %v3846_v58 }
 0x4bb   : > { %4137 = vpow2.f32 %v4047_v0 }
 0x4c1   : > { %v4138_v6 = vpop.eup %4137 }
 0x4c2   : > { %v3855_v28 = vadd.f32 1.0, %v4138_v6 }
 0x4c4   : > { %4139 = vrcp.f32 %v3855_v28  ;;  %v3882_v62 = vand.u32 2147483648, %v3855_v28  ;;  %v3880_v46 = vand.u32 2147483647, %v3855_v28  ;;  %vm3876_vm0 = vweird.f32 %v3855_v28 }
 0x4c6   : > { %v3883_v33 = vor.u32 1.1754944e-38, %v3882_v62  ;;  %vm3881_vm2 = vcmp.eq.f32.partialorder %v3880_v46, 8.507059e+37 }
 0x4ca   : > { %v4140_v5 = vpop.eup %4139 }
 0x4cb   : > { %v3872_v41 = vmul.f32 %v4140_v5, %v3855_v28  ;;  %vm3877_vm13 = vweird.f32 %v4140_v5 }
 0x4cc   : > { %vm3878_vm1 = vmor %vm3876_vm0, %vm3877_vm13 }
 0x4cd   : > { %v3873_v39 = vsub.f32 1.0, %v3872_v41 }
 0x4cf   : > { %v3874_v52 = vmul.f32 %v4140_v5, %v3873_v39 }
 0x4d1   : > { %v3875_v26 = vadd.f32 %v4140_v5, %v3874_v52 }
 0x4d3   : > { %v3879_v9 = vsel %vm3878_vm1, %v4140_v5, %v3875_v26 }
 0x4d4   : > { %v3884_v24 = vsel %vm3881_vm2, %v3883_v33, %v3879_v9 }
 0x4d5   : > { %v3888_v54 = vrot.slane %v3884_v24, 7 }
 0x4d7   : > { %v3890_v30 = vsel %vm3889_vm4, %v3869_v16, %v3888_v54  ;;  %v3891_v43 = vsel %vm422_vm3, %v3869_v16, %v3888_v54 }
 0x4d8   : > { %v3892_v1 = vrot.slane %v3891_v43, 1  ;;  %v3893_v36 = vperm.slane %v3890_v30, 0  ;;  %v3894_v53 = vperm.slane %v3890_v30, 1 }
 0x4da   : > { %v3901_v12 = vmul.f32 %v3893_v36, %v7038_v21  ;;  %v3902_v50 = vmul.f32 %v3894_v53, %v7039_v38  ;;  %v3903_v47 = vmul.f32 %v3893_v36, %v7040_v61  ;;  %v3904_v4 = vmul.f32 %v3894_v53, %v7041_v56 }
 0x4db   : > { %v3895_v49 = vperm.slane %v3892_v1, 0  ;;  %v3905_v48 = vmul.f32 %v3893_v36, %v7042_v22  ;;  %v3896_v55 = vperm.slane %v3892_v1, 1  ;;  %v3906_v57 = vmul.f32 %v3894_v53, %v7043_v27 }
 0x4dc   : > { %3917 = vst [vmem:[%s6632_s12] sm:$0xff] %v3901_v12  ;;  %v3907_v34 = vmul.f32 %v3893_v36, %v7044_v32  ;;  %v3908_v19 = vmul.f32 %v3894_v53, %v7045_v8 }
 0x4dd   : > { %3918 = vst [vmem:[%s6632_s12 + $0x8] sm:$0xff] %v3902_v50  ;;  %v3909_v42 = vmul.f32 %v3895_v49, %v7046_v14  ;;  %v3910_v10 = vmul.f32 %v3896_v55, %v7047_v40  ;;  %v3911_v63 = vmul.f32 %v3895_v49, %v7048_v23  ;;  %v3912_v51 = vmul.f32 %v3896_v55, %v7049_v3 }
 0x4de   : > { %3919 = vst [vmem:[%s6632_s12 + $0x10] sm:$0xff] %v3903_v47  ;;  %v3913_v37 = vmul.f32 %v3895_v49, %v7050_v2  ;;  %v3914_v17 = vmul.f32 %v3896_v55, %v7051_v29  ;;  %v3915_v44 = vmul.f32 %v3895_v49, %v7052_v11  ;;  %v3916_v7 = vmul.f32 %v3896_v55, %v7053_v13 }
 0x4df   : > { %3920 = vst [vmem:[%s6632_s12 + $0x18] sm:$0xff] %v3904_v4 }
 0x4e0   : > { %3921 = vst [vmem:[%s6632_s12 + $0x20] sm:$0xff] %v3905_v48 }
 0x4e1   : > { %3922 = vst [vmem:[%s6632_s12 + $0x28] sm:$0xff] %v3906_v57 }
 0x4e2   : > { %3923 = vst [vmem:[%s6632_s12 + $0x30] sm:$0xff] %v3907_v34 }
 0x4e3   : > { %3924 = vst [vmem:[%s6632_s12 + $0x38] sm:$0xff] %v3908_v19 }
 0x4e4   : > { %3925 = vst [vmem:[%s6632_s12 + $0x40] sm:$0xff] %v3909_v42 }
 0x4e5   : > { %3926 = vst [vmem:[%s6632_s12 + $0x48] sm:$0xff] %v3910_v10 }
 0x4e6   : > { %3927 = vst [vmem:[%s6632_s12 + $0x50] sm:$0xff] %v3911_v63 }
 0x4e7   : > { %3928 = vst [vmem:[%s6632_s12 + $0x58] sm:$0xff] %v3912_v51 }
 0x4e8   : > { %3929 = vst [vmem:[%s6632_s12 + $0x60] sm:$0xff] %v3913_v37 }
 0x4e9   : > { %3930 = vst [vmem:[%s6632_s12 + $0x68] sm:$0xff] %v3914_v17 }
 0x4ea   : > { %3931 = vst [vmem:[%s6632_s12 + $0x70] sm:$0xff] %v3915_v44 }
 0x4eb   : > { %3932 = vst [vmem:[%s6632_s12 + $0x78] sm:$0xff] %v3916_v7 }
 0x4ec   : > { %4244 = shalt.err (!%p4241_p10)
}
 0x4ed   : > { %s4292_s24 = smov 256   ;;  %s4293_s12 = smov 16  }
 0x4ee   : > { %4064 = dma.vmem_to_hbm [thread:$0]  (%p4406_p3), %s3948_s6, 2048, %s3950_s25, %s3934_s10, %s4292_s24, %s4292_s24, %s4293_s12  }
 0x4ef PF: > { %s3964_s17 = sand.u32 1, %s4275_s26   ;;  %p7054_p12 = scmp.ge.s32.totalorder %s4287_s29, 2 }
 0x4f0   : > { %s3965_s15 = scalar_lea.sflag [#allocation5], %s3964_s17 }
 0x4f1   : > { %p4075_p13 = pnand %p7054_p12, %p4372_p6 }
 0x4f3   : > { %p4076_p0 = pneg %p4075_p13 }
 0x4f5   : > { %4270 = dma.done.wait (%p4076_p0), %s3965_s15, 2048  }
 0x4f6   : > { %4272 = vsyncadd (%p4076_p0), %s3965_s15, 4294965248  ;;  %p22_p5 = scmp.ge.s32.totalorder %s4390_s16, 4   ;;  %s7055_s26 = smov %s4279_s27 }
 0x4f7   : > { %s7056_s27 = smov %s4283_s28  ;;  %s7057_s28 = smov %s4402_s21 }
 0x4f8   : > { %s7058_s29 = smov %s4390_s16  ;;  %24 = sbr.rel (!%p22_p5) target bundleno = 8 (0x8), region = 97 }
 0x4fd   :  { %3971 = vsyncpa [#allocation4], 1 }
 0x4fe   :  { %3973 = vsyncpa [#allocation4 + $0x1], 1 }
 0x4ff   :  { %3974 = vsyncpa [#allocation7], 1 }
 0x500   :  { %3975 = vsyncpa [#allocation5], 1 }
 0x501   :  { %3977 = vsyncpa [#allocation5 + $0x1], 1 }

</bundles_post_ra>
